<compile_context>
chip_gen: v7x
topology: tpu7x:2x2x1
jax: 0.10.0
libtpu: 0.0.40
codegen_flags: <defaults>
</compile_context>

<pallas_src>
import functools

import jax
import jax.numpy as jnp
import numpy as np
from jax.experimental import pallas as pl
from jax.experimental.pallas import tpu as pltpu


# ----------------------------------------------------------------------------
# Fused kernel: 3-layer MLP (Linear+tanh) + global 0..255 rescale + blur
# ----------------------------------------------------------------------------
def fused_generator_kernel(z_ref, w0_ref, b0_ref, w1_ref, b1_ref,
                           w2_ref, b2_ref, blur_ref, o_ref, *,
                           channels, plane):
    # bf16 operands into the MXU, f32 accumulation, f32 bias/tanh.
    h = jnp.tanh(
        jnp.dot(z_ref[...].astype(jnp.bfloat16), w0_ref[...],
                preferred_element_type=jnp.float32) + b0_ref[...])
    h = jnp.tanh(
        jnp.dot(h.astype(jnp.bfloat16), w1_ref[...],
                preferred_element_type=jnp.float32) + b1_ref[...])
    h = jnp.tanh(
        jnp.dot(h.astype(jnp.bfloat16), w2_ref[...],
                preferred_element_type=jnp.float32) + b2_ref[...])
    # h: (B, C*H*W)

    # scale_tensor_to_0_1: global (whole-tensor) min/max, then * 255.
    x_min = jnp.min(h, keepdims=True)          # (1, 1)
    x_max = jnp.max(h, keepdims=True)          # (1, 1)
    denom = x_max - x_min
    # Guard degenerate all-equal output (reference would produce NaN/Inf).
    denom = jnp.where(denom == 0.0, 1.0, denom)
    scaled = (h - x_min) * (255.0 / denom)     # one scalar mul per element

    # Depthwise, reflect-padded Gaussian blur as a per-plane (H*W, H*W)
    # matmul, applied to each channel's lane slice of the lane-dense output.
    for c in range(channels):
        sl = slice(c * plane, (c + 1) * plane)
        o_ref[:, sl] = jnp.dot(scaled[:, sl], blur_ref[...],
                               preferred_element_type=jnp.float32)


def fc_generator_with_blur_forward(z, params, out_chw, blur_mat):
    C, H, W = out_chw
    w0, b0, w1, b1, w2, b2 = params
    batch = z.shape[0]
    out_dim = C * H * W

    vmem = pl.BlockSpec(memory_space=pltpu.MemorySpace.VMEM)
    kernel = functools.partial(fused_generator_kernel,
                               channels=C, plane=H * W)
    flat = pl.pallas_call(
        kernel,
        in_specs=[vmem] * 8,
        out_specs=vmem,
        out_shape=jax.ShapeDtypeStruct((batch, out_dim), jnp.float32),
    )(z, w0, b0, w1, b1, w2, b2, blur_mat)

    # Layout plumbing only (NCHW view of the lane-dense kernel output).
    return flat.reshape(batch, C, H, W)


# ----------------------------------------------------------------------------
# Host-side constant construction
# ----------------------------------------------------------------------------
def make_linear_params(key, fan_in, fan_out):
    # PyTorch nn.Linear-style uniform init (deterministic given key).
    kw, kb = jax.random.split(key)
    bound = 1.0 / np.sqrt(fan_in)
    w = jax.random.uniform(kw, (fan_in, fan_out), jnp.float32, -bound, bound)
    b = jax.random.uniform(kb, (1, fan_out), jnp.float32, -bound, bound)
    return w, b


def gaussian_kernel2d(kernel_size=(3, 3), sigma=0.5):
    # Matches torchvision.transforms.functional.gaussian_blur:
    #   kernel1d_x from kernel_size[0], kernel1d_y from kernel_size[1],
    #   kernel2d[y, x] = ky[y] * kx[x].
    def k1d(ks, s):
        half = (ks - 1) * 0.5
        x = np.linspace(-half, half, ks)
        pdf = np.exp(-0.5 * (x / s) ** 2)
        return pdf / pdf.sum()

    kx = k1d(kernel_size[0], sigma)   # width taps
    ky = k1d(kernel_size[1], sigma)   # height taps
    return np.outer(ky, kx).astype(np.float32)   # (kh, kw)


def build_blur_matrix(H, W, kernel2d):
    """Dense per-plane linear operator for the reflect-padded 2D blur.

    out_plane = x_plane @ M, where x_plane/out_plane are (rows, H*W) in
    row-major (h, w) order.  The blur is depthwise, so ONE (H*W, H*W) matrix
    serves every channel (no block-diagonal (C*H*W)^2 blow-up).
    """
    kh, kw = kernel2d.shape
    rh, rw = kh // 2, kw // 2
    n = H * W

    def reflect(i, size):          # PyTorch 'reflect' padding semantics
        if i < 0:
            return -i
        if i >= size:
            return 2 * size - 2 - i
        return i

    m = np.zeros((n, n), np.float32)
    for h in range(H):
        for w in range(W):
            out = h * W + w
            for dy in range(-rh, rh + 1):
                for dx in range(-rw, rw + 1):
                    src = reflect(h + dy, H) * W + reflect(w + dx, W)
                    m[src, out] += kernel2d[dy + rh, dx + rw]
    return jnp.asarray(m)


# ----------------------------------------------------------------------------
# Pure-JAX reference (same bf16 weight casts as the kernel)
# ----------------------------------------------------------------------------
def reference_forward(z, params, out_chw, blur_mat):
    C, H, W = out_chw
    w0, b0, w1, b1, w2, b2 = params
    h = jnp.tanh(jnp.dot(z.astype(jnp.bfloat16), w0,
                         preferred_element_type=jnp.float32) + b0)
    h = jnp.tanh(jnp.dot(h.astype(jnp.bfloat16), w1,
                         preferred_element_type=jnp.float32) + b1)
    h = jnp.tanh(jnp.dot(h.astype(jnp.bfloat16), w2,
                         preferred_element_type=jnp.float32) + b2)
    x_min = jnp.min(h)
    x_max = jnp.max(h)
    scaled = (h - x_min) * (255.0 / (x_max - x_min))
    planes = scaled.reshape(-1, H * W)
    blurred = jnp.dot(planes, blur_mat,
                      preferred_element_type=jnp.float32,
                      precision=jax.lax.Precision.HIGHEST)
    return blurred.reshape(z.shape[0], C, H, W)


# ----------------------------------------------------------------------------
# Example run
# ----------------------------------------------------------------------------
if __name__ == "__main__":
    # Module-consistent shapes; batch is large per the performance review so
    # the per-call weight DMA / launch overhead is amortized:
    #   latent_space_dimension = 128 (module default)
    #   output (C, H, W) = (2, 8, 16) -> H*W = 128 (lane-dense plane),
    #                                    C*H*W = 256
    batch = 128
    latent_dim = 128
    C, H, W = 2, 8, 16
    layer0_out, layer1_out, layer2_out = 512, 1024, C * H * W

    root = jax.random.PRNGKey(0)
    kz, k0, k1, k2 = jax.random.split(root, 4)

    z = jax.random.normal(kz, (batch, latent_dim), jnp.float32)
    w0, b0 = make_linear_params(k0, latent_dim, layer0_out)
    w1, b1 = make_linear_params(k1, layer0_out, layer1_out)
    w2, b2 = make_linear_params(k2, layer1_out, layer2_out)

    # Weights in bf16 (halves the dominant HBM->VMEM traffic); biases in f32.
    params = (w0.astype(jnp.bfloat16), b0,
              w1.astype(jnp.bfloat16), b1,
              w2.astype(jnp.bfloat16), b2)

    k2d = gaussian_kernel2d(kernel_size=(3, 3), sigma=0.5)
    blur_mat = build_blur_matrix(H, W, k2d)          # (H*W, H*W), f32

    out = fc_generator_with_blur_forward(z, params, (C, H, W), blur_mat)
    out = jax.block_until_ready(out)

    # Sanity + reference checks.  Tolerance is loose because the bf16 weight
    # casts + global min/max rescale amplify tiny matmul/tanh differences
    # (values live on a 0..255 scale), as noted in the review.
    ref = reference_forward(z, params, (C, H, W), blur_mat)
    max_err = float(jnp.max(jnp.abs(out - ref)))

    assert out.shape == (batch, C, H, W), out.shape
    assert out.dtype == jnp.float32
    assert bool(jnp.all(jnp.isfinite(out)))
    assert bool(jnp.all(out >= -1e-2)) and bool(jnp.all(out <= 255.0 + 1e-2))
    assert max_err < 2.0, f"max |kernel - reference| = {max_err}"
    print("KERNEL_OK")
</pallas_src>

<mosaic_0001>
module attributes {stable_mosaic.version = 11 : i64} {
  func.func @fused_generator_kernel(%arg0: memref<128x128xf32, #tpu.memory_space<vmem>>, %arg1: memref<128x512xbf16, #tpu.memory_space<vmem>>, %arg2: memref<1x512xf32, #tpu.memory_space<vmem>>, %arg3: memref<512x1024xbf16, #tpu.memory_space<vmem>>, %arg4: memref<1x1024xf32, #tpu.memory_space<vmem>>, %arg5: memref<1024x256xbf16, #tpu.memory_space<vmem>>, %arg6: memref<1x256xf32, #tpu.memory_space<vmem>>, %arg7: memref<128x128xf32, #tpu.memory_space<vmem>>, %arg8: memref<128x256xf32, #tpu.memory_space<vmem>>) attributes {dimension_semantics = [], scalar_prefetch = 0 : i64, scratch_operands = 0 : i64, tpu.core_type = #tpu.core_type<tc>} {
    %c0 = arith.constant 0 : index
    %c0_0 = arith.constant 0 : index
    %0 = vector.load %arg0[%c0, %c0_0] : memref<128x128xf32, #tpu.memory_space<vmem>>, vector<128x128xf32>
    %1 = arith.truncf %0 : vector<128x128xf32> to vector<128x128xbf16>
    %c0_1 = arith.constant 0 : index
    %c0_2 = arith.constant 0 : index
    %2 = vector.load %arg1[%c0_1, %c0_2] : memref<128x512xbf16, #tpu.memory_space<vmem>>, vector<128x512xbf16>
    %cst = arith.constant dense<0.000000e+00> : vector<128x512xf32>
    %3 = tpu.matmul %1, %2, %cst {dimension_numbers = #tpu.dot_dimension_numbers<[1], [0], [0], [1], [0, 0, 1, 1], [], []>} : vector<128x128xbf16>, vector<128x512xbf16>, vector<128x512xf32> -> vector<128x512xf32>
    %c0_3 = arith.constant 0 : index
    %c0_4 = arith.constant 0 : index
    %4 = vector.load %arg2[%c0_3, %c0_4] : memref<1x512xf32, #tpu.memory_space<vmem>>, vector<1x512xf32>
    %5 = vector.broadcast %4 : vector<1x512xf32> to vector<128x512xf32>
    %6 = arith.addf %3, %5 : vector<128x512xf32>
    %7 = math.tanh %6 : vector<128x512xf32>
    %8 = arith.truncf %7 : vector<128x512xf32> to vector<128x512xbf16>
    %c0_5 = arith.constant 0 : index
    %c0_6 = arith.constant 0 : index
    %9 = vector.load %arg3[%c0_5, %c0_6] : memref<512x1024xbf16, #tpu.memory_space<vmem>>, vector<512x1024xbf16>
    %cst_7 = arith.constant dense<0.000000e+00> : vector<128x1024xf32>
    %10 = tpu.matmul %8, %9, %cst_7 {dimension_numbers = #tpu.dot_dimension_numbers<[1], [0], [0], [1], [0, 0, 1, 1], [], []>} : vector<128x512xbf16>, vector<512x1024xbf16>, vector<128x1024xf32> -> vector<128x1024xf32>
    %c0_8 = arith.constant 0 : index
    %c0_9 = arith.constant 0 : index
    %11 = vector.load %arg4[%c0_8, %c0_9] : memref<1x1024xf32, #tpu.memory_space<vmem>>, vector<1x1024xf32>
    %12 = vector.broadcast %11 : vector<1x1024xf32> to vector<128x1024xf32>
    %13 = arith.addf %10, %12 : vector<128x1024xf32>
    %14 = math.tanh %13 : vector<128x1024xf32>
    %15 = arith.truncf %14 : vector<128x1024xf32> to vector<128x1024xbf16>
    %c0_10 = arith.constant 0 : index
    %c0_11 = arith.constant 0 : index
    %16 = vector.load %arg5[%c0_10, %c0_11] : memref<1024x256xbf16, #tpu.memory_space<vmem>>, vector<1024x256xbf16>
    %cst_12 = arith.constant dense<0.000000e+00> : vector<128x256xf32>
    %17 = tpu.matmul %15, %16, %cst_12 {dimension_numbers = #tpu.dot_dimension_numbers<[1], [0], [0], [1], [0, 0, 1, 1], [], []>} : vector<128x1024xbf16>, vector<1024x256xbf16>, vector<128x256xf32> -> vector<128x256xf32>
    %c0_13 = arith.constant 0 : index
    %c0_14 = arith.constant 0 : index
    %18 = vector.load %arg6[%c0_13, %c0_14] : memref<1x256xf32, #tpu.memory_space<vmem>>, vector<1x256xf32>
    %19 = vector.broadcast %18 : vector<1x256xf32> to vector<128x256xf32>
    %20 = arith.addf %17, %19 : vector<128x256xf32>
    %21 = math.tanh %20 : vector<128x256xf32>
    %22 = vector.shape_cast %21 : vector<128x256xf32> to vector<1x128x256xf32>
    %cst_15 = arith.constant dense<0x7F800000> : vector<1xf32>
    %23 = vector.multi_reduction <minimumf>, %22, %cst_15 [1, 2] : vector<1x128x256xf32> to vector<1xf32>
    %24 = vector.shape_cast %23 : vector<1xf32> to vector<1x1x1xf32>
    %25 = vector.extract %24[0, 0, 0] : f32 from vector<1x1x1xf32>
    %26 = vector.broadcast %25 : f32 to vector<1x1xf32>
    %27 = vector.shape_cast %21 : vector<128x256xf32> to vector<1x128x256xf32>
    %cst_16 = arith.constant dense<0xFF800000> : vector<1xf32>
    %28 = vector.multi_reduction <maximumf>, %27, %cst_16 [1, 2] : vector<1x128x256xf32> to vector<1xf32>
    %29 = vector.shape_cast %28 : vector<1xf32> to vector<1x1x1xf32>
    %30 = vector.extract %29[0, 0, 0] : f32 from vector<1x1x1xf32>
    %31 = vector.broadcast %30 : f32 to vector<1x1xf32>
    %32 = arith.subf %31, %26 : vector<1x1xf32>
    %cst_17 = arith.constant 0.000000e+00 : f32
    %33 = vector.broadcast %cst_17 : f32 to vector<1x1xf32>
    %34 = arith.cmpf oeq, %32, %33 : vector<1x1xf32>
    %cst_18 = arith.constant 1.000000e+00 : f32
    %35 = vector.broadcast %cst_18 : f32 to vector<1x1xf32>
    %36 = arith.select %34, %35, %32 : vector<1x1xi1>, vector<1x1xf32>
    %37 = vector.broadcast %26 : vector<1x1xf32> to vector<128x256xf32>
    %38 = arith.subf %21, %37 : vector<128x256xf32>
    %cst_19 = arith.constant 2.550000e+02 : f32
    %39 = vector.broadcast %cst_19 : f32 to vector<1x1xf32>
    %40 = arith.divf %39, %36 : vector<1x1xf32>
    %41 = vector.broadcast %40 : vector<1x1xf32> to vector<128x256xf32>
    %42 = arith.mulf %38, %41 : vector<128x256xf32>
    %43 = vector.extract_strided_slice %42 {offsets = [0, 0], sizes = [128, 128], strides = [1, 1]} : vector<128x256xf32> to vector<128x128xf32>
    %c0_20 = arith.constant 0 : index
    %c0_21 = arith.constant 0 : index
    %44 = vector.load %arg7[%c0_20, %c0_21] : memref<128x128xf32, #tpu.memory_space<vmem>>, vector<128x128xf32>
    %cst_22 = arith.constant dense<0.000000e+00> : vector<128x128xf32>
    %45 = tpu.matmul %43, %44, %cst_22 {dimension_numbers = #tpu.dot_dimension_numbers<[1], [0], [0], [1], [0, 0, 1, 1], [], []>} : vector<128x128xf32>, vector<128x128xf32>, vector<128x128xf32> -> vector<128x128xf32>
    %c0_23 = arith.constant 0 : index
    %c0_24 = arith.constant 0 : index
    %46 = vector.load %arg8[%c0_23, %c0_24] : memref<128x256xf32, #tpu.memory_space<vmem>>, vector<128x128xf32>
    tpu.vector_store %arg8[%c0_23, %c0_24], %45 {strides = array<i32>} : memref<128x256xf32, #tpu.memory_space<vmem>>, vector<128x128xf32>,
    %47 = vector.extract_strided_slice %42 {offsets = [0, 128], sizes = [128, 128], strides = [1, 1]} : vector<128x256xf32> to vector<128x128xf32>
    %c0_25 = arith.constant 0 : index
    %c0_26 = arith.constant 0 : index
    %48 = vector.load %arg7[%c0_25, %c0_26] : memref<128x128xf32, #tpu.memory_space<vmem>>, vector<128x128xf32>
    %cst_27 = arith.constant dense<0.000000e+00> : vector<128x128xf32>
    %49 = tpu.matmul %47, %48, %cst_27 {dimension_numbers = #tpu.dot_dimension_numbers<[1], [0], [0], [1], [0, 0, 1, 1], [], []>} : vector<128x128xf32>, vector<128x128xf32>, vector<128x128xf32> -> vector<128x128xf32>
    %c0_28 = arith.constant 0 : index
    %c128 = arith.constant 128 : index
    %50 = vector.load %arg8[%c0_28, %c128] : memref<128x256xf32, #tpu.memory_space<vmem>>, vector<128x128xf32>
    tpu.vector_store %arg8[%c0_28, %c128], %49 {strides = array<i32>} : memref<128x256xf32, #tpu.memory_space<vmem>>, vector<128x128xf32>,
    return
  }
}

</mosaic_0001>

<bundles_post_ra>
// kernel: tpu_custom_call.1
= control target key start
LH: loop header
LB: loop body
LE: loop exit
PB: predicated region body
PF: predicated region fallthrough
CT: control target
= control target key end

     0   :  { %13 = vsyncpa [#allocation3], 0  ;;  %s8470_s0 = inlined_call_operand.hbm [shape: f32[128,128], index: 0, kind: input, shape index: {}]   ;;  %s8471_s1 = inlined_call_operand.hbm [shape: bf16[128,512], index: 1, kind: input, shape index: {}]   ;;  %s8472_s2 = inlined_call_operand.vmem [shape: f32[1,512], index: 2, kind: input, shape index: {}]   ;;  %s8473_s3 = inlined_call_operand.hbm [shape: bf16[512,1024], index: 3, kind: input, shape index: {}]   ;;  %s8474_s4 = inlined_call_operand.vmem [shape: f32[1,1024], index: 4, kind: input, shape index: {}]   ;;  %s8475_s5 = inlined_call_operand.hbm [shape: bf16[1024,256], index: 5, kind: input, shape index: {}]   ;;  %s8476_s6 = inlined_call_operand.vmem [shape: f32[1,256], index: 6, kind: input, shape index: {}]   ;;  %s8477_s7 = inlined_call_operand.hbm [shape: f32[128,128], index: 7, kind: input, shape index: {}]   ;;  %s8478_s8 = inlined_call_operand.hbm [shape: f32[128,256], index: 8, kind: output, shape index: {}]  }
   0x1   :  { %14 = vsyncpa [#allocation6], 0 }
   0x2   :  { %15 = vsyncpa [#allocation9], 0 }
   0x3   :  { %16 = vsyncpa [#allocation4], 0  ;;  %s7041_s27 = smov [#allocation5]   ;;  %s6901_s9 = scalar_lea.hbm %s8471_s1, 4096 }
   0x4   :  { %s34_s28 = sshll.u32 %s7041_s27, 4  ;;  %p6902_p0 = scmp.ne.s32.totalorder %s8471_s1, %s6901_s9  ;;  %s35_s28 = int_to_ptr.vmem [resolvable:$true] %s34_s28 }
   0x5   :  { %p6905_p1 = scmp.lt.u32.totalorder %s6901_s9, %s8471_s1 }
   0x7   :  { %p6907_p2 = pnand %p6905_p1, %p6902_p0 }
   0x9   :  { %6910 = shalt.err (!%p6907_p2)
}
   0xa   :  { %s6911_s14 = scalar_lea.vmem %s35_s28, 4096  ;;  %p6916_p4 = scmp.lt.s32.totalorder %s35_s28, %s35_s28 }
   0xb   :  { %p6912_p3 = scmp.ne.s32.totalorder %s35_s28, %s6911_s14  ;;  %p6917_p5 = scmp.lt.s32.totalorder %s6911_s14, %s6911_s14 }
   0xd   :  { %p6918_p6 = por %p6917_p5, %p6916_p4 }
   0xf   :  { %p6919_p7 = pnand %p6918_p6, %p6912_p3 }
  0x11   :  { %6922 = shalt.err (!%p6919_p7)
}
  0x12   :  { %s7042_s15 = smov 256   ;;  %s7043_s16 = smov 16  }
  0x13   :  { %40 = dma.hbm_to_vmem [thread:$0]  %s8471_s1, 4096, %s35_s28, [#allocation6], %s7042_s15, %s7042_s15, %s7043_s16  }
  0x14   :  { %s7044_s19 = smov [#allocation8]   ;;  %s7045_s21 = smov [#allocation2]  }
  0x15   :  { %s62_s20 = sshll.u32 %s7044_s19, 4  ;;  %s22_s22 = sshll.u32 %s7045_s21, 4  ;;  %s63_s20 = int_to_ptr.vmem [resolvable:$true] %s62_s20  ;;  %s23_s22 = int_to_ptr.vmem [resolvable:$true] %s22_s22 }
  0x16   :  { %s6923_s25 = scalar_lea.hbm %s8475_s5, 16384 }
  0x17   :  { %p6924_p8 = scmp.ne.s32.totalorder %s8475_s5, %s6923_s25  ;;  %p6927_p9 = scmp.lt.u32.totalorder %s6923_s25, %s8475_s5 }
  0x19   :  { %p6929_p10 = pnand %p6927_p9, %p6924_p8 }
  0x1b   :  { %6932 = shalt.err (!%p6929_p10)
}
  0x1c   :  { %s6933_s1 = scalar_lea.vmem %s63_s20, 16384  ;;  %p6938_p12 = scmp.lt.s32.totalorder %s63_s20, %s63_s20 }
  0x1d   :  { %p6934_p11 = scmp.ne.s32.totalorder %s63_s20, %s6933_s1  ;;  %p6939_p13 = scmp.lt.s32.totalorder %s6933_s1, %s6933_s1 }
  0x1f   :  { %p6940_p0 = por %p6939_p13, %p6938_p12 }
  0x21   :  { %p6941_p1 = pnand %p6940_p0, %p6934_p11 }
  0x23   :  { %6944 = shalt.err (!%p6941_p1)
}
  0x24   :  { %s7046_s28 = smov 128   ;;  %s7047_s9 = smov 8  }
  0x25   :  { %68 = dma.hbm_to_vmem [thread:$0]  %s8475_s5, 16384, %s63_s20, [#allocation9], %s7046_s28, %s7046_s28, %s7047_s9  }
  0x26   :  { %s6945_s14 = scalar_lea.hbm %s8470_s0, 2048 }
  0x27   :  { %p6946_p2 = scmp.ne.s32.totalorder %s8470_s0, %s6945_s14  ;;  %p6949_p3 = scmp.lt.u32.totalorder %s6945_s14, %s8470_s0 }
  0x29   :  { %p6951_p4 = pnand %p6949_p3, %p6946_p2 }
  0x2b   :  { %6954 = shalt.err (!%p6951_p4)
}
  0x2c   :  { %s6955_s23 = scalar_lea.vmem %s23_s22, 2048  ;;  %p6960_p6 = scmp.lt.s32.totalorder %s23_s22, %s23_s22 }
  0x2d   :  { %p6956_p5 = scmp.ne.s32.totalorder %s23_s22, %s6955_s23  ;;  %p6961_p7 = scmp.lt.s32.totalorder %s6955_s23, %s6955_s23 }
  0x2f   :  { %p6962_p8 = por %p6961_p7, %p6960_p6 }
  0x31   :  { %p6963_p9 = pnand %p6962_p8, %p6956_p5 }
  0x33   :  { %6966 = shalt.err (!%p6963_p9)
}
  0x34   :  { %28 = dma.hbm_to_vmem [thread:$0]  %s8470_s0, 2048, %s23_s22, [#allocation3], %s7046_s28, %s7046_s28, %s7047_s9  }
  0x35   :  { %s7048_s24 = smov [#allocation7]   ;;  %s6967_s29 = scalar_lea.hbm %s8473_s3, 32768 }
  0x36   :  { %s48_s25 = sshll.u32 %s7048_s24, 4  ;;  %p6968_p10 = scmp.ne.s32.totalorder %s8473_s3, %s6967_s29  ;;  %s49_s25 = int_to_ptr.vmem [resolvable:$true] %s48_s25 }
  0x37   :  { %p6971_p11 = scmp.lt.u32.totalorder %s6967_s29, %s8473_s3 }
  0x39   :  { %p6973_p12 = pnand %p6971_p11, %p6968_p10 }
  0x3b   :  { %6976 = shalt.err (!%p6973_p12)
}
  0x3c   :  { %s6977_s12 = scalar_lea.vmem %s49_s25, 32768  ;;  %p6982_p0 = scmp.lt.s32.totalorder %s49_s25, %s49_s25 }
  0x3d   :  { %p6978_p13 = scmp.ne.s32.totalorder %s49_s25, %s6977_s12  ;;  %p6983_p1 = scmp.lt.s32.totalorder %s6977_s12, %s6977_s12 }
  0x3f   :  { %p6984_p2 = por %p6983_p1, %p6982_p0 }
  0x41   :  { %p6985_p3 = pnand %p6984_p2, %p6978_p13 }
  0x43   :  { %6988 = shalt.err (!%p6985_p3)
}
  0x44   :  { %s7049_s0 = smov 512   ;;  %s7050_s22 = smov 32  }
  0x45   :  { %54 = dma.hbm_to_vmem [thread:$0]  %s8473_s3, 32768, %s49_s25, [#allocation6], %s7049_s0, %s7049_s0, %s7050_s22  }
  0x46   :  { %s7051_s17 = smov [#allocation10]   ;;  %s6989_s23 = scalar_lea.hbm %s8477_s7, 2048 }
  0x47   :  { %s76_s18 = sshll.u32 %s7051_s17, 4  ;;  %p6990_p4 = scmp.ne.s32.totalorder %s8477_s7, %s6989_s23  ;;  %s77_s18 = int_to_ptr.vmem [resolvable:$true] %s76_s18 }
  0x48   :  { %p6993_p5 = scmp.lt.u32.totalorder %s6989_s23, %s8477_s7 }
  0x4a   :  { %p6995_p6 = pnand %p6993_p5, %p6990_p4 }
  0x4c   :  { %6998 = shalt.err (!%p6995_p6)
}
  0x4d   :  { %s6999_s27 = scalar_lea.vmem %s77_s18, 2048  ;;  %p7004_p8 = scmp.lt.s32.totalorder %s77_s18, %s77_s18 }
  0x4e   :  { %p7000_p7 = scmp.ne.s32.totalorder %s77_s18, %s6999_s27  ;;  %p7005_p9 = scmp.lt.s32.totalorder %s6999_s27, %s6999_s27 }
  0x50   :  { %p7006_p10 = por %p7005_p9, %p7004_p8 }
  0x52   :  { %p7007_p11 = pnand %p7006_p10, %p7000_p7 }
  0x54   :  { %7010 = shalt.err (!%p7007_p11)
}
  0x55   :  { %82 = dma.hbm_to_vmem [thread:$0]  %s8477_s7, 2048, %s77_s18, [#allocation9], %s7046_s28, %s7046_s28, %s7047_s9  }
  0x56   :  { %7033 = dma.done.wait [#allocation3], 2048  }
  0x57   :  { %7034 = vsyncadd [#allocation3], 4294965248 }
  0x58   :  { %7035 = dma.done.wait [#allocation6], 36864  }
  0x59   :  { %7036 = vsyncadd [#allocation6], 4294930432 }
  0x5a   :  { %7037 = dma.done.wait [#allocation9], 18432  }
  0x5b   :  { %7038 = vsyncadd [#allocation9], 4294948864  ;;  %v7052_v0 = vmov 0   ;;  %v6210_v1 = vld [vmem:[#allocation5 + $0x4] ss:$16 sps:$4 sm:$0xff]   ;;  %v100_v38 = vld [vmem:[#allocation2 + $0x8] sm:$0xff] }
  0x5c   :  { %369 = vmatprep.mubr.bf16.mxu0 %v7052_v0  ;;  %482 = vmatprep.mubr.bf16.mxu1 %v7052_v0  ;;  %v6212_v2 = vld [vmem:[#allocation5 + $0xc] ss:$16 sps:$4 sm:$0xff]   ;;  %v6214_v3 = vld [vmem:[#allocation5] ss:$16 sps:$4 sm:$0xff]   ;;  %v6215_v4 = vld [vmem:[#allocation5 + $0x8] ss:$16 sps:$4 sm:$0xff]  }
  0x5d   :  { %337 = vmatprep.subr.bf16.mxu0 %v6210_v1  ;;  %450 = vmatprep.subr.bf16.mxu1 %v6212_v2  ;;  %v6216_v5 = vld [vmem:[#allocation5 + $0x24] ss:$16 sps:$4 sm:$0xff]   ;;  %v6218_v6 = vld [vmem:[#allocation5 + $0x2c] ss:$16 sps:$4 sm:$0xff]   ;;  %v6220_v7 = vld [vmem:[#allocation5 + $0x20] ss:$16 sps:$4 sm:$0xff]  }
  0x5e   :  { %338 = vmatpush1.bf16.msra.mxu0 %v6214_v3  ;;  %451 = vmatpush1.bf16.msra.mxu1 %v6215_v4  ;;  %v6221_v8 = vld [vmem:[#allocation5 + $0x28] ss:$16 sps:$4 sm:$0xff]   ;;  %v6222_v9 = vld [vmem:[#allocation5 + $0x44] ss:$16 sps:$4 sm:$0xff]   ;;  %v6224_v10 = vld [vmem:[#allocation5 + $0x4c] ss:$16 sps:$4 sm:$0xff]  }
  0x5f   :  { %339 = vmatprep.subr.bf16.mxu0 %v6216_v5  ;;  %452 = vmatprep.subr.bf16.mxu1 %v6218_v6  ;;  %v6226_v11 = vld [vmem:[#allocation5 + $0x40] ss:$16 sps:$4 sm:$0xff]   ;;  %v6227_v12 = vld [vmem:[#allocation5 + $0x48] ss:$16 sps:$4 sm:$0xff]   ;;  %v6228_v13 = vld [vmem:[#allocation5 + $0x64] ss:$16 sps:$4 sm:$0xff]  }
  0x60   :  { %v6230_v14 = vld [vmem:[#allocation5 + $0x6c] ss:$16 sps:$4 sm:$0xff]   ;;  %v6232_v15 = vld [vmem:[#allocation5 + $0x60] ss:$16 sps:$4 sm:$0xff]   ;;  %v6233_v16 = vld [vmem:[#allocation5 + $0x68] ss:$16 sps:$4 sm:$0xff]  }
  0x61   :  { %v6234_v17 = vld [vmem:[#allocation5 + $0x84] ss:$16 sps:$4 sm:$0xff]   ;;  %v6236_v18 = vld [vmem:[#allocation5 + $0x8c] ss:$16 sps:$4 sm:$0xff]   ;;  %v6238_v19 = vld [vmem:[#allocation5 + $0x80] ss:$16 sps:$4 sm:$0xff]  }
  0x62   :  { %340 = vmatpush1.bf16.msra.mxu0 %v6220_v7  ;;  %453 = vmatpush1.bf16.msra.mxu1 %v6221_v8  ;;  %v6239_v20 = vld [vmem:[#allocation5 + $0x88] ss:$16 sps:$4 sm:$0xff]   ;;  %v6240_v21 = vld [vmem:[#allocation5 + $0xa4] ss:$16 sps:$4 sm:$0xff]   ;;  %v6242_v22 = vld [vmem:[#allocation5 + $0xac] ss:$16 sps:$4 sm:$0xff]  }
  0x63   :  { %341 = vmatprep.subr.bf16.mxu0 %v6222_v9  ;;  %454 = vmatprep.subr.bf16.mxu1 %v6224_v10  ;;  %v6244_v23 = vld [vmem:[#allocation5 + $0xa0] ss:$16 sps:$4 sm:$0xff]   ;;  %v6245_v24 = vld [vmem:[#allocation5 + $0xa8] ss:$16 sps:$4 sm:$0xff]   ;;  %v6246_v25 = vld [vmem:[#allocation5 + $0xc4] ss:$16 sps:$4 sm:$0xff]  }
  0x64   :  { %v6248_v26 = vld [vmem:[#allocation5 + $0xcc] ss:$16 sps:$4 sm:$0xff]   ;;  %v6250_v27 = vld [vmem:[#allocation5 + $0xc0] ss:$16 sps:$4 sm:$0xff]   ;;  %v6251_v28 = vld [vmem:[#allocation5 + $0xc8] ss:$16 sps:$4 sm:$0xff]  }
  0x65   :  { %v6252_v29 = vld [vmem:[#allocation5 + $0xe4] ss:$16 sps:$4 sm:$0xff]   ;;  %v6254_v30 = vld [vmem:[#allocation5 + $0xec] ss:$16 sps:$4 sm:$0xff]   ;;  %v6256_v31 = vld [vmem:[#allocation5 + $0xe0] ss:$16 sps:$4 sm:$0xff]  }
  0x66   :  { %342 = vmatpush1.bf16.msra.mxu0 %v6226_v11  ;;  %455 = vmatpush1.bf16.msra.mxu1 %v6227_v12  ;;  %v659_v32 = vld [vmem:[#allocation7] sm:$0xff]  ;;  %v6257_v36 = vld [vmem:[#allocation5 + $0xe8] ss:$16 sps:$4 sm:$0xff]   ;;  %v101_v54 = vld [vmem:[#allocation2 + $0x10] sm:$0xff]  ;;  %s7053_s11 = smov [#allocation11]  }
  0x67   :  { %343 = vmatprep.subr.bf16.mxu0 %v6228_v13  ;;  %456 = vmatprep.subr.bf16.mxu1 %v6230_v14  ;;  %v663_v33 = vld [vmem:[#allocation7 + $0x20] sm:$0xff]  ;;  %v102_v55 = vld [vmem:[#allocation2 + $0x18] sm:$0xff]  ;;  %v104_v8 = vld [vmem:[#allocation2 + $0x28] sm:$0xff]  ;;  %s5107_s12 = sshll.u32 %s7053_s11, 4  ;;  %s5108_s12 = int_to_ptr.vmem [resolvable:$true] %s5107_s12 }
  0x68   :  { %v787_v34 = vld [vmem:[#allocation7 + $0x400] sm:$0xff]  ;;  %v5154_v39 = vcombine.high %v659_v32, %v663_v33  ;;  %v5153_v46 = vcombine.low %v659_v32, %v663_v33  ;;  %v116_v61 = vpack.c.bf16 %v102_v55, %v101_v54  ;;  %s7011_s0 = scalar_lea.vmem %s5108_s12, 4096  ;;  %p7016_p13 = scmp.lt.s32.totalorder %s5108_s12, %s5108_s12 }
  0x69   :  { %v791_v35 = vld [vmem:[#allocation7 + $0x420] sm:$0xff]  ;;  %p7012_p12 = scmp.ne.s32.totalorder %s5108_s12, %s7011_s0  ;;  %p7017_p0 = scmp.lt.s32.totalorder %s7011_s0, %s7011_s0 }
  0x6a   :  { %344 = vmatpush1.bf16.msra.mxu0 %v6232_v15  ;;  %457 = vmatpush1.bf16.msra.mxu1 %v6233_v16  ;;  %v99_v37 = vld [vmem:[#allocation2] sm:$0xff]  ;;  %v5282_v40 = vcombine.high %v787_v34, %v791_v35  ;;  %v5281_v47 = vcombine.low %v787_v34, %v791_v35 }
  0x6b   :  { %345 = vmatprep.subr.bf16.mxu0 %v6234_v17  ;;  %458 = vmatprep.subr.bf16.mxu1 %v6236_v18  ;;  %v667_v41 = vld [vmem:[#allocation7 + $0x40] sm:$0xff]  ;;  %v115_v42 = vpack.c.bf16 %v100_v38, %v99_v37  ;;  %p7018_p1 = por %p7017_p0, %p7016_p13 }
  0x6c   :  { %v671_v43 = vld [vmem:[#allocation7 + $0x60] sm:$0xff] }
  0x6d   :  { %v795_v44 = vld [vmem:[#allocation7 + $0x440] sm:$0xff]  ;;  %v5162_v48 = vcombine.high %v667_v41, %v671_v43  ;;  %v5161_v56 = vcombine.low %v667_v41, %v671_v43  ;;  %p7019_p2 = pnand %p7018_p1, %p7012_p12 }
  0x6e   :  { %346 = vmatpush1.bf16.msra.mxu0 %v6238_v19  ;;  %459 = vmatpush1.bf16.msra.mxu1 %v6239_v20  ;;  %v799_v45 = vld [vmem:[#allocation7 + $0x460] sm:$0xff] }
  0x6f   :  { %347 = vmatprep.subr.bf16.mxu0 %v6240_v21  ;;  %460 = vmatprep.subr.bf16.mxu1 %v6242_v22  ;;  %v5290_v49 = vcombine.high %v795_v44, %v799_v45  ;;  %v675_v50 = vld [vmem:[#allocation7 + $0x80] sm:$0xff]  ;;  %v5289_v57 = vcombine.low %v795_v44, %v799_v45 }
  0x70   :  { %v679_v51 = vld [vmem:[#allocation7 + $0xa0] sm:$0xff] }
  0x71   :  { %v803_v52 = vld [vmem:[#allocation7 + $0x480] sm:$0xff]  ;;  %v5170_v58 = vcombine.high %v675_v50, %v679_v51  ;;  %v5169_v2 = vcombine.low %v675_v50, %v679_v51 }
  0x72   :  { %348 = vmatpush1.bf16.msra.mxu0 %v6244_v23  ;;  %461 = vmatpush1.bf16.msra.mxu1 %v6245_v24  ;;  %v807_v53 = vld [vmem:[#allocation7 + $0x4a0] sm:$0xff] }
  0x73   :  { %349 = vmatprep.subr.bf16.mxu0 %v6246_v25  ;;  %462 = vmatprep.subr.bf16.mxu1 %v6248_v26  ;;  %v5298_v59 = vcombine.high %v803_v52, %v807_v53  ;;  %v683_v60 = vld [vmem:[#allocation7 + $0xc0] sm:$0xff]  ;;  %v5297_v3 = vcombine.low %v803_v52, %v807_v53 }
  0x74   :  { %v687_v62 = vld [vmem:[#allocation7 + $0xe0] sm:$0xff] }
  0x75   :  { %v811_v63 = vld [vmem:[#allocation7 + $0x4c0] sm:$0xff]  ;;  %v5178_v9 = vcombine.high %v683_v60, %v687_v62  ;;  %v5177_v12 = vcombine.low %v683_v60, %v687_v62 }
  0x76   :  { %350 = vmatpush1.bf16.msra.mxu0 %v6250_v27  ;;  %463 = vmatpush1.bf16.msra.mxu1 %v6251_v28  ;;  %v815_v1 = vld [vmem:[#allocation7 + $0x4e0] sm:$0xff]  ;;  %v105_v27 = vld [vmem:[#allocation2 + $0x30] sm:$0xff]  ;;  %v106_v28 = vld [vmem:[#allocation2 + $0x38] sm:$0xff] }
  0x77   :  { %351 = vmatprep.subr.bf16.mxu0 %v6252_v29  ;;  %464 = vmatprep.subr.bf16.mxu1 %v6254_v30  ;;  %v691_v4 = vld [vmem:[#allocation7 + $0x100] sm:$0xff]  ;;  %v5306_v10 = vcombine.high %v811_v63, %v815_v1  ;;  %v5305_v13 = vcombine.low %v811_v63, %v815_v1 }
  0x78   :  { %v695_v5 = vld [vmem:[#allocation7 + $0x120] sm:$0xff] }
  0x79   :  { %v819_v6 = vld [vmem:[#allocation7 + $0x500] sm:$0xff]  ;;  %v5186_v18 = vcombine.high %v691_v4, %v695_v5  ;;  %v5185_v21 = vcombine.low %v691_v4, %v695_v5 }
  0x7a   :  { %352 = vmatpush1.bf16.msra.mxu0 %v6256_v31  ;;  %465 = vmatpush1.bf16.msra.mxu1 %v6257_v36  ;;  %v103_v7 = vld [vmem:[#allocation2 + $0x20] sm:$0xff] }
  0x7b   :  { %2237 = vmatprep.subr.bf16.mxu1 %v5154_v39  ;;  %2350 = vmatprep.subr.bf16.mxu0 %v5282_v40  ;;  %v823_v11 = vld [vmem:[#allocation7 + $0x520] sm:$0xff]  ;;  %v117_v20 = vpack.c.bf16 %v104_v8, %v103_v7  ;;  %v118_v39 = vpack.c.bf16 %v106_v28, %v105_v27 }
  0x7c   :  { %v699_v14 = vld [vmem:[#allocation7 + $0x140] sm:$0xff]  ;;  %v5314_v19 = vcombine.high %v819_v6, %v823_v11  ;;  %v5313_v22 = vcombine.low %v819_v6, %v823_v11 }
  0x7d   :  { %370 = vmatmul.mubr.bf16.vlgmr.msra.gmra.mrb[0].mxu0 %v115_v42  ;;  %483 = vmatmul.mubr.bf16.vlgmr.msra.gmra.mrb[0].mxu1 %v115_v42  ;;  %v703_v15 = vld [vmem:[#allocation7 + $0x160] sm:$0xff] }
  0x7e   :  { %379 = vmatprep.mubr.bf16.mxu0 %v7052_v0  ;;  %492 = vmatprep.mubr.bf16.mxu1 %v7052_v0  ;;  %v827_v16 = vld [vmem:[#allocation7 + $0x540] sm:$0xff]  ;;  %v5194_v29 = vcombine.high %v699_v14, %v703_v15  ;;  %v5193_v31 = vcombine.low %v699_v14, %v703_v15 }
  0x7f   :  { %2238 = vmatpush1.bf16.msra.mxu1 %v5153_v46  ;;  %2351 = vmatpush1.bf16.msra.mxu0 %v5281_v47  ;;  %v831_v17 = vld [vmem:[#allocation7 + $0x560] sm:$0xff]  ;;  %v108_v47 = vld [vmem:[#allocation2 + $0x48] sm:$0xff] }
  0x80   :  { %2239 = vmatprep.subr.bf16.mxu1 %v5162_v48  ;;  %2352 = vmatprep.subr.bf16.mxu0 %v5290_v49  ;;  %v707_v23 = vld [vmem:[#allocation7 + $0x180] sm:$0xff]  ;;  %v5322_v30 = vcombine.high %v827_v16, %v831_v17  ;;  %v5321_v32 = vcombine.low %v827_v16, %v831_v17  ;;  %v112_v16 = vld [vmem:[#allocation2 + $0x68] sm:$0xff] }
  0x81   :  { %v711_v24 = vld [vmem:[#allocation7 + $0x1a0] sm:$0xff] }
  0x82   :  { %v835_v25 = vld [vmem:[#allocation7 + $0x580] sm:$0xff]  ;;  %v5202_v37 = vcombine.high %v707_v23, %v711_v24  ;;  %v5201_v40 = vcombine.low %v707_v23, %v711_v24 }
  0x83   :  { %2240 = vmatpush1.bf16.msra.mxu1 %v5161_v56  ;;  %2353 = vmatpush1.bf16.msra.mxu0 %v5289_v57  ;;  %v839_v26 = vld [vmem:[#allocation7 + $0x5a0] sm:$0xff] }
  0x84   :  { %2241 = vmatprep.subr.bf16.mxu1 %v5170_v58  ;;  %2354 = vmatprep.subr.bf16.mxu0 %v5298_v59  ;;  %v715_v33 = vld [vmem:[#allocation7 + $0x1c0] sm:$0xff]  ;;  %v5330_v38 = vcombine.high %v835_v25, %v839_v26  ;;  %v5329_v41 = vcombine.low %v835_v25, %v839_v26 }
  0x85   :  { %380 = vmatmul.mubr.bf16.gmra.mrb[4].mxu0 %v116_v61  ;;  %493 = vmatmul.mubr.bf16.gmra.mrb[4].mxu1 %v116_v61  ;;  %v719_v34 = vld [vmem:[#allocation7 + $0x1e0] sm:$0xff] }
  0x86   :  { %389 = vmatprep.mubr.bf16.mxu0 %v7052_v0  ;;  %502 = vmatprep.mubr.bf16.mxu1 %v7052_v0  ;;  %v843_v35 = vld [vmem:[#allocation7 + $0x5c0] sm:$0xff]  ;;  %v5210_v48 = vcombine.high %v715_v33, %v719_v34  ;;  %v5209_v50 = vcombine.low %v715_v33, %v719_v34 }
  0x87   :  { %2242 = vmatpush1.bf16.msra.mxu1 %v5169_v2  ;;  %2355 = vmatpush1.bf16.msra.mxu0 %v5297_v3  ;;  %v847_v36 = vld [vmem:[#allocation7 + $0x5e0] sm:$0xff]  ;;  %v109_v2 = vld [vmem:[#allocation2 + $0x50] sm:$0xff]  ;;  %v110_v3 = vld [vmem:[#allocation2 + $0x58] sm:$0xff] }
  0x88   :  { %2243 = vmatprep.subr.bf16.mxu1 %v5178_v9  ;;  %2356 = vmatprep.subr.bf16.mxu0 %v5306_v10  ;;  %v723_v42 = vld [vmem:[#allocation7 + $0x200] sm:$0xff]  ;;  %v5338_v49 = vcombine.high %v843_v35, %v847_v36  ;;  %v5337_v51 = vcombine.low %v843_v35, %v847_v36 }
  0x89   :  { %v727_v43 = vld [vmem:[#allocation7 + $0x220] sm:$0xff] }
  0x8a   :  { %v851_v44 = vld [vmem:[#allocation7 + $0x600] sm:$0xff]  ;;  %v5218_v56 = vcombine.high %v723_v42, %v727_v43  ;;  %v5217_v59 = vcombine.low %v723_v42, %v727_v43 }
  0x8b   :  { %2244 = vmatpush1.bf16.msra.mxu1 %v5177_v12  ;;  %2357 = vmatpush1.bf16.msra.mxu0 %v5305_v13  ;;  %v855_v45 = vld [vmem:[#allocation7 + $0x620] sm:$0xff]  ;;  %v120_v12 = vpack.c.bf16 %v110_v3, %v109_v2  ;;  %v157_v3 = vlaneseq }
  0x8c   :  { %2245 = vmatprep.subr.bf16.mxu1 %v5186_v18  ;;  %2358 = vmatprep.subr.bf16.mxu0 %v5314_v19  ;;  %v107_v46 = vld [vmem:[#allocation2 + $0x40] sm:$0xff]  ;;  %v5346_v57 = vcombine.high %v851_v44, %v855_v45  ;;  %v5345_v60 = vcombine.low %v851_v44, %v855_v45 }
  0x8d   :  { %390 = vmatmul.mubr.bf16.gmra.mrb[8].mxu0 %v117_v20  ;;  %503 = vmatmul.mubr.bf16.gmra.mrb[8].mxu1 %v117_v20  ;;  %v731_v52 = vld [vmem:[#allocation7 + $0x240] sm:$0xff]  ;;  %v119_v58 = vpack.c.bf16 %v108_v47, %v107_v46  ;;  %v113_v20 = vld [vmem:[#allocation2 + $0x70] sm:$0xff] }
  0x8e   :  { %399 = vmatprep.mubr.bf16.mxu0 %v7052_v0  ;;  %512 = vmatprep.mubr.bf16.mxu1 %v7052_v0  ;;  %v735_v53 = vld [vmem:[#allocation7 + $0x260] sm:$0xff] }
  0x8f   :  { %2246 = vmatpush1.bf16.msra.mxu1 %v5185_v21  ;;  %2359 = vmatpush1.bf16.msra.mxu0 %v5313_v22  ;;  %v859_v54 = vld [vmem:[#allocation7 + $0x640] sm:$0xff]  ;;  %v5226_v4 = vcombine.high %v731_v52, %v735_v53  ;;  %v5225_v6 = vcombine.low %v731_v52, %v735_v53  ;;  %v114_v21 = vld [vmem:[#allocation2 + $0x78] sm:$0xff] }
  0x90   :  { %2247 = vmatprep.subr.bf16.mxu1 %v5194_v29  ;;  %2360 = vmatprep.subr.bf16.mxu0 %v5322_v30  ;;  %v863_v55 = vld [vmem:[#allocation7 + $0x660] sm:$0xff]  ;;  %v122_v22 = vpack.c.bf16 %v114_v21, %v113_v20 }
  0x91   :  { %v739_v61 = vld [vmem:[#allocation7 + $0x280] sm:$0xff]  ;;  %v5354_v5 = vcombine.high %v859_v54, %v863_v55  ;;  %v5353_v7 = vcombine.low %v859_v54, %v863_v55 }
  0x92   :  { %v743_v62 = vld [vmem:[#allocation7 + $0x2a0] sm:$0xff] }
  0x93   :  { %2248 = vmatpush1.bf16.msra.mxu1 %v5193_v31  ;;  %2361 = vmatpush1.bf16.msra.mxu0 %v5321_v32  ;;  %v867_v63 = vld [vmem:[#allocation7 + $0x680] sm:$0xff]  ;;  %v5234_v10 = vcombine.high %v739_v61, %v743_v62  ;;  %v5233_v13 = vcombine.low %v739_v61, %v743_v62  ;;  %v7195_v62 = vld [vmem:[#allocation7 + $0x30] sm:$0xff] }
  0x94   :  { %2249 = vmatprep.subr.bf16.mxu1 %v5202_v37  ;;  %2362 = vmatprep.subr.bf16.mxu0 %v5330_v38  ;;  %v871_v1 = vld [vmem:[#allocation7 + $0x6a0] sm:$0xff] }
  0x95   :  { %400 = vmatmul.mubr.bf16.gmra.mrb[12].mxu0 %v118_v39  ;;  %513 = vmatmul.mubr.bf16.gmra.mrb[12].mxu1 %v118_v39  ;;  %v747_v8 = vld [vmem:[#allocation7 + $0x2c0] sm:$0xff]  ;;  %v5362_v11 = vcombine.high %v867_v63, %v871_v1  ;;  %v5361_v14 = vcombine.low %v867_v63, %v871_v1 }
  0x96   :  { %409 = vmatprep.mubr.bf16.mxu0 %v7052_v0  ;;  %522 = vmatprep.mubr.bf16.mxu1 %v7052_v0  ;;  %v751_v9 = vld [vmem:[#allocation7 + $0x2e0] sm:$0xff] }
  0x97   :  { %2250 = vmatpush1.bf16.msra.mxu1 %v5201_v40  ;;  %2363 = vmatpush1.bf16.msra.mxu0 %v5329_v41  ;;  %v111_v15 = vld [vmem:[#allocation2 + $0x60] sm:$0xff]  ;;  %v5242_v17 = vcombine.high %v747_v8, %v751_v9  ;;  %v5241_v18 = vcombine.low %v747_v8, %v751_v9 }
  0x98   :  { %2251 = vmatprep.subr.bf16.mxu1 %v5210_v48  ;;  %2364 = vmatprep.subr.bf16.mxu0 %v5338_v49  ;;  %v121_v19 = vpack.c.bf16 %v112_v16, %v111_v15  ;;  %v875_v23 = vld [vmem:[#allocation7 + $0x6c0] sm:$0xff] }
  0x99   :  { %v879_v24 = vld [vmem:[#allocation7 + $0x6e0] sm:$0xff] }
  0x9a   :  { %v5370_v25 = vcombine.high %v875_v23, %v879_v24  ;;  %v5369_v26 = vcombine.low %v875_v23, %v879_v24  ;;  %v755_v27 = vld [vmem:[#allocation7 + $0x300] sm:$0xff] }
  0x9b   :  { %2252 = vmatpush1.bf16.msra.mxu1 %v5209_v50  ;;  %2365 = vmatpush1.bf16.msra.mxu0 %v5337_v51  ;;  %v759_v28 = vld [vmem:[#allocation7 + $0x320] sm:$0xff] }
  0x9c   :  { %2253 = vmatprep.subr.bf16.mxu1 %v5218_v56  ;;  %2366 = vmatprep.subr.bf16.mxu0 %v5346_v57  ;;  %v883_v29 = vld [vmem:[#allocation7 + $0x700] sm:$0xff]  ;;  %v5250_v30 = vcombine.high %v755_v27, %v759_v28  ;;  %v5249_v32 = vcombine.low %v755_v27, %v759_v28 }
  0x9d   :  { %410 = vmatmul.mubr.bf16.gmra.mrb[16].mxu0 %v119_v58  ;;  %523 = vmatmul.mubr.bf16.gmra.mrb[16].mxu1 %v119_v58  ;;  %v887_v31 = vld [vmem:[#allocation7 + $0x720] sm:$0xff]  ;;  %v7187_v58 = vld [vmem:[#allocation7 + $0x8] sm:$0xff] }
  0x9e   :  { %419 = vmatprep.mubr.bf16.mxu0 %v7052_v0  ;;  %532 = vmatprep.mubr.bf16.mxu1 %v7052_v0  ;;  %v5377_v33 = vcombine.low %v883_v29, %v887_v31  ;;  %v5378_v34 = vcombine.high %v883_v29, %v887_v31  ;;  %v767_v35 = vld [vmem:[#allocation7 + $0x360] sm:$0xff] }
  0x9f   :  { %2254 = vmatpush1.bf16.msra.mxu1 %v5217_v59  ;;  %2367 = vmatpush1.bf16.msra.mxu0 %v5345_v60  ;;  %v891_v36 = vld [vmem:[#allocation7 + $0x740] sm:$0xff]  ;;  %v7189_v59 = vld [vmem:[#allocation7 + $0x28] sm:$0xff]  ;;  %v7191_v60 = vld [vmem:[#allocation7 + $0x10] sm:$0xff] }
  0xa0   :  { %2255 = vmatprep.subr.bf16.mxu1 %v5226_v4  ;;  %2368 = vmatprep.subr.bf16.mxu0 %v5354_v5  ;;  %v895_v39 = vld [vmem:[#allocation7 + $0x760] sm:$0xff]  ;;  %v5156_v61 = vcombine.high %v7187_v58, %v7189_v59  ;;  %v5155_v63 = vcombine.low %v7187_v58, %v7189_v59  ;;  %v5157_v1 = vcombine.low %v7191_v60, %v7195_v62  ;;  %v7203_v4 = vshrl.u32 %v157_v3, 7 }
  0xa1   :  { %v5385_v40 = vcombine.low %v891_v36, %v895_v39  ;;  %v5386_v41 = vcombine.high %v891_v36, %v895_v39  ;;  %v771_v42 = vld [vmem:[#allocation7 + $0x380] sm:$0xff]  ;;  %v5158_v2 = vcombine.high %v7191_v60, %v7195_v62 }
  0xa2   :  { %v775_v43 = vld [vmem:[#allocation7 + $0x3a0] sm:$0xff]  ;;  %8499 = vst [vmem:[#allocation16_spill] sm:$0xff] %v7203_v4  ;;  %v7206_v5 = vsub.s32 0, %v7203_v4  ;;  %v7213_v8 = vsub.s32 1, %v7203_v4  ;;  %v171_v9 = vsub.s32 3, %v7203_v4 }
  0xa3   :  { %2256 = vmatpush1.bf16.msra.mxu1 %v5225_v6  ;;  %2369 = vmatpush1.bf16.msra.mxu0 %v5353_v7  ;;  %v899_v44 = vld [vmem:[#allocation7 + $0x780] sm:$0xff]  ;;  %v5266_v45 = vcombine.high %v771_v42, %v775_v43  ;;  %v5265_v47 = vcombine.low %v771_v42, %v775_v43  ;;  %v167_v6 = vsub.s32 2, %v7203_v4 }
  0xa4   :  { %2257 = vmatprep.subr.bf16.mxu1 %v5234_v10  ;;  %2370 = vmatprep.subr.bf16.mxu0 %v5362_v11  ;;  %v903_v46 = vld [vmem:[#allocation7 + $0x7a0] sm:$0xff]  ;;  %8500 = vst [vmem:[#allocation17_spill] sm:$0xff] %v7206_v5  ;;  %8501 = vst [vmem:[#allocation18_spill] sm:$0xff] %v7213_v8 }
  0xa5   :  { %420 = vmatmul.mubr.bf16.gmra.mrb[20].mxu0 %v120_v12  ;;  %533 = vmatmul.mubr.bf16.gmra.mrb[20].mxu1 %v120_v12  ;;  %v5393_v48 = vcombine.low %v899_v44, %v903_v46  ;;  %v5394_v49 = vcombine.high %v899_v44, %v903_v46  ;;  %v779_v50 = vld [vmem:[#allocation7 + $0x3c0] sm:$0xff] }
  0xa6   :  { %429 = vmatprep.mubr.bf16.mxu0 %v7052_v0  ;;  %542 = vmatprep.mubr.bf16.mxu1 %v7052_v0  ;;  %v783_v51 = vld [vmem:[#allocation7 + $0x3e0] sm:$0xff] }
  0xa7   :  { %2258 = vmatpush1.bf16.msra.mxu1 %v5233_v13  ;;  %2371 = vmatpush1.bf16.msra.mxu0 %v5361_v14  ;;  %v907_v52 = vld [vmem:[#allocation7 + $0x7c0] sm:$0xff]  ;;  %v5273_v53 = vcombine.low %v779_v50, %v783_v51  ;;  %v5274_v54 = vcombine.high %v779_v50, %v783_v51 }
  0xa8   :  { %2259 = vmatprep.subr.bf16.mxu1 %v5242_v17  ;;  %2372 = vmatprep.subr.bf16.mxu0 %v5370_v25  ;;  %v911_v55 = vld [vmem:[#allocation7 + $0x7e0] sm:$0xff] }
  0xa9   :  { %v5401_v56 = vcombine.low %v907_v52, %v911_v55  ;;  %v5402_v57 = vcombine.high %v907_v52, %v911_v55  ;;  %v155_v7 = vld [vmem:[%s8472_s2] sm:$0xf] }
  0xaa   :  { %v7217_v10 = vrot.slane %v155_v7, %v7206_v5  ;;  %v7221_v11 = vrot.slane %v155_v7, %v167_v6  ;;  %v7224_v12 = vrot.slane %v155_v7, %v7213_v8  ;;  %v7228_v13 = vrot.slane %v155_v7, %v171_v9 }
  0xab   :  { %2260 = vmatpush1.bf16.msra.mxu1 %v5241_v18  ;;  %2373 = vmatpush1.bf16.msra.mxu0 %v5369_v26 }
  0xac   :  { %2261 = vmatprep.subr.bf16.mxu1 %v5250_v30  ;;  %2374 = vmatprep.subr.bf16.mxu0 %v5378_v34 }
  0xad   :  { %430 = vmatmul.mubr.bf16.gmra.mrb[24].mxu0 %v121_v19  ;;  %543 = vmatmul.mubr.bf16.gmra.mrb[24].mxu1 %v121_v19 }
  0xae   :  { %439 = vmatprep.mubr.bf16.mxu0 %v7052_v0  ;;  %552 = vmatprep.mubr.bf16.mxu1 %v7052_v0  ;;  %v763_v0 = vld [vmem:[#allocation7 + $0x340] sm:$0xff] }
  0xaf   :  { %2262 = vmatpush1.bf16.msra.mxu1 %v5249_v32  ;;  %2375 = vmatpush1.bf16.msra.mxu0 %v5377_v33  ;;  %v5257_v37 = vcombine.low %v763_v0, %v767_v35  ;;  %v5258_v38 = vcombine.high %v763_v0, %v767_v35 }
  0xb0   :  { %2376 = vmatprep.subr.bf16.mxu0 %v5386_v41 }
  0xb1   :  { %2263 = vmatprep.subr.bf16.mxu1 %v5258_v38 }
  0xb3   :  { %2264 = vmatpush1.bf16.msra.mxu1 %v5257_v37  ;;  %2377 = vmatpush1.bf16.msra.mxu0 %v5385_v40 }
  0xb4   :  { %2265 = vmatprep.subr.bf16.mxu1 %v5266_v45  ;;  %2378 = vmatprep.subr.bf16.mxu0 %v5394_v49 }
  0xb5   :  { %440 = vmatmul.mubr.bf16.gmra.mrb[28].mxu0 %v122_v22  ;;  %553 = vmatmul.mubr.bf16.gmra.mrb[28].mxu1 %v122_v22 }
  0xb7   :  { %2266 = vmatpush1.bf16.msra.mxu1 %v5265_v47  ;;  %2379 = vmatpush1.bf16.msra.mxu0 %v5393_v48 }
  0xb8   :  { %2267 = vmatprep.subr.bf16.mxu1 %v5274_v54  ;;  %2380 = vmatprep.subr.bf16.mxu0 %v5402_v57 }
  0xbb   :  { %2268 = vmatpush1.bf16.msra.mxu1 %v5273_v53  ;;  %2381 = vmatpush1.bf16.msra.mxu0 %v5401_v56 }
  0xbc   :  { %2463 = vmatprep.subr.bf16.mxu1 %v5156_v61  ;;  %2689 = vmatprep.subr.bf16.mxu0 %v5158_v2 }
 0x150   :  { %v371_v14 = vpop.f32.mrb[0].mxu0  ;;  %v484_v15 = vpop.f32.mrb[0].mxu1 }
 0x151   :  { %v372_v16 = vadd.f32 %v371_v14, %v7217_v10  ;;  %v485_v17 = vadd.f32 %v484_v15, %v7221_v11  ;;  %v373_v18 = vpop.f32.mrb[1].mxu0  ;;  %v486_v19 = vpop.f32.mrb[1].mxu1  ;;  %v7252_v14 = vld [vmem:[#allocation7 + $0x48] sm:$0xff] }
 0x152   :  { %v374_v20 = vadd.f32 %v373_v18, %v7224_v12  ;;  %v487_v21 = vadd.f32 %v486_v19, %v7228_v13  ;;  %v375_v22 = vpop.f32.mrb[2].mxu0  ;;  %v488_v23 = vpop.f32.mrb[2].mxu1  ;;  %v7254_v15 = vld [vmem:[#allocation7 + $0x68] sm:$0xff] }
 0x153   :  { %6450 = vtanh.f32 %v372_v16  ;;  %v376_v24 = vadd.f32 %v375_v22, %v7217_v10  ;;  %v377_v25 = vpop.f32.mrb[3].mxu0  ;;  %v490_v26 = vpop.f32.mrb[3].mxu1  ;;  %v489_v27 = vadd.f32 %v488_v23, %v7221_v11  ;;  %v7261_v22 = vld [vmem:[#allocation7 + $0x70] sm:$0xff] }
 0x154   :  { %6452 = vtanh.f32 %v485_v17  ;;  %v378_v28 = vadd.f32 %v377_v25, %v7224_v12  ;;  %v491_v29 = vadd.f32 %v490_v26, %v7228_v13 }
 0x155   :  { %6454 = vtanh.f32 %v374_v20 }
 0x156   :  { %6456 = vtanh.f32 %v487_v21  ;;  %v7259_v21 = vld [vmem:[#allocation7 + $0x50] sm:$0xff] }
 0x157   :  { %6458 = vtanh.f32 %v376_v24 }
 0x158   :  { %6460 = vtanh.f32 %v489_v27  ;;  %v381_v30 = vpop.f32.mrb[4].mxu0  ;;  %v494_v31 = vpop.f32.mrb[4].mxu1 }
 0x159   :  { %6462 = vtanh.f32 %v378_v28  ;;  %v382_v32 = vadd.f32 %v381_v30, %v7217_v10  ;;  %v495_v33 = vadd.f32 %v494_v31, %v7221_v11  ;;  %v383_v34 = vpop.f32.mrb[5].mxu0  ;;  %v496_v0 = vpop.f32.mrb[5].mxu1  ;;  %v7271_v30 = vld [vmem:[#allocation7 + $0x88] sm:$0xff] }
 0x15a   :  { %6464 = vtanh.f32 %v491_v29  ;;  %v384_v35 = vadd.f32 %v383_v34, %v7224_v12  ;;  %v497_v36 = vadd.f32 %v496_v0, %v7228_v13  ;;  %v385_v37 = vpop.f32.mrb[6].mxu0  ;;  %v498_v38 = vpop.f32.mrb[6].mxu1  ;;  %v5164_v29 = vcombine.high %v7252_v14, %v7254_v15  ;;  %v7273_v31 = vld [vmem:[#allocation7 + $0xa8] sm:$0xff]  ;;  %v7279_v0 = vld [vmem:[#allocation7 + $0x90] sm:$0xff] }
 0x15b   :  { %6466 = vtanh.f32 %v382_v32  ;;  %v386_v39 = vadd.f32 %v385_v37, %v7217_v10  ;;  %v387_v40 = vpop.f32.mrb[7].mxu0  ;;  %v500_v41 = vpop.f32.mrb[7].mxu1  ;;  %v499_v42 = vadd.f32 %v498_v38, %v7221_v11  ;;  %v5166_v34 = vcombine.high %v7259_v21, %v7261_v22 }
 0x15c   :  { %6468 = vtanh.f32 %v495_v33  ;;  %v388_v44 = vadd.f32 %v387_v40, %v7224_v12  ;;  %v501_v46 = vadd.f32 %v500_v41, %v7228_v13  ;;  %v5163_v38 = vcombine.low %v7252_v14, %v7254_v15 }
 0x15d   :  { %v6451_v43 = vpop.eup %6450  ;;  %6470 = vtanh.f32 %v384_v35  ;;  %v7281_v35 = vld [vmem:[#allocation7 + $0xb0] sm:$0xff]  ;;  %v5165_v41 = vcombine.low %v7259_v21, %v7261_v22  ;;  %v7329_v21 = vld [vmem:[#allocation7 + $0x108] sm:$0xff] }
 0x15e   :  { %v6453_v45 = vpop.eup %6452  ;;  %6472 = vtanh.f32 %v497_v36  ;;  %v5173_v15 = vcombine.low %v7279_v0, %v7281_v35  ;;  %v7331_v22 = vld [vmem:[#allocation7 + $0x128] sm:$0xff] }
 0x15f   :  { %v6455_v47 = vpop.eup %6454  ;;  %6474 = vtanh.f32 %v386_v39 }
 0x160   :  { %v6457_v48 = vpop.eup %6456  ;;  %6476 = vtanh.f32 %v499_v42  ;;  %v391_v49 = vpop.f32.mrb[8].mxu0  ;;  %v5172_v42 = vcombine.high %v7271_v30, %v7273_v31 }
 0x161   :  { %v504_v50 = vpop.f32.mrb[8].mxu1  ;;  %v6459_v51 = vpop.eup %6458  ;;  %6478 = vtanh.f32 %v388_v44  ;;  %v392_v52 = vadd.f32 %v391_v49, %v7217_v10 }
 0x162   :  { %v505_v53 = vadd.f32 %v504_v50, %v7221_v11  ;;  %v393_v54 = vpop.f32.mrb[9].mxu0  ;;  %v506_v55 = vpop.f32.mrb[9].mxu1  ;;  %6480 = vtanh.f32 %v501_v46  ;;  %v7250_v7 = vpack.c.bf16 %v6459_v51, %v6451_v43  ;;  %v7308_v50 = vld [vmem:[#allocation7 + $0xe8] sm:$0xff] }
 0x163   :  { %v6461_v56 = vpop.eup %6460  ;;  %v394_v57 = vadd.f32 %v393_v54, %v7224_v12  ;;  %v507_v61 = vadd.f32 %v506_v55, %v7228_v13  ;;  %v395_v2 = vpop.f32.mrb[10].mxu0  ;;  %6482 = vtanh.f32 %v392_v52  ;;  %v5171_v55 = vcombine.low %v7271_v30, %v7273_v31 }
 0x164   :  { %v508_v3 = vpop.f32.mrb[10].mxu1  ;;  %v6463_v16 = vpop.eup %6462  ;;  %v396_v17 = vadd.f32 %v395_v2, %v7217_v10  ;;  %v7257_v20 = vpack.c.bf16 %v6461_v56, %v6453_v45  ;;  %6484 = vtanh.f32 %v505_v53  ;;  %v5174_v45 = vcombine.high %v7279_v0, %v7281_v35 }
 0x165   :  { %v397_v18 = vpop.f32.mrb[11].mxu0  ;;  %v510_v19 = vpop.f32.mrb[11].mxu1  ;;  %v509_v24 = vadd.f32 %v508_v3, %v7221_v11  ;;  %v7264_v25 = vpack.c.bf16 %v6463_v16, %v6455_v47  ;;  %6486 = vtanh.f32 %v394_v57  ;;  %v7315_v57 = vld [vmem:[#allocation7 + $0xd0] sm:$0xff]  ;;  %v5188_v35 = vcombine.high %v7329_v21, %v7331_v22 }
 0x166   :  { %v6465_v23 = vpop.eup %6464  ;;  %v398_v27 = vadd.f32 %v397_v18, %v7224_v12  ;;  %6488 = vtanh.f32 %v507_v61  ;;  %v511_v33 = vadd.f32 %v510_v19, %v7228_v13  ;;  %v7317_v61 = vld [vmem:[#allocation7 + $0xf0] sm:$0xff] }
 0x167   :  { %v6467_v26 = vpop.eup %6466  ;;  %v7267_v28 = vpack.c.bf16 %v6465_v23, %v6457_v48  ;;  %2269 = vmatprep.mubr.bf16.mxu1 %v7264_v25  ;;  %6490 = vtanh.f32 %v396_v17  ;;  %v5181_v0 = vcombine.low %v7315_v57, %v7317_v61 }
 0x168   :  { %v6469_v32 = vpop.eup %6468  ;;  %2270 = vmatmul.mubr.bf16.vlgmr.msra.gmra.mrb[32].mxu1 %v7250_v7  ;;  %6492 = vtanh.f32 %v509_v24  ;;  %v401_v39 = vpop.f32.mrb[12].mxu0 }
 0x169   :  { %v6471_v36 = vpop.eup %6470  ;;  %2382 = vmatprep.mubr.bf16.mxu0 %v7267_v28  ;;  %2464 = vmatpush1.bf16.msra.mxu1 %v5155_v63  ;;  %v514_v40 = vpop.f32.mrb[12].mxu1  ;;  %6494 = vtanh.f32 %v398_v27  ;;  %v402_v58 = vadd.f32 %v401_v39, %v7217_v10  ;;  %v7337_v27 = vld [vmem:[#allocation7 + $0x110] sm:$0xff] }
 0x16a   :  { %v6473_v37 = vpop.eup %6472  ;;  %2383 = vmatmul.mubr.bf16.vlgmr.msra.gmra.mrb[32].mxu0 %v7257_v20  ;;  %2465 = vmatprep.subr.bf16.mxu1 %v5164_v29  ;;  %v515_v59 = vadd.f32 %v514_v40, %v7221_v11  ;;  %v403_v63 = vpop.f32.mrb[13].mxu0  ;;  %6496 = vtanh.f32 %v511_v33  ;;  %v7339_v29 = vld [vmem:[#allocation7 + $0x130] sm:$0xff] }
 0x16b   :  { %v6475_v43 = vpop.eup %6474  ;;  %2690 = vmatpush1.bf16.msra.mxu0 %v5157_v1  ;;  %v516_v44 = vpop.f32.mrb[13].mxu1  ;;  %v404_v47 = vadd.f32 %v403_v63, %v7224_v12  ;;  %v7306_v1 = vld [vmem:[#allocation7 + $0xc8] sm:$0xff]  ;;  %6498 = vtanh.f32 %v402_v58 }
 0x16c   :  { %v6477_v46 = vpop.eup %6476  ;;  %2691 = vmatprep.subr.bf16.mxu0 %v5166_v34  ;;  %v517_v48 = vadd.f32 %v516_v44, %v7228_v13  ;;  %v405_v49 = vpop.f32.mrb[14].mxu0  ;;  %v7304_v62 = vpack.c.bf16 %v6475_v43, %v6467_v26  ;;  %6500 = vtanh.f32 %v515_v59  ;;  %v5180_v19 = vcombine.high %v7306_v1, %v7308_v50 }
 0x16d   :  { %v518_v60 = vpop.f32.mrb[14].mxu1  ;;  %v6479_v51 = vpop.eup %6478  ;;  %v406_v52 = vadd.f32 %v405_v49, %v7217_v10  ;;  %v7313_v56 = vpack.c.bf16 %v6477_v46, %v6469_v32  ;;  %2466 = vmatpush1.bf16.msra.mxu1 %v5163_v38  ;;  %6502 = vtanh.f32 %v404_v47  ;;  %v5182_v26 = vcombine.high %v7315_v57, %v7317_v61  ;;  %v7360_v46 = vld [vmem:[#allocation7 + $0x168] sm:$0xff] }
 0x16e   :  { %v407_v53 = vpop.f32.mrb[15].mxu0  ;;  %v520_v54 = vpop.f32.mrb[15].mxu1  ;;  %v519_v3 = vadd.f32 %v518_v60, %v7221_v11  ;;  %v7320_v14 = vpack.c.bf16 %v6479_v51, %v6471_v36  ;;  %2467 = vmatprep.subr.bf16.mxu1 %v5172_v42  ;;  %6504 = vtanh.f32 %v517_v48  ;;  %v5179_v32 = vcombine.low %v7306_v1, %v7308_v50  ;;  %v7367_v51 = vld [vmem:[#allocation7 + $0x150] sm:$0xff] }
 0x16f   :  { %v6481_v2 = vpop.eup %6480  ;;  %2692 = vmatpush1.bf16.msra.mxu0 %v5165_v41  ;;  %v408_v17 = vadd.f32 %v407_v53, %v7224_v12  ;;  %v521_v24 = vadd.f32 %v520_v54, %v7228_v13  ;;  %6506 = vtanh.f32 %v406_v52  ;;  %v5190_v41 = vcombine.high %v7337_v27, %v7339_v29  ;;  %v7369_v52 = vld [vmem:[#allocation7 + $0x170] sm:$0xff] }
 0x170   :  { %v6483_v16 = vpop.eup %6482  ;;  %v7325_v18 = vpack.c.bf16 %v6481_v2, %v6473_v37  ;;  %2279 = vmatprep.mubr.bf16.mxu1 %v7320_v14  ;;  %2693 = vmatprep.subr.bf16.mxu0 %v5174_v45  ;;  %6508 = vtanh.f32 %v519_v3  ;;  %v411_v33 = vpop.f32.mrb[16].mxu0  ;;  %v7358_v45 = vld [vmem:[#allocation7 + $0x148] sm:$0xff]  ;;  %v5187_v1 = vcombine.low %v7329_v21, %v7331_v22  ;;  %v5189_v57 = vcombine.low %v7337_v27, %v7339_v29 }
 0x171   :  { %v6485_v23 = vpop.eup %6484  ;;  %2280 = vmatmul.mubr.bf16.gmra.mrb[36].mxu1 %v7304_v62  ;;  %v524_v34 = vpop.f32.mrb[16].mxu1  ;;  %6510 = vtanh.f32 %v408_v17  ;;  %v412_v37 = vadd.f32 %v411_v33, %v7217_v10  ;;  %v7383_v17 = vld [vmem:[#allocation7 + $0x1a8] sm:$0xff]  ;;  %v5198_v22 = vcombine.high %v7367_v51, %v7369_v52  ;;  %v5195_v29 = vcombine.low %v7358_v45, %v7360_v46 }
 0x172   :  { %v6487_v30 = vpop.eup %6486  ;;  %2392 = vmatprep.mubr.bf16.mxu0 %v7325_v18  ;;  %2468 = vmatpush1.bf16.msra.mxu1 %v5171_v55  ;;  %v525_v38 = vadd.f32 %v524_v34, %v7221_v11  ;;  %v413_v39 = vpop.f32.mrb[17].mxu0  ;;  %6512 = vtanh.f32 %v521_v24  ;;  %v7391_v24 = vld [vmem:[#allocation7 + $0x1b0] sm:$0xff] }
 0x173   :  { %v6489_v31 = vpop.eup %6488  ;;  %2393 = vmatmul.mubr.bf16.gmra.mrb[36].mxu0 %v7313_v56  ;;  %2469 = vmatprep.subr.bf16.mxu1 %v5180_v19  ;;  %v526_v40 = vpop.f32.mrb[17].mxu1  ;;  %v414_v43 = vadd.f32 %v413_v39, %v7224_v12  ;;  %6514 = vtanh.f32 %v412_v37 }
 0x174   :  { %v6491_v36 = vpop.eup %6490  ;;  %2694 = vmatpush1.bf16.msra.mxu0 %v5173_v15  ;;  %v527_v58 = vadd.f32 %v526_v40, %v7228_v13  ;;  %v415_v59 = vpop.f32.mrb[18].mxu0  ;;  %6516 = vtanh.f32 %v525_v38  ;;  %v5196_v15 = vcombine.high %v7358_v45, %v7360_v46 }
 0x175   :  { %v6493_v42 = vpop.eup %6492  ;;  %2695 = vmatprep.subr.bf16.mxu0 %v5182_v26  ;;  %v528_v63 = vpop.f32.mrb[18].mxu1  ;;  %v7356_v44 = vpack.c.bf16 %v6491_v36, %v6483_v16  ;;  %v416_v48 = vadd.f32 %v415_v59, %v7217_v10  ;;  %6518 = vtanh.f32 %v414_v43  ;;  %v7381_v16 = vld [vmem:[#allocation7 + $0x188] sm:$0xff] }
 0x176   :  { %v6495_v47 = vpop.eup %6494  ;;  %v417_v49 = vpop.f32.mrb[19].mxu0  ;;  %v7365_v50 = vpack.c.bf16 %v6493_v42, %v6485_v23  ;;  %2470 = vmatpush1.bf16.msra.mxu1 %v5179_v32  ;;  %v529_v54 = vadd.f32 %v528_v63, %v7221_v11  ;;  %6520 = vtanh.f32 %v527_v58  ;;  %v7389_v23 = vld [vmem:[#allocation7 + $0x190] sm:$0xff]  ;;  %v5197_v32 = vcombine.low %v7367_v51, %v7369_v52  ;;  %v7410_v59 = vld [vmem:[#allocation7 + $0x1c8] sm:$0xff] }
 0x177   :  { %v530_v60 = vpop.f32.mrb[19].mxu1  ;;  %v6497_v53 = vpop.eup %6496  ;;  %v7372_v55 = vpack.c.bf16 %v6495_v47, %v6487_v30  ;;  %v418_v2 = vadd.f32 %v417_v49, %v7224_v12  ;;  %2471 = vmatprep.subr.bf16.mxu1 %v5188_v35  ;;  %6522 = vtanh.f32 %v416_v48  ;;  %v5204_v33 = vcombine.high %v7381_v16, %v7383_v17  ;;  %v7412_v63 = vld [vmem:[#allocation7 + $0x1e8] sm:$0xff]  ;;  %v7421_v51 = vld [vmem:[#allocation7 + $0x1f0] sm:$0xff] }
 0x178   :  { %v6499_v61 = vpop.eup %6498  ;;  %2696 = vmatpush1.bf16.msra.mxu0 %v5181_v0  ;;  %v7377_v3 = vpack.c.bf16 %v6497_v53, %v6489_v31  ;;  %v531_v21 = vadd.f32 %v530_v60, %v7228_v13  ;;  %6524 = vtanh.f32 %v529_v54  ;;  %v421_v30 = vpop.f32.mrb[20].mxu0  ;;  %v5206_v38 = vcombine.high %v7389_v23, %v7391_v24 }
 0x179   :  { %v6501_v19 = vpop.eup %6500  ;;  %2289 = vmatprep.mubr.bf16.mxu1 %v7372_v55  ;;  %2697 = vmatprep.subr.bf16.mxu0 %v5190_v41  ;;  %v534_v31 = vpop.f32.mrb[20].mxu1  ;;  %6526 = vtanh.f32 %v418_v2  ;;  %v422_v0 = vadd.f32 %v421_v30, %v7217_v10  ;;  %v5203_v49 = vcombine.low %v7381_v16, %v7383_v17  ;;  %v5212_v16 = vcombine.high %v7410_v59, %v7412_v63  ;;  %v7433_v17 = vld [vmem:[#allocation7 + $0x208] sm:$0xff] }
 0x17a   :  { %v6503_v26 = vpop.eup %6502  ;;  %2402 = vmatprep.mubr.bf16.mxu0 %v7377_v3  ;;  %2290 = vmatmul.mubr.bf16.gmra.mrb[40].mxu1 %v7356_v44  ;;  %v535_v35 = vadd.f32 %v534_v31, %v7221_v11  ;;  %v423_v36 = vpop.f32.mrb[21].mxu0  ;;  %6528 = vtanh.f32 %v531_v21  ;;  %v5211_v30 = vcombine.low %v7410_v59, %v7412_v63 }
 0x17b   :  { %v6505_v27 = vpop.eup %6504  ;;  %2403 = vmatmul.mubr.bf16.gmra.mrb[40].mxu0 %v7365_v50  ;;  %2472 = vmatpush1.bf16.msra.mxu1 %v5187_v1  ;;  %v536_v37 = vpop.f32.mrb[21].mxu1  ;;  %v424_v40 = vadd.f32 %v423_v36, %v7224_v12  ;;  %6530 = vtanh.f32 %v422_v0  ;;  %v7419_v1 = vld [vmem:[#allocation7 + $0x1d0] sm:$0xff] }
 0x17c   :  { %v6507_v34 = vpop.eup %6506  ;;  %2698 = vmatpush1.bf16.msra.mxu0 %v5189_v57  ;;  %2473 = vmatprep.subr.bf16.mxu1 %v5196_v15  ;;  %v537_v41 = vadd.f32 %v536_v37, %v7228_v13  ;;  %v425_v42 = vpop.f32.mrb[22].mxu0  ;;  %6532 = vtanh.f32 %v535_v35  ;;  %v5205_v57 = vcombine.low %v7389_v23, %v7391_v24  ;;  %v5214_v23 = vcombine.high %v7419_v1, %v7421_v51  ;;  %v7441_v24 = vld [vmem:[#allocation7 + $0x210] sm:$0xff] }
 0x17d   :  { %v6509_v39 = vpop.eup %6508  ;;  %2699 = vmatprep.subr.bf16.mxu0 %v5198_v22  ;;  %v538_v43 = vpop.f32.mrb[22].mxu1  ;;  %v7408_v58 = vpack.c.bf16 %v6507_v34, %v6499_v61  ;;  %v426_v46 = vadd.f32 %v425_v42, %v7217_v10  ;;  %6534 = vtanh.f32 %v424_v40 }
 0x17e   :  { %v6511_v45 = vpop.eup %6510  ;;  %v427_v47 = vpop.f32.mrb[23].mxu0  ;;  %v7417_v60 = vpack.c.bf16 %v6509_v39, %v6501_v19  ;;  %v539_v53 = vadd.f32 %v538_v43, %v7221_v11  ;;  %v7435_v19 = vld [vmem:[#allocation7 + $0x228] sm:$0xff]  ;;  %6536 = vtanh.f32 %v537_v41 }
 0x17f   :  { %v540_v48 = vpop.f32.mrb[23].mxu1  ;;  %v6513_v52 = vpop.eup %6512  ;;  %2474 = vmatpush1.bf16.msra.mxu1 %v5195_v29  ;;  %v7424_v54 = vpack.c.bf16 %v6511_v45, %v6503_v26  ;;  %v428_v2 = vadd.f32 %v427_v47, %v7224_v12  ;;  %v7443_v26 = vld [vmem:[#allocation7 + $0x230] sm:$0xff]  ;;  %6538 = vtanh.f32 %v426_v46  ;;  %v5220_v34 = vcombine.high %v7433_v17, %v7435_v19  ;;  %v7462_v45 = vld [vmem:[#allocation7 + $0x248] sm:$0xff] }
 0x180   :  { %v6515_v61 = vpop.eup %6514  ;;  %2700 = vmatpush1.bf16.msra.mxu0 %v5197_v32  ;;  %v7429_v15 = vpack.c.bf16 %v6513_v52, %v6505_v27  ;;  %2475 = vmatprep.subr.bf16.mxu1 %v5204_v33  ;;  %v541_v22 = vadd.f32 %v540_v48, %v7228_v13  ;;  %6540 = vtanh.f32 %v539_v53  ;;  %v431_v31 = vpop.f32.mrb[24].mxu0  ;;  %v5213_v33 = vcombine.low %v7419_v1, %v7421_v51  ;;  %v7464_v46 = vld [vmem:[#allocation7 + $0x268] sm:$0xff]  ;;  %v7471_v53 = vld [vmem:[#allocation7 + $0x250] sm:$0xff] }
 0x181   :  { %v6517_v21 = vpop.eup %6516  ;;  %2299 = vmatprep.mubr.bf16.mxu1 %v7424_v54  ;;  %2701 = vmatprep.subr.bf16.mxu0 %v5206_v38  ;;  %v544_v32 = vpop.f32.mrb[24].mxu1  ;;  %6542 = vtanh.f32 %v428_v2  ;;  %v432_v35 = vadd.f32 %v431_v31, %v7217_v10  ;;  %v5222_v39 = vcombine.high %v7441_v24, %v7443_v26  ;;  %v5219_v51 = vcombine.low %v7433_v17, %v7435_v19  ;;  %v7485_v31 = vld [vmem:[#allocation7 + $0x288] sm:$0xff] }
 0x182   :  { %v6519_v27 = vpop.eup %6518  ;;  %2412 = vmatprep.mubr.bf16.mxu0 %v7429_v15  ;;  %2300 = vmatmul.mubr.bf16.gmra.mrb[44].mxu1 %v7408_v58  ;;  %v545_v36 = vadd.f32 %v544_v32, %v7221_v11  ;;  %v433_v37 = vpop.f32.mrb[25].mxu0  ;;  %6544 = vtanh.f32 %v541_v22  ;;  %v5221_v22 = vcombine.low %v7441_v24, %v7443_v26  ;;  %v7493_v26 = vld [vmem:[#allocation7 + $0x290] sm:$0xff] }
 0x183   :  { %v6521_v29 = vpop.eup %6520  ;;  %2413 = vmatmul.mubr.bf16.gmra.mrb[44].mxu0 %v7417_v60  ;;  %2476 = vmatpush1.bf16.msra.mxu1 %v5203_v49  ;;  %v546_v38 = vpop.f32.mrb[25].mxu1  ;;  %v434_v41 = vadd.f32 %v433_v37, %v7224_v12  ;;  %6546 = vtanh.f32 %v432_v35 }
 0x184   :  { %v6523_v0 = vpop.eup %6522  ;;  %2702 = vmatpush1.bf16.msra.mxu0 %v5205_v57  ;;  %2477 = vmatprep.subr.bf16.mxu1 %v5212_v16  ;;  %v547_v42 = vadd.f32 %v546_v38, %v7228_v13  ;;  %v435_v43 = vpop.f32.mrb[26].mxu0  ;;  %v7473_v57 = vld [vmem:[#allocation7 + $0x270] sm:$0xff]  ;;  %6548 = vtanh.f32 %v545_v36 }
 0x185   :  { %v6525_v40 = vpop.eup %6524  ;;  %2703 = vmatprep.subr.bf16.mxu0 %v5214_v23  ;;  %v548_v59 = vpop.f32.mrb[26].mxu1  ;;  %v7460_v63 = vpack.c.bf16 %v6523_v0, %v6515_v61  ;;  %v436_v48 = vadd.f32 %v435_v43, %v7217_v10  ;;  %6550 = vtanh.f32 %v434_v41  ;;  %v5230_v24 = vcombine.high %v7471_v53, %v7473_v57 }
 0x186   :  { %v6527_v47 = vpop.eup %6526  ;;  %v437_v49 = vpop.f32.mrb[27].mxu0  ;;  %v7469_v52 = vpack.c.bf16 %v6525_v40, %v6517_v21  ;;  %v549_v2 = vadd.f32 %v548_v59, %v7221_v11  ;;  %v5228_v21 = vcombine.high %v7462_v45, %v7464_v46  ;;  %6552 = vtanh.f32 %v547_v42 }
 0x187   :  { %v550_v1 = vpop.f32.mrb[27].mxu1  ;;  %v6529_v61 = vpop.eup %6528  ;;  %2478 = vmatpush1.bf16.msra.mxu1 %v5211_v30  ;;  %v7476_v16 = vpack.c.bf16 %v6527_v47, %v6519_v27  ;;  %v438_v17 = vadd.f32 %v437_v49, %v7224_v12  ;;  %v7487_v30 = vld [vmem:[#allocation7 + $0x2a8] sm:$0xff]  ;;  %6554 = vtanh.f32 %v436_v48  ;;  %v5227_v0 = vcombine.low %v7462_v45, %v7464_v46 }
 0x188   :  { %v6531_v23 = vpop.eup %6530  ;;  %2704 = vmatpush1.bf16.msra.mxu0 %v5213_v33  ;;  %v7481_v19 = vpack.c.bf16 %v6529_v61, %v6521_v29  ;;  %2479 = vmatprep.subr.bf16.mxu1 %v5220_v34  ;;  %v551_v32 = vadd.f32 %v550_v1, %v7228_v13  ;;  %v7495_v29 = vld [vmem:[#allocation7 + $0x2b0] sm:$0xff]  ;;  %6556 = vtanh.f32 %v549_v2  ;;  %v441_v35 = vpop.f32.mrb[28].mxu0  ;;  %v5229_v37 = vcombine.low %v7471_v53, %v7473_v57  ;;  %v752_v53 = vld [vmem:[#allocation7 + $0x2e8] sm:$0xff] }
 0x189   :  { %v6533_v27 = vpop.eup %6532  ;;  %2309 = vmatprep.mubr.bf16.mxu1 %v7476_v16  ;;  %2705 = vmatprep.subr.bf16.mxu0 %v5222_v39  ;;  %v554_v36 = vpop.f32.mrb[28].mxu1  ;;  %v5236_v38 = vcombine.high %v7485_v31, %v7487_v30  ;;  %6558 = vtanh.f32 %v438_v17  ;;  %v442_v40 = vadd.f32 %v441_v35, %v7217_v10  ;;  %v5238_v59 = vcombine.high %v7493_v26, %v7495_v29 }
 0x18a   :  { %v6535_v33 = vpop.eup %6534  ;;  %2422 = vmatprep.mubr.bf16.mxu0 %v7481_v19  ;;  %2310 = vmatmul.mubr.bf16.gmra.mrb[48].mxu1 %v7460_v63  ;;  %v555_v41 = vadd.f32 %v554_v36, %v7221_v11  ;;  %v443_v42 = vpop.f32.mrb[29].mxu0  ;;  %6560 = vtanh.f32 %v551_v32  ;;  %v5235_v17 = vcombine.low %v7485_v31, %v7487_v30  ;;  %v749_v32 = vld [vmem:[#allocation7 + $0x2d0] sm:$0xff] }
 0x18b   :  { %v6537_v34 = vpop.eup %6536  ;;  %2423 = vmatmul.mubr.bf16.gmra.mrb[48].mxu0 %v7469_v52  ;;  %2480 = vmatpush1.bf16.msra.mxu1 %v5219_v51  ;;  %v556_v43 = vpop.f32.mrb[29].mxu1  ;;  %v444_v46 = vadd.f32 %v443_v42, %v7224_v12  ;;  %v748_v51 = vld [vmem:[#allocation7 + $0x2c8] sm:$0xff]  ;;  %6562 = vtanh.f32 %v442_v40 }
 0x18c   :  { %v6539_v39 = vpop.eup %6538  ;;  %2706 = vmatpush1.bf16.msra.mxu0 %v5221_v22  ;;  %2481 = vmatprep.subr.bf16.mxu1 %v5228_v21  ;;  %v557_v47 = vadd.f32 %v556_v43, %v7228_v13  ;;  %v445_v48 = vpop.f32.mrb[30].mxu0  ;;  %6564 = vtanh.f32 %v555_v41  ;;  %v5244_v30 = vcombine.high %v748_v51, %v752_v53  ;;  %v760_v41 = vld [vmem:[#allocation7 + $0x328] sm:$0xff] }
 0x18d   :  { %v6541_v45 = vpop.eup %6540  ;;  %2707 = vmatprep.subr.bf16.mxu0 %v5230_v24  ;;  %v558_v49 = vpop.f32.mrb[30].mxu1  ;;  %v7512_v1 = vpack.c.bf16 %v6539_v39, %v6531_v23  ;;  %v446_v61 = vadd.f32 %v445_v48, %v7217_v10  ;;  %v753_v24 = vld [vmem:[#allocation7 + $0x2f0] sm:$0xff]  ;;  %v5237_v39 = vcombine.low %v7493_v26, %v7495_v29  ;;  %6566 = vtanh.f32 %v444_v46  ;;  %v764_v46 = vld [vmem:[#allocation7 + $0x348] sm:$0xff] }
 0x18e   :  { %v6543_v57 = vpop.eup %6542  ;;  %v447_v2 = vpop.f32.mrb[31].mxu0  ;;  %v7517_v21 = vpack.c.bf16 %v6541_v45, %v6533_v27  ;;  %v559_v23 = vadd.f32 %v558_v49, %v7221_v11  ;;  %6568 = vtanh.f32 %v557_v47  ;;  %v5246_v11 = vcombine.high %v749_v32, %v753_v24  ;;  %v761_v29 = vld [vmem:[#allocation7 + $0x330] sm:$0xff]  ;;  %v768_v47 = vld [vmem:[#allocation7 + $0x368] sm:$0xff] }
 0x18f   :  { %v560_v22 = vpop.f32.mrb[31].mxu1  ;;  %v6545_v35 = vpop.eup %6544  ;;  %2482 = vmatpush1.bf16.msra.mxu1 %v5227_v0  ;;  %v7520_v36 = vpack.c.bf16 %v6543_v57, %v6535_v33  ;;  %v448_v40 = vadd.f32 %v447_v2, %v7224_v12  ;;  %v756_v33 = vld [vmem:[#allocation7 + $0x308] sm:$0xff]  ;;  %6570 = vtanh.f32 %v446_v61  ;;  %v757_v12 = vld [vmem:[#allocation7 + $0x310] sm:$0xff] }
 0x190   :  { %v6547_v10 = vpop.eup %6546  ;;  %2708 = vmatpush1.bf16.msra.mxu0 %v5229_v37  ;;  %v7525_v31 = vpack.c.bf16 %v6545_v35, %v6537_v34  ;;  %2483 = vmatprep.subr.bf16.mxu1 %v5236_v38  ;;  %v561_v0 = vadd.f32 %v560_v22, %v7228_v13  ;;  %6572 = vtanh.f32 %v559_v23  ;;  %v5243_v13 = vcombine.low %v748_v51, %v752_v53  ;;  %v765_v57 = vld [vmem:[#allocation7 + $0x350] sm:$0xff] }
 0x191   :  { %v6549_v27 = vpop.eup %6548  ;;  %2319 = vmatprep.mubr.bf16.mxu1 %v7520_v36  ;;  %2709 = vmatprep.subr.bf16.mxu0 %v5238_v59  ;;  %6574 = vtanh.f32 %v448_v40  ;;  %v5245_v38 = vcombine.low %v749_v32, %v753_v24  ;;  %v5252_v42 = vcombine.high %v756_v33, %v760_v41  ;;  %v5254_v45 = vcombine.high %v757_v12, %v761_v29  ;;  %v769_v61 = vld [vmem:[#allocation7 + $0x370] sm:$0xff] }
 0x192   :  { %v6551_v26 = vpop.eup %6550  ;;  %2432 = vmatprep.mubr.bf16.mxu0 %v7525_v31  ;;  %2320 = vmatmul.mubr.bf16.gmra.mrb[52].mxu1 %v7512_v1  ;;  %6576 = vtanh.f32 %v561_v0  ;;  %v5251_v2 = vcombine.low %v756_v33, %v760_v41  ;;  %v5253_v32 = vcombine.low %v757_v12, %v761_v29  ;;  %v5260_v24 = vcombine.high %v764_v46, %v768_v47 }
 0x193   :  { %v6553_v34 = vpop.eup %6552  ;;  %2433 = vmatmul.mubr.bf16.gmra.mrb[52].mxu0 %v7517_v21  ;;  %2484 = vmatpush1.bf16.msra.mxu1 %v5235_v17  ;;  %v5262_v23 = vcombine.high %v765_v57, %v769_v61  ;;  %v5261_v41 = vcombine.low %v765_v57, %v769_v61 }
 0x194   :  { %v6555_v37 = vpop.eup %6554  ;;  %2710 = vmatpush1.bf16.msra.mxu0 %v5237_v39  ;;  %2485 = vmatprep.subr.bf16.mxu1 %v5244_v30  ;;  %v772_v39 = vld [vmem:[#allocation7 + $0x388] sm:$0xff]  ;;  %v773_v30 = vld [vmem:[#allocation7 + $0x390] sm:$0xff] }
 0x195   :  { %v6557_v43 = vpop.eup %6556  ;;  %2711 = vmatprep.subr.bf16.mxu0 %v5246_v11  ;;  %v7532_v59 = vpack.c.bf16 %v6555_v37, %v6547_v10  ;;  %v776_v10 = vld [vmem:[#allocation7 + $0x3a8] sm:$0xff]  ;;  %v5259_v11 = vcombine.low %v764_v46, %v768_v47  ;;  %v781_v47 = vld [vmem:[#allocation7 + $0x3d0] sm:$0xff] }
 0x196   :  { %v6559_v48 = vpop.eup %6558  ;;  %v7534_v49 = vpack.c.bf16 %v6557_v43, %v6549_v27  ;;  %v777_v27 = vld [vmem:[#allocation7 + $0x3b0] sm:$0xff]  ;;  %v5267_v46 = vcombine.low %v772_v39, %v776_v10 }
 0x197   :  { %v6561_v51 = vpop.eup %6560  ;;  %2486 = vmatpush1.bf16.msra.mxu1 %v5243_v13  ;;  %v7536_v53 = vpack.c.bf16 %v6559_v48, %v6551_v26  ;;  %v5268_v26 = vcombine.high %v772_v39, %v776_v10  ;;  %v785_v48 = vld [vmem:[#allocation7 + $0x3f0] sm:$0xff]  ;;  %v5269_v61 = vcombine.low %v773_v30, %v777_v27 }
 0x198   :  { %v6563_v22 = vpop.eup %6562  ;;  %2712 = vmatpush1.bf16.msra.mxu0 %v5245_v38  ;;  %v7538_v17 = vpack.c.bf16 %v6561_v51, %v6553_v34  ;;  %2487 = vmatprep.subr.bf16.mxu1 %v5252_v42  ;;  %v5270_v34 = vcombine.high %v773_v30, %v777_v27  ;;  %v780_v38 = vld [vmem:[#allocation7 + $0x3c8] sm:$0xff]  ;;  %v5277_v39 = vcombine.low %v781_v47, %v785_v48 }
 0x199   :  { %v6565_v35 = vpop.eup %6564  ;;  %2329 = vmatprep.mubr.bf16.mxu1 %v7536_v53  ;;  %2713 = vmatprep.subr.bf16.mxu0 %v5254_v45  ;;  %v784_v42 = vld [vmem:[#allocation7 + $0x3e8] sm:$0xff] }
 0x19a   :  { %v6567_v40 = vpop.eup %6566  ;;  %2442 = vmatprep.mubr.bf16.mxu0 %v7538_v17  ;;  %2330 = vmatmul.mubr.bf16.gmra.mrb[56].mxu1 %v7532_v59  ;;  %v5276_v51 = vcombine.high %v780_v38, %v784_v42  ;;  %v796_v30 = vld [vmem:[#allocation7 + $0x448] sm:$0xff] }
 0x19b   :  { %v6569_v0 = vpop.eup %6568  ;;  %2443 = vmatmul.mubr.bf16.gmra.mrb[56].mxu0 %v7534_v49  ;;  %2488 = vmatpush1.bf16.msra.mxu1 %v5251_v2  ;;  %v788_v2 = vld [vmem:[#allocation7 + $0x408] sm:$0xff] }
 0x19c   :  { %v6571_v33 = vpop.eup %6570  ;;  %2714 = vmatpush1.bf16.msra.mxu0 %v5253_v32  ;;  %2489 = vmatprep.subr.bf16.mxu1 %v5260_v24  ;;  %v5278_v32 = vcombine.high %v781_v47, %v785_v48  ;;  %v789_v24 = vld [vmem:[#allocation7 + $0x410] sm:$0xff]  ;;  %v800_v27 = vld [vmem:[#allocation7 + $0x468] sm:$0xff] }
 0x19d   :  { %v6573_v12 = vpop.eup %6572  ;;  %2715 = vmatprep.subr.bf16.mxu0 %v5262_v23  ;;  %v7544_v29 = vpack.c.bf16 %v6571_v33, %v6563_v22  ;;  %v792_v22 = vld [vmem:[#allocation7 + $0x428] sm:$0xff]  ;;  %v5275_v23 = vcombine.low %v780_v38, %v784_v42  ;;  %v801_v33 = vld [vmem:[#allocation7 + $0x470] sm:$0xff]  ;;  %v5291_v38 = vcombine.low %v796_v30, %v800_v27 }
 0x19e   :  { %v6575_v13 = vpop.eup %6574  ;;  %v7546_v37 = vpack.c.bf16 %v6573_v12, %v6565_v35  ;;  %v793_v35 = vld [vmem:[#allocation7 + $0x430] sm:$0xff]  ;;  %v5284_v10 = vcombine.high %v788_v2, %v792_v22  ;;  %v804_v12 = vld [vmem:[#allocation7 + $0x488] sm:$0xff] }
 0x19f   :  { %v6577_v43 = vpop.eup %6576  ;;  %2490 = vmatpush1.bf16.msra.mxu1 %v5259_v11  ;;  %v7548_v45 = vpack.c.bf16 %v6575_v13, %v6567_v40  ;;  %v5286_v40 = vcombine.high %v789_v24, %v793_v35  ;;  %v797_v11 = vld [vmem:[#allocation7 + $0x450] sm:$0xff] }
 0x1a0   :  { %2716 = vmatpush1.bf16.msra.mxu0 %v5261_v41  ;;  %v7550_v57 = vpack.c.bf16 %v6577_v43, %v6569_v0  ;;  %2491 = vmatprep.subr.bf16.mxu1 %v5268_v26  ;;  %v5283_v0 = vcombine.low %v788_v2, %v792_v22  ;;  %v5285_v41 = vcombine.low %v789_v24, %v793_v35  ;;  %v805_v42 = vld [vmem:[#allocation7 + $0x490] sm:$0xff] }
 0x1a1   :  { %2339 = vmatprep.mubr.bf16.mxu1 %v7548_v45  ;;  %2717 = vmatprep.subr.bf16.mxu0 %v5270_v34  ;;  %v5292_v26 = vcombine.high %v796_v30, %v800_v27  ;;  %v808_v34 = vld [vmem:[#allocation7 + $0x4a8] sm:$0xff]  ;;  %v5294_v13 = vcombine.high %v797_v11, %v801_v33  ;;  %v809_v43 = vld [vmem:[#allocation7 + $0x4b0] sm:$0xff]  ;;  %v5293_v47 = vcombine.low %v797_v11, %v801_v33 }
 0x1a2   :  { %2452 = vmatprep.mubr.bf16.mxu0 %v7550_v57  ;;  %2340 = vmatmul.mubr.bf16.gmra.mrb[60].mxu1 %v7544_v29  ;;  %v5302_v48 = vcombine.high %v805_v42, %v809_v43  ;;  %v5299_v2 = vcombine.low %v804_v12, %v808_v34  ;;  %v813_v22 = vld [vmem:[#allocation7 + $0x4d0] sm:$0xff]  ;;  %v5301_v24 = vcombine.low %v805_v42, %v809_v43  ;;  %v836_v43 = vld [vmem:[#allocation7 + $0x588] sm:$0xff] }
 0x1a3   :  { %2453 = vmatmul.mubr.bf16.gmra.mrb[60].mxu0 %v7546_v37  ;;  %2492 = vmatpush1.bf16.msra.mxu1 %v5267_v46  ;;  %v5300_v46 = vcombine.high %v804_v12, %v808_v34  ;;  %v821_v30 = vld [vmem:[#allocation7 + $0x510] sm:$0xff] }
 0x1a4   :  { %2495 = vmatprep.mubr.bf16.mxu1 %v7264_v25  ;;  %2718 = vmatpush1.bf16.msra.mxu0 %v5269_v61  ;;  %v812_v61 = vld [vmem:[#allocation7 + $0x4c8] sm:$0xff]  ;;  %v825_v27 = vld [vmem:[#allocation7 + $0x530] sm:$0xff] }
 0x1a5   :  { %2721 = vmatprep.mubr.bf16.mxu0 %v7264_v25  ;;  %2493 = vmatprep.subr.bf16.mxu1 %v5276_v51  ;;  %v816_v51 = vld [vmem:[#allocation7 + $0x4e8] sm:$0xff]  ;;  %v5318_v33 = vcombine.high %v821_v30, %v825_v27  ;;  %v829_v34 = vld [vmem:[#allocation7 + $0x550] sm:$0xff] }
 0x1a6   :  { %2719 = vmatprep.subr.bf16.mxu0 %v5278_v32  ;;  %v817_v32 = vld [vmem:[#allocation7 + $0x4f0] sm:$0xff]  ;;  %v5308_v35 = vcombine.high %v812_v61, %v816_v51 }
 0x1a7   :  { %2494 = vmatpush1.bf16.msra.mxu1 %v5275_v23  ;;  %v820_v23 = vld [vmem:[#allocation7 + $0x508] sm:$0xff]  ;;  %v5309_v11 = vcombine.low %v813_v22, %v817_v32 }
 0x1a8   :  { %2720 = vmatpush1.bf16.msra.mxu0 %v5277_v39  ;;  %2576 = vmatprep.subr.bf16.mxu1 %v5284_v10  ;;  %v824_v39 = vld [vmem:[#allocation7 + $0x528] sm:$0xff]  ;;  %v5310_v10 = vcombine.high %v813_v22, %v817_v32 }
 0x1a9   :  { %2802 = vmatprep.subr.bf16.mxu0 %v5286_v40  ;;  %v5307_v40 = vcombine.low %v812_v61, %v816_v51  ;;  %v5315_v12 = vcombine.low %v820_v23, %v824_v39  ;;  %v837_v61 = vld [vmem:[#allocation7 + $0x590] sm:$0xff] }
 0x1aa   :  { %2496 = vmatmul.mubr.bf16.vlgmr.msra.gmra.mrb[64].mxu1 %v7250_v7  ;;  %v841_v51 = vld [vmem:[#allocation7 + $0x5b0] sm:$0xff] }
 0x1ab   :  { %2577 = vmatpush1.bf16.msra.mxu1 %v5283_v0  ;;  %2722 = vmatmul.mubr.bf16.vlgmr.msra.gmra.mrb[64].mxu0 %v7250_v7  ;;  %v5316_v0 = vcombine.high %v820_v23, %v824_v39  ;;  %v5334_v32 = vcombine.high %v837_v61, %v841_v51  ;;  %v845_v39 = vld [vmem:[#allocation7 + $0x5d0] sm:$0xff] }
 0x1ac   :  { %2505 = vmatprep.mubr.bf16.mxu1 %v7320_v14  ;;  %2731 = vmatprep.mubr.bf16.mxu0 %v7320_v14 }
 0x1ad   :  { %2803 = vmatpush1.bf16.msra.mxu0 %v5285_v41  ;;  %2578 = vmatprep.subr.bf16.mxu1 %v5292_v26  ;;  %v828_v41 = vld [vmem:[#allocation7 + $0x548] sm:$0xff] }
 0x1ae   :  { %2804 = vmatprep.subr.bf16.mxu0 %v5294_v13  ;;  %v832_v26 = vld [vmem:[#allocation7 + $0x568] sm:$0xff]  ;;  %v833_v13 = vld [vmem:[#allocation7 + $0x570] sm:$0xff] }
 0x1af   :  { %2579 = vmatpush1.bf16.msra.mxu1 %v5291_v38  ;;  %v5317_v38 = vcombine.low %v821_v30, %v825_v27  ;;  %v5324_v42 = vcombine.high %v828_v41, %v832_v26  ;;  %v5325_v22 = vcombine.low %v829_v34, %v833_v13  ;;  %v852_v27 = vld [vmem:[#allocation7 + $0x608] sm:$0xff] }
 0x1b0   :  { %2580 = vmatprep.subr.bf16.mxu1 %v5300_v46  ;;  %v840_v46 = vld [vmem:[#allocation7 + $0x5a8] sm:$0xff] }
 0x1b1   :  { %2805 = vmatpush1.bf16.msra.mxu0 %v5293_v47  ;;  %v5326_v47 = vcombine.high %v829_v34, %v833_v13  ;;  %v5331_v23 = vcombine.low %v836_v43, %v840_v46 }
 0x1b2   :  { %2506 = vmatmul.mubr.bf16.gmra.mrb[68].mxu1 %v7304_v62  ;;  %2806 = vmatprep.subr.bf16.mxu0 %v5302_v48  ;;  %v5323_v48 = vcombine.low %v828_v41, %v832_v26  ;;  %v853_v41 = vld [vmem:[#allocation7 + $0x610] sm:$0xff] }
 0x1b3   :  { %2581 = vmatpush1.bf16.msra.mxu1 %v5299_v2  ;;  %2732 = vmatmul.mubr.bf16.gmra.mrb[68].mxu0 %v7304_v62  ;;  %v5332_v2 = vcombine.high %v836_v43, %v840_v46  ;;  %v857_v26 = vld [vmem:[#allocation7 + $0x630] sm:$0xff] }
 0x1b4   :  { %2515 = vmatprep.mubr.bf16.mxu1 %v7372_v55  ;;  %2741 = vmatprep.mubr.bf16.mxu0 %v7372_v55  ;;  %v5350_v13 = vcombine.high %v853_v41, %v857_v26  ;;  %v861_v46 = vld [vmem:[#allocation7 + $0x650] sm:$0xff] }
 0x1b5   :  { %2807 = vmatpush1.bf16.msra.mxu0 %v5301_v24  ;;  %2582 = vmatprep.subr.bf16.mxu1 %v5308_v35  ;;  %v844_v24 = vld [vmem:[#allocation7 + $0x5c8] sm:$0xff] }
 0x1b6   :  { %2808 = vmatprep.subr.bf16.mxu0 %v5310_v10  ;;  %v848_v35 = vld [vmem:[#allocation7 + $0x5e8] sm:$0xff]  ;;  %v849_v10 = vld [vmem:[#allocation7 + $0x5f0] sm:$0xff] }
 0x1b7   :  { %2583 = vmatpush1.bf16.msra.mxu1 %v5307_v40  ;;  %v5333_v40 = vcombine.low %v837_v61, %v841_v51  ;;  %v5340_v30 = vcombine.high %v844_v24, %v848_v35  ;;  %v5341_v34 = vcombine.low %v845_v39, %v849_v10  ;;  %v868_v51 = vld [vmem:[#allocation7 + $0x688] sm:$0xff] }
 0x1b8   :  { %2584 = vmatprep.subr.bf16.mxu1 %v5316_v0  ;;  %v856_v0 = vld [vmem:[#allocation7 + $0x628] sm:$0xff] }
 0x1b9   :  { %2809 = vmatpush1.bf16.msra.mxu0 %v5309_v11  ;;  %v5342_v11 = vcombine.high %v845_v39, %v849_v10  ;;  %v5347_v43 = vcombine.low %v852_v27, %v856_v0 }
 0x1ba   :  { %2516 = vmatmul.mubr.bf16.gmra.mrb[72].mxu1 %v7356_v44  ;;  %2810 = vmatprep.subr.bf16.mxu0 %v5318_v33  ;;  %v5339_v33 = vcombine.low %v844_v24, %v848_v35  ;;  %v869_v24 = vld [vmem:[#allocation7 + $0x690] sm:$0xff] }
 0x1bb   :  { %2585 = vmatpush1.bf16.msra.mxu1 %v5315_v12  ;;  %2742 = vmatmul.mubr.bf16.gmra.mrb[72].mxu0 %v7356_v44  ;;  %v5348_v12 = vcombine.high %v852_v27, %v856_v0  ;;  %v873_v35 = vld [vmem:[#allocation7 + $0x6b0] sm:$0xff] }
 0x1bc   :  { %2525 = vmatprep.mubr.bf16.mxu1 %v7424_v54  ;;  %2751 = vmatprep.mubr.bf16.mxu0 %v7424_v54  ;;  %v5366_v10 = vcombine.high %v869_v24, %v873_v35  ;;  %v877_v0 = vld [vmem:[#allocation7 + $0x6d0] sm:$0xff] }
 0x1bd   :  { %2811 = vmatpush1.bf16.msra.mxu0 %v5317_v38  ;;  %2586 = vmatprep.subr.bf16.mxu1 %v5324_v42  ;;  %v860_v38 = vld [vmem:[#allocation7 + $0x648] sm:$0xff] }
 0x1be   :  { %2812 = vmatprep.subr.bf16.mxu0 %v5326_v47  ;;  %v864_v42 = vld [vmem:[#allocation7 + $0x668] sm:$0xff]  ;;  %v865_v47 = vld [vmem:[#allocation7 + $0x670] sm:$0xff] }
 0x1bf   :  { %2587 = vmatpush1.bf16.msra.mxu1 %v5323_v48  ;;  %v5349_v48 = vcombine.low %v853_v41, %v857_v26  ;;  %v5356_v61 = vcombine.high %v860_v38, %v864_v42  ;;  %v5357_v39 = vcombine.low %v861_v46, %v865_v47  ;;  %v884_v26 = vld [vmem:[#allocation7 + $0x708] sm:$0xff] }
 0x1c0   :  { %2588 = vmatprep.subr.bf16.mxu1 %v5332_v2  ;;  %v872_v2 = vld [vmem:[#allocation7 + $0x6a8] sm:$0xff] }
 0x1c1   :  { %2813 = vmatpush1.bf16.msra.mxu0 %v5325_v22  ;;  %v5358_v22 = vcombine.high %v861_v46, %v865_v47  ;;  %v5363_v27 = vcombine.low %v868_v51, %v872_v2 }
 0x1c2   :  { %2526 = vmatmul.mubr.bf16.gmra.mrb[76].mxu1 %v7408_v58  ;;  %2814 = vmatprep.subr.bf16.mxu0 %v5334_v32  ;;  %v5355_v32 = vcombine.low %v860_v38, %v864_v42  ;;  %v885_v38 = vld [vmem:[#allocation7 + $0x710] sm:$0xff] }
 0x1c3   :  { %2589 = vmatpush1.bf16.msra.mxu1 %v5331_v23  ;;  %2752 = vmatmul.mubr.bf16.gmra.mrb[76].mxu0 %v7408_v58  ;;  %v5364_v23 = vcombine.high %v868_v51, %v872_v2  ;;  %v889_v42 = vld [vmem:[#allocation7 + $0x730] sm:$0xff] }
 0x1c4   :  { %2535 = vmatprep.mubr.bf16.mxu1 %v7476_v16  ;;  %2761 = vmatprep.mubr.bf16.mxu0 %v7476_v16  ;;  %v5382_v47 = vcombine.high %v885_v38, %v889_v42  ;;  %v893_v2 = vld [vmem:[#allocation7 + $0x750] sm:$0xff] }
 0x1c5   :  { %2815 = vmatpush1.bf16.msra.mxu0 %v5333_v40  ;;  %2590 = vmatprep.subr.bf16.mxu1 %v5340_v30  ;;  %v876_v40 = vld [vmem:[#allocation7 + $0x6c8] sm:$0xff] }
 0x1c6   :  { %2816 = vmatprep.subr.bf16.mxu0 %v5342_v11  ;;  %v880_v30 = vld [vmem:[#allocation7 + $0x6e8] sm:$0xff]  ;;  %v881_v11 = vld [vmem:[#allocation7 + $0x6f0] sm:$0xff] }
 0x1c7   :  { %2591 = vmatpush1.bf16.msra.mxu1 %v5339_v33  ;;  %v5365_v33 = vcombine.low %v869_v24, %v873_v35  ;;  %v5372_v41 = vcombine.high %v876_v40, %v880_v30  ;;  %v5373_v46 = vcombine.low %v877_v0, %v881_v11  ;;  %v900_v35 = vld [vmem:[#allocation7 + $0x788] sm:$0xff] }
 0x1c8   :  { %2592 = vmatprep.subr.bf16.mxu1 %v5348_v12  ;;  %v888_v12 = vld [vmem:[#allocation7 + $0x728] sm:$0xff] }
 0x1c9   :  { %2817 = vmatpush1.bf16.msra.mxu0 %v5341_v34  ;;  %v5374_v34 = vcombine.high %v877_v0, %v881_v11  ;;  %v5379_v51 = vcombine.low %v884_v26, %v888_v12 }
 0x1ca   :  { %2536 = vmatmul.mubr.bf16.gmra.mrb[80].mxu1 %v7460_v63  ;;  %2818 = vmatprep.subr.bf16.mxu0 %v5350_v13  ;;  %v5371_v13 = vcombine.low %v876_v40, %v880_v30  ;;  %v901_v40 = vld [vmem:[#allocation7 + $0x790] sm:$0xff] }
 0x1cb   :  { %2593 = vmatpush1.bf16.msra.mxu1 %v5347_v43  ;;  %2762 = vmatmul.mubr.bf16.gmra.mrb[80].mxu0 %v7460_v63  ;;  %v5380_v43 = vcombine.high %v884_v26, %v888_v12  ;;  %v905_v30 = vld [vmem:[#allocation7 + $0x7b0] sm:$0xff] }
 0x1cc   :  { %2545 = vmatprep.mubr.bf16.mxu1 %v7520_v36  ;;  %2771 = vmatprep.mubr.bf16.mxu0 %v7520_v36  ;;  %v5398_v11 = vcombine.high %v901_v40, %v905_v30  ;;  %v909_v12 = vld [vmem:[#allocation7 + $0x7d0] sm:$0xff] }
 0x1cd   :  { %2819 = vmatpush1.bf16.msra.mxu0 %v5349_v48  ;;  %2594 = vmatprep.subr.bf16.mxu1 %v5356_v61  ;;  %v892_v48 = vld [vmem:[#allocation7 + $0x748] sm:$0xff] }
 0x1ce   :  { %2820 = vmatprep.subr.bf16.mxu0 %v5358_v22  ;;  %v896_v61 = vld [vmem:[#allocation7 + $0x768] sm:$0xff]  ;;  %v897_v22 = vld [vmem:[#allocation7 + $0x770] sm:$0xff] }
 0x1cf   :  { %2595 = vmatpush1.bf16.msra.mxu1 %v5355_v32  ;;  %v5381_v32 = vcombine.low %v885_v38, %v889_v42  ;;  %v5388_v24 = vcombine.high %v892_v48, %v896_v61  ;;  %v5389_v0 = vcombine.low %v893_v2, %v897_v22  ;;  %v662_v42 = vld [vmem:[#allocation7 + $0x18] sm:$0xff] }
 0x1d0   :  { %2596 = vmatprep.subr.bf16.mxu1 %v5364_v23  ;;  %v904_v23 = vld [vmem:[#allocation7 + $0x7a8] sm:$0xff] }
 0x1d1   :  { %2821 = vmatpush1.bf16.msra.mxu0 %v5357_v39  ;;  %v5390_v39 = vcombine.high %v893_v2, %v897_v22  ;;  %v5395_v26 = vcombine.low %v900_v35, %v904_v23  ;;  %v674_v2 = vld [vmem:[#allocation7 + $0x78] sm:$0xff]  ;;  %v6260_v22 = vld [vmem:[#allocation8 + $0x4] ss:$8 sps:$4 sm:$0xff]  }
 0x1d2   :  { %2546 = vmatmul.mubr.bf16.gmra.mrb[84].mxu1 %v7512_v1  ;;  %2822 = vmatprep.subr.bf16.mxu0 %v5366_v10  ;;  %v5387_v10 = vcombine.low %v892_v48, %v896_v61 }
 0x1d3   :  { %2597 = vmatpush1.bf16.msra.mxu1 %v5363_v27  ;;  %2772 = vmatmul.mubr.bf16.gmra.mrb[84].mxu0 %v7512_v1  ;;  %v5396_v27 = vcombine.high %v900_v35, %v904_v23  ;;  %v678_v35 = vld [vmem:[#allocation7 + $0x98] sm:$0xff] }
 0x1d4   :  { %2555 = vmatprep.mubr.bf16.mxu1 %v7536_v53  ;;  %2781 = vmatprep.mubr.bf16.mxu0 %v7536_v53  ;;  %v682_v23 = vld [vmem:[#allocation7 + $0xb8] sm:$0xff] }
 0x1d5   :  { %2823 = vmatpush1.bf16.msra.mxu0 %v5365_v33  ;;  %2598 = vmatprep.subr.bf16.mxu1 %v5372_v41  ;;  %v908_v33 = vld [vmem:[#allocation7 + $0x7c8] sm:$0xff] }
 0x1d6   :  { %2824 = vmatprep.subr.bf16.mxu0 %v5374_v34  ;;  %v912_v41 = vld [vmem:[#allocation7 + $0x7e8] sm:$0xff]  ;;  %v913_v34 = vld [vmem:[#allocation7 + $0x7f0] sm:$0xff] }
 0x1d7   :  { %2599 = vmatpush1.bf16.msra.mxu1 %v5371_v13  ;;  %v5397_v13 = vcombine.low %v901_v40, %v905_v30  ;;  %v5404_v38 = vcombine.high %v908_v33, %v912_v41  ;;  %v5405_v61 = vcombine.low %v909_v12, %v913_v34  ;;  %v5176_v30 = vcombine.high %v678_v35, %v682_v23 }
 0x1d8   :  { %2600 = vmatprep.subr.bf16.mxu1 %v5380_v43  ;;  %v666_v43 = vld [vmem:[#allocation7 + $0x38] sm:$0xff] }
 0x1d9   :  { %2825 = vmatpush1.bf16.msra.mxu0 %v5373_v46  ;;  %v5406_v46 = vcombine.high %v909_v12, %v913_v34  ;;  %v5160_v48 = vcombine.high %v662_v42, %v666_v43  ;;  %v694_v12 = vld [vmem:[#allocation7 + $0x118] sm:$0xff] }
 0x1da   :  { %2556 = vmatmul.mubr.bf16.gmra.mrb[88].mxu1 %v7532_v59  ;;  %2826 = vmatprep.subr.bf16.mxu0 %v5382_v47  ;;  %v5403_v47 = vcombine.low %v908_v33, %v912_v41  ;;  %v6266_v33 = vld [vmem:[#allocation8 + $0x24] ss:$8 sps:$4 sm:$0xff]   ;;  %v5175_v41 = vcombine.low %v678_v35, %v682_v23  ;;  %v698_v34 = vld [vmem:[#allocation7 + $0x138] sm:$0xff] }
 0x1db   :  { %2601 = vmatpush1.bf16.msra.mxu1 %v5379_v51  ;;  %2782 = vmatmul.mubr.bf16.gmra.mrb[88].mxu0 %v7532_v59  ;;  %v670_v51 = vld [vmem:[#allocation7 + $0x58] sm:$0xff] }
 0x1dc   :  { %2565 = vmatprep.mubr.bf16.mxu1 %v7548_v45  ;;  %2791 = vmatprep.mubr.bf16.mxu0 %v7548_v45  ;;  %v5167_v40 = vcombine.low %v670_v51, %v674_v2  ;;  %v6275_v35 = vld [vmem:[#allocation8 + $0x54] ss:$8 sps:$4 sm:$0xff]  }
 0x1dd   :  { %2827 = vmatpush1.bf16.msra.mxu0 %v5381_v32  ;;  %2602 = vmatprep.subr.bf16.mxu1 %v5388_v24  ;;  %v5159_v32 = vcombine.low %v662_v42, %v666_v43  ;;  %v5168_v24 = vcombine.high %v670_v51, %v674_v2  ;;  %v5192_v43 = vcombine.high %v694_v12, %v698_v34 }
 0x1de   :  { %2828 = vmatprep.subr.bf16.mxu0 %v5390_v39  ;;  %v6258_v39 = vld [vmem:[#allocation8] ss:$8 sps:$4 sm:$0xff]   ;;  %v5191_v51 = vcombine.low %v694_v12, %v698_v34  ;;  %v6281_v12 = vld [vmem:[#allocation8 + $0x74] ss:$8 sps:$4 sm:$0xff]  }
 0x1df   :  { %2603 = vmatpush1.bf16.msra.mxu1 %v5387_v10  ;;  %v6263_v10 = vld [vmem:[#allocation8 + $0x14] ss:$8 sps:$4 sm:$0xff]  }
 0x1e0   :  { %2604 = vmatprep.subr.bf16.mxu1 %v5396_v27  ;;  %v686_v27 = vld [vmem:[#allocation7 + $0xd8] sm:$0xff] }
 0x1e1   :  { %2829 = vmatpush1.bf16.msra.mxu0 %v5389_v0  ;;  %v690_v0 = vld [vmem:[#allocation7 + $0xf8] sm:$0xff] }
 0x1e2   :  { %2566 = vmatmul.mubr.bf16.gmra.mrb[92].mxu1 %v7544_v29  ;;  %2830 = vmatprep.subr.bf16.mxu0 %v5398_v11  ;;  %v6261_v11 = vld [vmem:[#allocation8 + $0x10] ss:$8 sps:$4 sm:$0xff]   ;;  %v5183_v42 = vcombine.low %v686_v27, %v690_v0 }
 0x1e3   :  { %2605 = vmatpush1.bf16.msra.mxu1 %v5395_v26  ;;  %2792 = vmatmul.mubr.bf16.gmra.mrb[92].mxu0 %v7544_v29  ;;  %v5184_v26 = vcombine.high %v686_v27, %v690_v0  ;;  %v6278_v27 = vld [vmem:[#allocation8 + $0x64] ss:$8 sps:$4 sm:$0xff]  }
 0x1e4   :  { %2608 = vmatprep.mubr.bf16.mxu1 %v7267_v28  ;;  %2834 = vmatprep.mubr.bf16.mxu0 %v7267_v28 }
 0x1e5   :  { %2831 = vmatpush1.bf16.msra.mxu0 %v5397_v13  ;;  %2606 = vmatprep.subr.bf16.mxu1 %v5404_v38  ;;  %v6264_v13 = vld [vmem:[#allocation8 + $0x20] ss:$8 sps:$4 sm:$0xff]   ;;  %v6269_v38 = vld [vmem:[#allocation8 + $0x34] ss:$8 sps:$4 sm:$0xff]  }
 0x1e6   :  { %2832 = vmatprep.subr.bf16.mxu0 %v5406_v46  ;;  %v702_v46 = vld [vmem:[#allocation7 + $0x158] sm:$0xff] }
 0x1e7   :  { %2607 = vmatpush1.bf16.msra.mxu1 %v5403_v47  ;;  %v706_v47 = vld [vmem:[#allocation7 + $0x178] sm:$0xff] }
 0x1e8   :  { %2915 = vmatprep.subr.bf16.mxu1 %v5160_v48  ;;  %v6267_v48 = vld [vmem:[#allocation8 + $0x30] ss:$8 sps:$4 sm:$0xff]   ;;  %v5200_v2 = vcombine.high %v702_v46, %v706_v47  ;;  %v5199_v23 = vcombine.low %v702_v46, %v706_v47  ;;  %v6284_v46 = vld [vmem:[#allocation8 + $0x84] ss:$8 sps:$4 sm:$0xff]  }
 0x1e9   :  { %2833 = vmatpush1.bf16.msra.mxu0 %v5405_v61  ;;  %v6272_v61 = vld [vmem:[#allocation8 + $0x44] ss:$8 sps:$4 sm:$0xff]  }
 0x1ea   :  { %2609 = vmatmul.mubr.bf16.vlgmr.msra.gmra.mrb[64].mxu1 %v7257_v20  ;;  %4113 = vmatprep.subr.bf16.mxu0 %v6260_v22  ;;  %v710_v22 = vld [vmem:[#allocation7 + $0x198] sm:$0xff] }
 0x1eb   :  { %2916 = vmatpush1.bf16.msra.mxu1 %v5159_v32  ;;  %2618 = vmatprep.mubr.bf16.mxu1 %v7325_v18  ;;  %v714_v32 = vld [vmem:[#allocation7 + $0x1b8] sm:$0xff] }
 0x1ec   :  { %2835 = vmatmul.mubr.bf16.vlgmr.msra.gmra.mrb[64].mxu0 %v7257_v20  ;;  %2917 = vmatprep.subr.bf16.mxu1 %v5168_v24  ;;  %v6270_v24 = vld [vmem:[#allocation8 + $0x40] ss:$8 sps:$4 sm:$0xff]   ;;  %v5207_v0 = vcombine.low %v710_v22, %v714_v32 }
 0x1ed   :  { %2844 = vmatprep.mubr.bf16.mxu0 %v7325_v18  ;;  %4114 = vmatpush1.bf16.msra.mxu0 %v6258_v39  ;;  %v5208_v39 = vcombine.high %v710_v22, %v714_v32  ;;  %v6287_v22 = vld [vmem:[#allocation8 + $0x94] ss:$8 sps:$4 sm:$0xff]  }
 0x1ee   :  { %4115 = vmatprep.subr.bf16.mxu0 %v6263_v10  ;;  %v718_v10 = vld [vmem:[#allocation7 + $0x1d8] sm:$0xff] }
 0x1ef   :  { %2918 = vmatpush1.bf16.msra.mxu1 %v5167_v40  ;;  %v722_v40 = vld [vmem:[#allocation7 + $0x1f8] sm:$0xff] }
 0x1f0   :  { %2919 = vmatprep.subr.bf16.mxu1 %v5176_v30  ;;  %v6273_v30 = vld [vmem:[#allocation8 + $0x50] ss:$8 sps:$4 sm:$0xff]   ;;  %v5215_v34 = vcombine.low %v718_v10, %v722_v40 }
 0x1f1   :  { %4116 = vmatpush1.bf16.msra.mxu0 %v6261_v11  ;;  %v5216_v11 = vcombine.high %v718_v10, %v722_v40  ;;  %v6290_v10 = vld [vmem:[#allocation8 + $0xa4] ss:$8 sps:$4 sm:$0xff]  }
 0x1f2   :  { %2619 = vmatmul.mubr.bf16.gmra.mrb[68].mxu1 %v7313_v56  ;;  %4117 = vmatprep.subr.bf16.mxu0 %v6266_v33  ;;  %v726_v33 = vld [vmem:[#allocation7 + $0x218] sm:$0xff] }
 0x1f3   :  { %2920 = vmatpush1.bf16.msra.mxu1 %v5175_v41  ;;  %2628 = vmatprep.mubr.bf16.mxu1 %v7377_v3  ;;  %v730_v41 = vld [vmem:[#allocation7 + $0x238] sm:$0xff] }
 0x1f4   :  { %2845 = vmatmul.mubr.bf16.gmra.mrb[68].mxu0 %v7313_v56  ;;  %2921 = vmatprep.subr.bf16.mxu1 %v5184_v26  ;;  %v6276_v26 = vld [vmem:[#allocation8 + $0x60] ss:$8 sps:$4 sm:$0xff]   ;;  %v5223_v47 = vcombine.low %v726_v33, %v730_v41 }
 0x1f5   :  { %2854 = vmatprep.mubr.bf16.mxu0 %v7377_v3  ;;  %4118 = vmatpush1.bf16.msra.mxu0 %v6264_v13  ;;  %v5224_v13 = vcombine.high %v726_v33, %v730_v41  ;;  %v6293_v33 = vld [vmem:[#allocation8 + $0xb4] ss:$8 sps:$4 sm:$0xff]  }
 0x1f6   :  { %4119 = vmatprep.subr.bf16.mxu0 %v6269_v38  ;;  %v734_v38 = vld [vmem:[#allocation7 + $0x258] sm:$0xff] }
 0x1f7   :  { %2922 = vmatpush1.bf16.msra.mxu1 %v5183_v42  ;;  %v738_v42 = vld [vmem:[#allocation7 + $0x278] sm:$0xff] }
 0x1f8   :  { %2923 = vmatprep.subr.bf16.mxu1 %v5192_v43  ;;  %v6279_v43 = vld [vmem:[#allocation8 + $0x70] ss:$8 sps:$4 sm:$0xff]   ;;  %v5231_v32 = vcombine.low %v734_v38, %v738_v42 }
 0x1f9   :  { %4120 = vmatpush1.bf16.msra.mxu0 %v6267_v48  ;;  %v5232_v48 = vcombine.high %v734_v38, %v738_v42  ;;  %v6296_v38 = vld [vmem:[#allocation8 + $0xc4] ss:$8 sps:$4 sm:$0xff]  }
 0x1fa   :  { %2629 = vmatmul.mubr.bf16.gmra.mrb[72].mxu1 %v7365_v50  ;;  %4121 = vmatprep.subr.bf16.mxu0 %v6272_v61  ;;  %v742_v61 = vld [vmem:[#allocation7 + $0x298] sm:$0xff] }
 0x1fb   :  { %2924 = vmatpush1.bf16.msra.mxu1 %v5191_v51  ;;  %2638 = vmatprep.mubr.bf16.mxu1 %v7429_v15  ;;  %v746_v51 = vld [vmem:[#allocation7 + $0x2b8] sm:$0xff] }
 0x1fc   :  { %2855 = vmatmul.mubr.bf16.gmra.mrb[72].mxu0 %v7365_v50  ;;  %2925 = vmatprep.subr.bf16.mxu1 %v5200_v2  ;;  %v6282_v2 = vld [vmem:[#allocation8 + $0x80] ss:$8 sps:$4 sm:$0xff]   ;;  %v5239_v40 = vcombine.low %v742_v61, %v746_v51 }
 0x1fd   :  { %2864 = vmatprep.mubr.bf16.mxu0 %v7429_v15  ;;  %4122 = vmatpush1.bf16.msra.mxu0 %v6270_v24  ;;  %v5240_v24 = vcombine.high %v742_v61, %v746_v51  ;;  %v6299_v61 = vld [vmem:[#allocation8 + $0xd4] ss:$8 sps:$4 sm:$0xff]  }
 0x1fe   :  { %4123 = vmatprep.subr.bf16.mxu0 %v6275_v35  ;;  %v750_v35 = vld [vmem:[#allocation7 + $0x2d8] sm:$0xff] }
 0x1ff   :  { %2926 = vmatpush1.bf16.msra.mxu1 %v5199_v23  ;;  %v754_v23 = vld [vmem:[#allocation7 + $0x2f8] sm:$0xff] }
 0x200   :  { %2927 = vmatprep.subr.bf16.mxu1 %v5208_v39  ;;  %v6285_v39 = vld [vmem:[#allocation8 + $0x90] ss:$8 sps:$4 sm:$0xff]   ;;  %v5247_v41 = vcombine.low %v750_v35, %v754_v23 }
 0x201   :  { %4124 = vmatpush1.bf16.msra.mxu0 %v6273_v30  ;;  %v5248_v30 = vcombine.high %v750_v35, %v754_v23  ;;  %v6302_v35 = vld [vmem:[#allocation8 + $0xe4] ss:$8 sps:$4 sm:$0xff]  }
 0x202   :  { %2639 = vmatmul.mubr.bf16.gmra.mrb[76].mxu1 %v7417_v60  ;;  %4125 = vmatprep.subr.bf16.mxu0 %v6278_v27  ;;  %v758_v27 = vld [vmem:[#allocation7 + $0x318] sm:$0xff] }
 0x203   :  { %2928 = vmatpush1.bf16.msra.mxu1 %v5207_v0  ;;  %2648 = vmatprep.mubr.bf16.mxu1 %v7481_v19  ;;  %v762_v0 = vld [vmem:[#allocation7 + $0x338] sm:$0xff] }
 0x204   :  { %2865 = vmatmul.mubr.bf16.gmra.mrb[76].mxu0 %v7417_v60  ;;  %2929 = vmatprep.subr.bf16.mxu1 %v5216_v11  ;;  %v6288_v11 = vld [vmem:[#allocation8 + $0xa0] ss:$8 sps:$4 sm:$0xff]   ;;  %v5255_v42 = vcombine.low %v758_v27, %v762_v0 }
 0x205   :  { %2874 = vmatprep.mubr.bf16.mxu0 %v7481_v19  ;;  %4126 = vmatpush1.bf16.msra.mxu0 %v6276_v26  ;;  %v5256_v26 = vcombine.high %v758_v27, %v762_v0  ;;  %v6305_v27 = vld [vmem:[#allocation8 + $0xf4] ss:$8 sps:$4 sm:$0xff]  }
 0x206   :  { %4127 = vmatprep.subr.bf16.mxu0 %v6281_v12  ;;  %v766_v12 = vld [vmem:[#allocation7 + $0x358] sm:$0xff] }
 0x207   :  { %2930 = vmatpush1.bf16.msra.mxu1 %v5215_v34  ;;  %v770_v34 = vld [vmem:[#allocation7 + $0x378] sm:$0xff] }
 0x208   :  { %2931 = vmatprep.subr.bf16.mxu1 %v5224_v13  ;;  %v6291_v13 = vld [vmem:[#allocation8 + $0xb0] ss:$8 sps:$4 sm:$0xff]   ;;  %v5263_v51 = vcombine.low %v766_v12, %v770_v34 }
 0x209   :  { %4128 = vmatpush1.bf16.msra.mxu0 %v6279_v43  ;;  %v5264_v43 = vcombine.high %v766_v12, %v770_v34  ;;  %v6308_v12 = vld [vmem:[#allocation8 + $0x104] ss:$8 sps:$4 sm:$0xff]  }
 0x20a   :  { %2649 = vmatmul.mubr.bf16.gmra.mrb[80].mxu1 %v7469_v52  ;;  %4129 = vmatprep.subr.bf16.mxu0 %v6284_v46  ;;  %v774_v46 = vld [vmem:[#allocation7 + $0x398] sm:$0xff] }
 0x20b   :  { %2932 = vmatpush1.bf16.msra.mxu1 %v5223_v47  ;;  %2658 = vmatprep.mubr.bf16.mxu1 %v7525_v31  ;;  %v778_v47 = vld [vmem:[#allocation7 + $0x3b8] sm:$0xff] }
 0x20c   :  { %2875 = vmatmul.mubr.bf16.gmra.mrb[80].mxu0 %v7469_v52  ;;  %2933 = vmatprep.subr.bf16.mxu1 %v5232_v48  ;;  %v6294_v48 = vld [vmem:[#allocation8 + $0xc0] ss:$8 sps:$4 sm:$0xff]   ;;  %v5271_v23 = vcombine.low %v774_v46, %v778_v47 }
 0x20d   :  { %2884 = vmatprep.mubr.bf16.mxu0 %v7525_v31  ;;  %4130 = vmatpush1.bf16.msra.mxu0 %v6282_v2  ;;  %v5272_v2 = vcombine.high %v774_v46, %v778_v47  ;;  %v814_v46 = vld [vmem:[#allocation7 + $0x4d8] sm:$0xff] }
 0x20e   :  { %4131 = vmatprep.subr.bf16.mxu0 %v6287_v22  ;;  %v782_v22 = vld [vmem:[#allocation7 + $0x3d8] sm:$0xff] }
 0x20f   :  { %2934 = vmatpush1.bf16.msra.mxu1 %v5231_v32  ;;  %v786_v32 = vld [vmem:[#allocation7 + $0x3f8] sm:$0xff] }
 0x210   :  { %2935 = vmatprep.subr.bf16.mxu1 %v5240_v24  ;;  %v6297_v24 = vld [vmem:[#allocation8 + $0xd0] ss:$8 sps:$4 sm:$0xff]   ;;  %v5279_v0 = vcombine.low %v782_v22, %v786_v32 }
 0x211   :  { %4132 = vmatpush1.bf16.msra.mxu0 %v6285_v39  ;;  %v5280_v39 = vcombine.high %v782_v22, %v786_v32  ;;  %v818_v47 = vld [vmem:[#allocation7 + $0x4f8] sm:$0xff] }
 0x212   :  { %2659 = vmatmul.mubr.bf16.gmra.mrb[84].mxu1 %v7517_v21  ;;  %4133 = vmatprep.subr.bf16.mxu0 %v6290_v10  ;;  %v790_v10 = vld [vmem:[#allocation7 + $0x418] sm:$0xff] }
 0x213   :  { %2936 = vmatpush1.bf16.msra.mxu1 %v5239_v40  ;;  %2668 = vmatprep.mubr.bf16.mxu1 %v7538_v17  ;;  %v794_v40 = vld [vmem:[#allocation7 + $0x438] sm:$0xff] }
 0x214   :  { %2885 = vmatmul.mubr.bf16.gmra.mrb[84].mxu0 %v7517_v21  ;;  %2937 = vmatprep.subr.bf16.mxu1 %v5248_v30  ;;  %v6300_v30 = vld [vmem:[#allocation8 + $0xe0] ss:$8 sps:$4 sm:$0xff]   ;;  %v5287_v34 = vcombine.low %v790_v10, %v794_v40  ;;  %v834_v32 = vld [vmem:[#allocation7 + $0x578] sm:$0xff] }
 0x215   :  { %2894 = vmatprep.mubr.bf16.mxu0 %v7538_v17  ;;  %4134 = vmatpush1.bf16.msra.mxu0 %v6288_v11  ;;  %v5288_v11 = vcombine.high %v790_v10, %v794_v40  ;;  %v842_v10 = vld [vmem:[#allocation7 + $0x5b8] sm:$0xff] }
 0x216   :  { %4135 = vmatprep.subr.bf16.mxu0 %v6293_v33  ;;  %v798_v33 = vld [vmem:[#allocation7 + $0x458] sm:$0xff] }
 0x217   :  { %2938 = vmatpush1.bf16.msra.mxu1 %v5247_v41  ;;  %v802_v41 = vld [vmem:[#allocation7 + $0x478] sm:$0xff] }
 0x218   :  { %2939 = vmatprep.subr.bf16.mxu1 %v5256_v26  ;;  %v6303_v26 = vld [vmem:[#allocation8 + $0xf0] ss:$8 sps:$4 sm:$0xff]  }
 0x219   :  { %4136 = vmatpush1.bf16.msra.mxu0 %v6291_v13  ;;  %v5296_v13 = vcombine.high %v798_v33, %v802_v41 }
 0x21a   :  { %2669 = vmatmul.mubr.bf16.gmra.mrb[88].mxu1 %v7534_v49  ;;  %4137 = vmatprep.subr.bf16.mxu0 %v6296_v38  ;;  %v806_v38 = vld [vmem:[#allocation7 + $0x498] sm:$0xff] }
 0x21b   :  { %2940 = vmatpush1.bf16.msra.mxu1 %v5255_v42  ;;  %2678 = vmatprep.mubr.bf16.mxu1 %v7550_v57  ;;  %v810_v42 = vld [vmem:[#allocation7 + $0x4b8] sm:$0xff] }
 0x21c   :  { %2895 = vmatmul.mubr.bf16.gmra.mrb[88].mxu0 %v7534_v49  ;;  %2941 = vmatprep.subr.bf16.mxu1 %v5264_v43  ;;  %v5304_v43 = vcombine.high %v806_v38, %v810_v42 }
 0x21d   :  { %2904 = vmatprep.mubr.bf16.mxu0 %v7550_v57  ;;  %4138 = vmatpush1.bf16.msra.mxu0 %v6294_v48  ;;  %v5303_v48 = vcombine.low %v806_v38, %v810_v42 }
 0x21e   :  { %4139 = vmatprep.subr.bf16.mxu0 %v6299_v61  ;;  %v5312_v61 = vcombine.high %v814_v46, %v818_v47 }
 0x21f   :  { %2942 = vmatpush1.bf16.msra.mxu1 %v5263_v51  ;;  %v822_v51 = vld [vmem:[#allocation7 + $0x518] sm:$0xff] }
 0x220   :  { %2943 = vmatprep.subr.bf16.mxu1 %v5272_v2  ;;  %v826_v2 = vld [vmem:[#allocation7 + $0x538] sm:$0xff] }
 0x221   :  { %4140 = vmatpush1.bf16.msra.mxu0 %v6297_v24  ;;  %v5320_v22 = vcombine.high %v822_v51, %v826_v2  ;;  %v5319_v24 = vcombine.low %v822_v51, %v826_v2  ;;  %v858_v51 = vld [vmem:[#allocation7 + $0x638] sm:$0xff] }
 0x222   :  { %2679 = vmatmul.mubr.bf16.gmra.mrb[92].mxu1 %v7546_v37  ;;  %4141 = vmatprep.subr.bf16.mxu0 %v6302_v35  ;;  %v7628_v35 = vld [vmem:[%s8474_s4] sm:$0xff] }
 0x223   :  { %2944 = vmatpush1.bf16.msra.mxu1 %v5271_v23  ;;  %2947 = vmatprep.mubr.bf16.mxu1 %v7264_v25  ;;  %v5295_v25 = vcombine.low %v798_v33, %v802_v41  ;;  %v7638_v40 = vrot.slane %v7628_v35, %v7213_v8 }
 0x224   :  { %2905 = vmatmul.mubr.bf16.gmra.mrb[92].mxu0 %v7546_v37  ;;  %2945 = vmatprep.subr.bf16.mxu1 %v5280_v39  ;;  %v838_v39 = vld [vmem:[#allocation7 + $0x598] sm:$0xff] }
 0x225   :  { %4142 = vmatpush1.bf16.msra.mxu0 %v6300_v30  ;;  %v5336_v30 = vcombine.high %v838_v39, %v842_v10 }
 0x226   :  { %4143 = vmatprep.subr.bf16.mxu0 %v6305_v27 }
 0x227   :  { %2946 = vmatpush1.bf16.msra.mxu1 %v5279_v0  ;;  %v846_v0 = vld [vmem:[#allocation7 + $0x5d8] sm:$0xff] }
 0x228   :  { %3028 = vmatprep.subr.bf16.mxu1 %v5288_v11  ;;  %v850_v11 = vld [vmem:[#allocation7 + $0x5f8] sm:$0xff] }
 0x229   :  { %4144 = vmatpush1.bf16.msra.mxu0 %v6303_v26 }
 0x22a   :  { %2948 = vmatmul.mubr.bf16.vlgmr.msra.gmra.mrb[96].mxu1 %v7250_v7  ;;  %4226 = vmatprep.subr.bf16.mxu0 %v6308_v12  ;;  %v5311_v7 = vcombine.low %v814_v46, %v818_v47 }
 0x22b   :  { %3029 = vmatpush1.bf16.msra.mxu1 %v5287_v34  ;;  %2957 = vmatprep.mubr.bf16.mxu1 %v7320_v14  ;;  %v830_v14 = vld [vmem:[#allocation7 + $0x558] sm:$0xff] }
 0x22c   :  { %3030 = vmatprep.subr.bf16.mxu1 %v5296_v13  ;;  %v5328_v23 = vcombine.high %v830_v14, %v834_v32 }
 0x22f   :  { %3031 = vmatpush1.bf16.msra.mxu1 %v5295_v25 }
 0x230   :  { %3032 = vmatprep.subr.bf16.mxu1 %v5304_v43  ;;  %v5344_v43 = vcombine.high %v846_v0, %v850_v11 }
 0x232   :  { %2958 = vmatmul.mubr.bf16.gmra.mrb[100].mxu1 %v7304_v62  ;;  %v7633_v62 = vrot.slane %v7628_v35, %v7206_v5 }
 0x233   :  { %3033 = vmatpush1.bf16.msra.mxu1 %v5303_v48  ;;  %2967 = vmatprep.mubr.bf16.mxu1 %v7372_v55  ;;  %v5327_v55 = vcombine.low %v830_v14, %v834_v32 }
 0x234   :  { %3034 = vmatprep.subr.bf16.mxu1 %v5312_v61  ;;  %v854_v61 = vld [vmem:[#allocation7 + $0x618] sm:$0xff] }
 0x235   :  { %v5352_v14 = vcombine.high %v854_v61, %v858_v51 }
 0x237   :  { %3035 = vmatpush1.bf16.msra.mxu1 %v5311_v7 }
 0x238   :  { %3036 = vmatprep.subr.bf16.mxu1 %v5320_v22  ;;  %v5343_v22 = vcombine.low %v846_v0, %v850_v11 }
 0x23a   :  { %2968 = vmatmul.mubr.bf16.gmra.mrb[104].mxu1 %v7356_v44 }
 0x23b   :  { %3037 = vmatpush1.bf16.msra.mxu1 %v5319_v24  ;;  %2977 = vmatprep.mubr.bf16.mxu1 %v7424_v54  ;;  %v2271_v27 = vpop.f32.mrb[32].mxu1  ;;  %v5335_v54 = vcombine.low %v838_v39, %v842_v10  ;;  %v862_v24 = vld [vmem:[#allocation7 + $0x658] sm:$0xff] }
 0x23c   :  { %3038 = vmatprep.subr.bf16.mxu1 %v5328_v23  ;;  %v2272_v33 = vadd.f32 %v2271_v27, %v7633_v62  ;;  %v2273_v44 = vpop.f32.mrb[33].mxu1  ;;  %v866_v23 = vld [vmem:[#allocation7 + $0x678] sm:$0xff] }
 0x23d   :  { %v2384_v41 = vpop.f32.mrb[32].mxu0  ;;  %v2274_v26 = vadd.f32 %v2273_v44, %v7638_v40  ;;  %v2275_v12 = vpop.f32.mrb[34].mxu1 }
 0x23e   :  { %v2386_v34 = vpop.f32.mrb[33].mxu0  ;;  %v2276_v13 = vadd.f32 %v2275_v12, %v7633_v62  ;;  %v2385_v38 = vadd.f32 %v2384_v41, %v2272_v33  ;;  %v2277_v42 = vpop.f32.mrb[35].mxu1  ;;  %v5351_v33 = vcombine.low %v854_v61, %v858_v51  ;;  %v5360_v41 = vcombine.high %v862_v24, %v866_v23  ;;  %v878_v61 = vld [vmem:[#allocation7 + $0x6d8] sm:$0xff] }
 0x23f   :  { %3039 = vmatpush1.bf16.msra.mxu1 %v5327_v55  ;;  %v2388_v25 = vpop.f32.mrb[34].mxu0  ;;  %v2278_v46 = vadd.f32 %v2277_v42, %v7638_v40  ;;  %v2387_v47 = vadd.f32 %v2386_v34, %v2274_v26  ;;  %v882_v51 = vld [vmem:[#allocation7 + $0x6f8] sm:$0xff] }
 0x240   :  { %3040 = vmatprep.subr.bf16.mxu1 %v5336_v30  ;;  %v2390_v48 = vpop.f32.mrb[35].mxu0  ;;  %6578 = vtanh.f32 %v2385_v38  ;;  %v2389_v2 = vadd.f32 %v2388_v25, %v2276_v13  ;;  %v874_v13 = vld [vmem:[#allocation7 + $0x6b8] sm:$0xff]  ;;  %v5359_v25 = vcombine.low %v862_v24, %v866_v23 }
 0x241   :  { %6580 = vtanh.f32 %v2387_v47  ;;  %v2391_v7 = vadd.f32 %v2390_v48, %v2278_v46 }
 0x242   :  { %2978 = vmatmul.mubr.bf16.gmra.mrb[108].mxu1 %v7408_v58  ;;  %6582 = vtanh.f32 %v2389_v2 }
 0x243   :  { %3041 = vmatpush1.bf16.msra.mxu1 %v5335_v54  ;;  %2987 = vmatprep.mubr.bf16.mxu1 %v7476_v16  ;;  %6584 = vtanh.f32 %v2391_v7  ;;  %v870_v54 = vld [vmem:[#allocation7 + $0x698] sm:$0xff] }
 0x244   :  { %3042 = vmatprep.subr.bf16.mxu1 %v5344_v43  ;;  %v2281_v32 = vpop.f32.mrb[36].mxu1  ;;  %v5368_v46 = vcombine.high %v870_v54, %v874_v13  ;;  %v5367_v23 = vcombine.low %v870_v54, %v874_v13  ;;  %v5375_v13 = vcombine.low %v878_v61, %v882_v51 }
 0x245   :  { %v2282_v39 = vadd.f32 %v2281_v32, %v7633_v62  ;;  %v2283_v10 = vpop.f32.mrb[37].mxu1 }
 0x246   :  { %v2394_v55 = vpop.f32.mrb[36].mxu0  ;;  %v2284_v30 = vadd.f32 %v2283_v10, %v7638_v40  ;;  %v2285_v58 = vpop.f32.mrb[38].mxu1 }
 0x247   :  { %3043 = vmatpush1.bf16.msra.mxu1 %v5343_v22  ;;  %v2396_v27 = vpop.f32.mrb[37].mxu0  ;;  %v2286_v16 = vadd.f32 %v2285_v58, %v7633_v62  ;;  %v2395_v0 = vadd.f32 %v2394_v55, %v2282_v39  ;;  %v2287_v11 = vpop.f32.mrb[39].mxu1 }
 0x248   :  { %v2398_v44 = vpop.f32.mrb[38].mxu0  ;;  %3044 = vmatprep.subr.bf16.mxu1 %v5352_v14  ;;  %v2288_v26 = vadd.f32 %v2287_v11, %v7638_v40  ;;  %v2397_v12 = vadd.f32 %v2396_v27, %v2284_v30 }
 0x249   :  { %v2400_v34 = vpop.f32.mrb[39].mxu0  ;;  %6586 = vtanh.f32 %v2395_v0  ;;  %v2399_v38 = vadd.f32 %v2398_v44, %v2286_v16  ;;  %v886_v44 = vld [vmem:[#allocation7 + $0x718] sm:$0xff] }
 0x24a   :  { %2988 = vmatmul.mubr.bf16.gmra.mrb[112].mxu1 %v7460_v63  ;;  %6588 = vtanh.f32 %v2397_v12  ;;  %v2401_v42 = vadd.f32 %v2400_v34, %v2288_v26  ;;  %v6579_v43 = vpop.eup %6578  ;;  %v6306_v26 = vld [vmem:[#allocation8 + $0x100] ss:$8 sps:$4 sm:$0xff]   ;;  %v6311_v34 = vld [vmem:[#allocation8 + $0x114] ss:$8 sps:$4 sm:$0xff]  }
 0x24b   :  { %3045 = vmatpush1.bf16.msra.mxu1 %v5351_v33  ;;  %2997 = vmatprep.mubr.bf16.mxu1 %v7520_v36  ;;  %6590 = vtanh.f32 %v2399_v38  ;;  %v6581_v47 = vpop.eup %6580  ;;  %v5376_v33 = vcombine.high %v878_v61, %v882_v51 }
 0x24c   :  { %3046 = vmatprep.subr.bf16.mxu1 %v5360_v41  ;;  %6592 = vtanh.f32 %v2401_v42  ;;  %v6583_v2 = vpop.eup %6582  ;;  %v890_v41 = vld [vmem:[#allocation7 + $0x738] sm:$0xff] }
 0x24d   :  { %v2291_v48 = vpop.f32.mrb[40].mxu1  ;;  %v6585_v14 = vpop.eup %6584  ;;  %v3269_v39 = vpack.c.bf16 %v6583_v2, %v6579_v43  ;;  %v5384_v42 = vcombine.high %v886_v44, %v890_v41 }
 0x24e   :  { %v2292_v7 = vadd.f32 %v2291_v48, %v7633_v62  ;;  %v2293_v22 = vpop.f32.mrb[41].mxu1  ;;  %v2404_v63 = vpop.f32.mrb[40].mxu0  ;;  %v3270_v27 = vpack.c.bf16 %v6585_v14, %v6581_v47  ;;  %v898_v47 = vld [vmem:[#allocation7 + $0x778] sm:$0xff]  ;;  %v5383_v14 = vcombine.low %v886_v44, %v890_v41  ;;  %v6312_v44 = vld [vmem:[#allocation8 + $0x120] ss:$8 sps:$4 sm:$0xff]  }
 0x24f   :  { %v2294_v32 = vadd.f32 %v2293_v22, %v7638_v40  ;;  %3047 = vmatpush1.bf16.msra.mxu1 %v5359_v25  ;;  %v2295_v36 = vpop.f32.mrb[42].mxu1  ;;  %v2406_v24 = vpop.f32.mrb[41].mxu0 }
 0x250   :  { %v2296_v10 = vadd.f32 %v2295_v36, %v7633_v62  ;;  %v2405_v55 = vadd.f32 %v2404_v63, %v2292_v7  ;;  %v2297_v30 = vpop.f32.mrb[43].mxu1  ;;  %v2408_v58 = vpop.f32.mrb[42].mxu0  ;;  %3048 = vmatprep.subr.bf16.mxu1 %v5368_v46  ;;  %4145 = vmatprep.mubr.bf16.mxu0 %v3270_v27  ;;  %v894_v46 = vld [vmem:[#allocation7 + $0x758] sm:$0xff] }
 0x251   :  { %v2298_v16 = vadd.f32 %v2297_v30, %v7638_v40  ;;  %v2407_v0 = vadd.f32 %v2406_v24, %v2294_v32  ;;  %v2410_v11 = vpop.f32.mrb[43].mxu0  ;;  %4146 = vmatmul.mubr.bf16.vlgmr.msra.gmra.mrb[96].mxu0 %v3269_v39 }
 0x252   :  { %6594 = vtanh.f32 %v2405_v55  ;;  %v2409_v12 = vadd.f32 %v2408_v58, %v2296_v10  ;;  %2998 = vmatmul.mubr.bf16.gmra.mrb[116].mxu1 %v7512_v1  ;;  %4227 = vmatpush1.bf16.msra.mxu0 %v6306_v26  ;;  %v6309_v1 = vld [vmem:[#allocation8 + $0x110] ss:$8 sps:$4 sm:$0xff]   ;;  %v5392_v55 = vcombine.high %v894_v46, %v898_v47  ;;  %v5391_v26 = vcombine.low %v894_v46, %v898_v47 }
 0x253   :  { %6596 = vtanh.f32 %v2407_v0  ;;  %v2411_v54 = vadd.f32 %v2410_v11, %v2298_v16  ;;  %3049 = vmatpush1.bf16.msra.mxu1 %v5367_v23  ;;  %3007 = vmatprep.mubr.bf16.mxu1 %v7536_v53  ;;  %v6587_v38 = vpop.eup %6586  ;;  %v906_v16 = vld [vmem:[#allocation7 + $0x7b8] sm:$0xff]  ;;  %v6314_v0 = vld [vmem:[#allocation8 + $0x124] ss:$8 sps:$4 sm:$0xff]  }
 0x254   :  { %6598 = vtanh.f32 %v2409_v12  ;;  %3050 = vmatprep.subr.bf16.mxu1 %v5376_v33  ;;  %v6589_v25 = vpop.eup %6588  ;;  %4228 = vmatprep.subr.bf16.mxu0 %v6311_v34  ;;  %v902_v33 = vld [vmem:[#allocation7 + $0x798] sm:$0xff] }
 0x255   :  { %6600 = vtanh.f32 %v2411_v54  ;;  %v2301_v43 = vpop.f32.mrb[44].mxu1  ;;  %v6591_v48 = vpop.eup %6590  ;;  %v6317_v12 = vld [vmem:[#allocation8 + $0x134] ss:$8 sps:$4 sm:$0xff]   ;;  %v5400_v54 = vcombine.high %v902_v33, %v906_v16 }
 0x256   :  { %v2302_v2 = vadd.f32 %v2301_v43, %v7633_v62  ;;  %v2303_v7 = vpop.f32.mrb[45].mxu1  ;;  %v2414_v22 = vpop.f32.mrb[44].mxu0  ;;  %v3277_v32 = vpack.c.bf16 %v6591_v48, %v6587_v38  ;;  %4229 = vmatpush1.bf16.msra.mxu0 %v6309_v1 }
 0x257   :  { %v6593_v53 = vpop.eup %6592  ;;  %v2304_v61 = vadd.f32 %v2303_v7, %v7638_v40  ;;  %3051 = vmatpush1.bf16.msra.mxu1 %v5375_v13  ;;  %v2305_v51 = vpop.f32.mrb[46].mxu1  ;;  %4230 = vmatprep.subr.bf16.mxu0 %v6314_v0  ;;  %v5399_v7 = vcombine.low %v902_v33, %v906_v16  ;;  %v6318_v0 = vld [vmem:[#allocation8 + $0x140] ss:$8 sps:$4 sm:$0xff]  }
 0x258   :  { %v2416_v63 = vpop.f32.mrb[45].mxu0  ;;  %v2306_v36 = vadd.f32 %v2305_v51, %v7633_v62  ;;  %v2415_v24 = vadd.f32 %v2414_v22, %v2302_v2  ;;  %v2307_v23 = vpop.f32.mrb[47].mxu1  ;;  %3052 = vmatprep.subr.bf16.mxu1 %v5384_v42  ;;  %v3278_v10 = vpack.c.bf16 %v6593_v53, %v6589_v25  ;;  %v910_v42 = vld [vmem:[#allocation7 + $0x7d8] sm:$0xff] }
 0x259   :  { %v2418_v39 = vpop.f32.mrb[46].mxu0  ;;  %v2308_v30 = vadd.f32 %v2307_v23, %v7638_v40  ;;  %v2417_v58 = vadd.f32 %v2416_v63, %v2304_v61  ;;  %v914_v25 = vld [vmem:[#allocation7 + $0x7f8] sm:$0xff] }
 0x25a   :  { %v2420_v27 = vpop.f32.mrb[47].mxu0  ;;  %6602 = vtanh.f32 %v2415_v24  ;;  %v2419_v11 = vadd.f32 %v2418_v39, %v2306_v36  ;;  %3008 = vmatmul.mubr.bf16.gmra.mrb[120].mxu1 %v7532_v59  ;;  %4155 = vmatprep.mubr.bf16.mxu0 %v3278_v10  ;;  %v6315_v39 = vld [vmem:[#allocation8 + $0x130] ss:$8 sps:$4 sm:$0xff]  }
 0x25b   :  { %6604 = vtanh.f32 %v2417_v58  ;;  %v2421_v41 = vadd.f32 %v2420_v27, %v2308_v30  ;;  %3053 = vmatpush1.bf16.msra.mxu1 %v5383_v14  ;;  %3017 = vmatprep.mubr.bf16.mxu1 %v7548_v45  ;;  %v5407_v58 = vcombine.low %v910_v42, %v914_v25 }
 0x25c   :  { %v6595_v34 = vpop.eup %6594  ;;  %6606 = vtanh.f32 %v2419_v11  ;;  %4156 = vmatmul.mubr.bf16.gmra.mrb[100].mxu0 %v3277_v32  ;;  %3054 = vmatprep.subr.bf16.mxu1 %v5392_v55  ;;  %v5408_v32 = vcombine.high %v910_v42, %v914_v25  ;;  %v6320_v55 = vld [vmem:[#allocation8 + $0x144] ss:$8 sps:$4 sm:$0xff]  }
 0x25d   :  { %v6597_v13 = vpop.eup %6596  ;;  %6608 = vtanh.f32 %v2421_v41  ;;  %v2311_v38 = vpop.f32.mrb[48].mxu1  ;;  %4231 = vmatpush1.bf16.msra.mxu0 %v6312_v44 }
 0x25e   :  { %v6599_v59 = vpop.eup %6598  ;;  %v2312_v43 = vadd.f32 %v2311_v38, %v7633_v62  ;;  %v2313_v1 = vpop.f32.mrb[49].mxu1  ;;  %4232 = vmatprep.subr.bf16.mxu0 %v6317_v12 }
 0x25f   :  { %v2424_v48 = vpop.f32.mrb[48].mxu0  ;;  %v6601_v45 = vpop.eup %6600  ;;  %v2314_v46 = vadd.f32 %v2313_v1, %v7638_v40  ;;  %3055 = vmatpush1.bf16.msra.mxu1 %v5391_v26  ;;  %v3285_v22 = vpack.c.bf16 %v6599_v59, %v6595_v34 }
 0x260   :  { %v2315_v47 = vpop.f32.mrb[50].mxu1  ;;  %v2426_v2 = vpop.f32.mrb[49].mxu0  ;;  %v2425_v61 = vadd.f32 %v2424_v48, %v2312_v43  ;;  %3056 = vmatprep.subr.bf16.mxu1 %v5400_v54  ;;  %v3286_v14 = vpack.c.bf16 %v6601_v45, %v6597_v13  ;;  %v6323_v13 = vld [vmem:[#allocation8 + $0x154] ss:$8 sps:$4 sm:$0xff]  }
 0x261   :  { %v2316_v53 = vadd.f32 %v2315_v47, %v7633_v62  ;;  %v2317_v51 = vpop.f32.mrb[51].mxu1  ;;  %v2428_v63 = vpop.f32.mrb[50].mxu0  ;;  %v2427_v24 = vadd.f32 %v2426_v2, %v2314_v46  ;;  %4233 = vmatpush1.bf16.msra.mxu0 %v6315_v39  ;;  %v6321_v46 = vld [vmem:[#allocation8 + $0x150] ss:$8 sps:$4 sm:$0xff]   ;;  %v6326_v2 = vld [vmem:[#allocation8 + $0x164] ss:$8 sps:$4 sm:$0xff]  }
 0x262   :  { %v2318_v36 = vadd.f32 %v2317_v51, %v7638_v40  ;;  %v2430_v23 = vpop.f32.mrb[51].mxu0  ;;  %6610 = vtanh.f32 %v2425_v61  ;;  %3018 = vmatmul.mubr.bf16.gmra.mrb[124].mxu1 %v7544_v29  ;;  %4165 = vmatprep.mubr.bf16.mxu0 %v3286_v14  ;;  %v6324_v51 = vld [vmem:[#allocation8 + $0x160] ss:$8 sps:$4 sm:$0xff]  }
 0x263   :  { %v2429_v10 = vadd.f32 %v2428_v63, %v2316_v53  ;;  %6612 = vtanh.f32 %v2427_v24  ;;  %3057 = vmatpush1.bf16.msra.mxu1 %v5399_v7  ;;  %3060 = vmatprep.mubr.bf16.mxu1 %v7267_v28 }
 0x264   :  { %v2431_v30 = vadd.f32 %v2430_v23, %v2318_v36  ;;  %v6603_v27 = vpop.eup %6602  ;;  %4166 = vmatmul.mubr.bf16.gmra.mrb[104].mxu0 %v3285_v22  ;;  %3058 = vmatprep.subr.bf16.mxu1 %v5408_v32 }
 0x265   :  { %6614 = vtanh.f32 %v2429_v10  ;;  %v6605_v33 = vpop.eup %6604  ;;  %v2321_v16 = vpop.f32.mrb[52].mxu1  ;;  %4234 = vmatprep.subr.bf16.mxu0 %v6320_v55  ;;  %v6329_v10 = vld [vmem:[#allocation8 + $0x174] ss:$8 sps:$4 sm:$0xff]  }
 0x266   :  { %6616 = vtanh.f32 %v2431_v30  ;;  %v6607_v11 = vpop.eup %6606  ;;  %v2322_v29 = vadd.f32 %v2321_v16, %v7633_v62  ;;  %v2323_v44 = vpop.f32.mrb[53].mxu1  ;;  %4235 = vmatpush1.bf16.msra.mxu0 %v6318_v0 }
 0x267   :  { %v2434_v41 = vpop.f32.mrb[52].mxu0  ;;  %v6609_v26 = vpop.eup %6608  ;;  %v2324_v12 = vadd.f32 %v2323_v44, %v7638_v40  ;;  %3059 = vmatpush1.bf16.msra.mxu1 %v5407_v58  ;;  %v3293_v54 = vpack.c.bf16 %v6607_v11, %v6603_v27  ;;  %4236 = vmatprep.subr.bf16.mxu0 %v6323_v13 }
 0x268   :  { %v2325_v28 = vpop.f32.mrb[54].mxu1  ;;  %v2436_v34 = vpop.f32.mrb[53].mxu0  ;;  %v2435_v42 = vadd.f32 %v2434_v41, %v2322_v29  ;;  %v3294_v43 = vpack.c.bf16 %v6609_v26, %v6605_v33  ;;  %v6327_v29 = vld [vmem:[#allocation8 + $0x170] ss:$8 sps:$4 sm:$0xff]   ;;  %v6332_v41 = vld [vmem:[#allocation8 + $0x184] ss:$8 sps:$4 sm:$0xff]  }
 0x269   :  { %v2326_v38 = vadd.f32 %v2325_v28, %v7633_v62  ;;  %v2327_v25 = vpop.f32.mrb[55].mxu1  ;;  %v2438_v59 = vpop.f32.mrb[54].mxu0  ;;  %v2437_v48 = vadd.f32 %v2436_v34, %v2324_v12 }
 0x26a   :  { %v2328_v1 = vadd.f32 %v2327_v25, %v7638_v40  ;;  %v2440_v45 = vpop.f32.mrb[55].mxu0  ;;  %6618 = vtanh.f32 %v2435_v42  ;;  %3061 = vmatmul.mubr.bf16.vlgmr.msra.gmra.mrb[96].mxu1 %v7257_v20  ;;  %4175 = vmatprep.mubr.bf16.mxu0 %v3294_v43 }
 0x26b   :  { %v2439_v47 = vadd.f32 %v2438_v59, %v2326_v38  ;;  %6620 = vtanh.f32 %v2437_v48  ;;  %3070 = vmatprep.mubr.bf16.mxu1 %v7325_v18  ;;  %4237 = vmatpush1.bf16.msra.mxu0 %v6321_v46  ;;  %v6335_v48 = vld [vmem:[#allocation8 + $0x194] ss:$8 sps:$4 sm:$0xff]  }
 0x26c   :  { %v2441_v7 = vadd.f32 %v2440_v45, %v2328_v1  ;;  %v6611_v22 = vpop.eup %6610  ;;  %4176 = vmatmul.mubr.bf16.gmra.mrb[108].mxu0 %v3293_v54  ;;  %4238 = vmatprep.subr.bf16.mxu0 %v6326_v2  ;;  %v6330_v54 = vld [vmem:[#allocation8 + $0x180] ss:$8 sps:$4 sm:$0xff]  }
 0x26d   :  { %6622 = vtanh.f32 %v2439_v47  ;;  %v6613_v53 = vpop.eup %6612  ;;  %v2331_v61 = vpop.f32.mrb[56].mxu1 }
 0x26e   :  { %6624 = vtanh.f32 %v2441_v7  ;;  %v2332_v14 = vadd.f32 %v2331_v61, %v7633_v62  ;;  %v2333_v32 = vpop.f32.mrb[57].mxu1  ;;  %v2444_v20 = vpop.f32.mrb[56].mxu0 }
 0x26f   :  { %v6615_v63 = vpop.eup %6614  ;;  %v2334_v24 = vadd.f32 %v2333_v32, %v7638_v40  ;;  %v2335_v23 = vpop.f32.mrb[58].mxu1  ;;  %4239 = vmatpush1.bf16.msra.mxu0 %v6324_v51  ;;  %v6333_v51 = vld [vmem:[#allocation8 + $0x190] ss:$8 sps:$4 sm:$0xff]  }
 0x270   :  { %v6617_v36 = vpop.eup %6616  ;;  %v2446_v18 = vpop.f32.mrb[57].mxu0  ;;  %v3301_v39 = vpack.c.bf16 %v6615_v63, %v6611_v22  ;;  %v2336_v55 = vadd.f32 %v2335_v23, %v7633_v62  ;;  %v2445_v30 = vadd.f32 %v2444_v20, %v2332_v14  ;;  %4240 = vmatprep.subr.bf16.mxu0 %v6329_v10  ;;  %v6338_v14 = vld [vmem:[#allocation8 + $0x1a4] ss:$8 sps:$4 sm:$0xff]  }
 0x271   :  { %v2337_v58 = vpop.f32.mrb[59].mxu1  ;;  %v2448_v27 = vpop.f32.mrb[58].mxu0  ;;  %v3302_v33 = vpack.c.bf16 %v6617_v36, %v6613_v53  ;;  %v2447_v0 = vadd.f32 %v2446_v18, %v2334_v24  ;;  %v6341_v18 = vld [vmem:[#allocation8 + $0x1b4] ss:$8 sps:$4 sm:$0xff]  }
 0x272   :  { %v2338_v16 = vadd.f32 %v2337_v58, %v7638_v40  ;;  %v2450_v11 = vpop.f32.mrb[59].mxu0  ;;  %6626 = vtanh.f32 %v2445_v30  ;;  %v2449_v44 = vadd.f32 %v2448_v27, %v2336_v55  ;;  %3071 = vmatmul.mubr.bf16.gmra.mrb[100].mxu1 %v7313_v56  ;;  %v6342_v30 = vld [vmem:[#allocation8 + $0x1c0] ss:$8 sps:$4 sm:$0xff]  }
 0x273   :  { %4185 = vmatprep.mubr.bf16.mxu0 %v3302_v33  ;;  %6628 = vtanh.f32 %v2447_v0  ;;  %3080 = vmatprep.mubr.bf16.mxu1 %v7377_v3 }
 0x274   :  { %v2451_v26 = vadd.f32 %v2450_v11, %v2338_v16  ;;  %v6619_v12 = vpop.eup %6618  ;;  %6630 = vtanh.f32 %v2449_v44  ;;  %4186 = vmatmul.mubr.bf16.gmra.mrb[112].mxu0 %v3301_v39  ;;  %v6339_v39 = vld [vmem:[#allocation8 + $0x1b0] ss:$8 sps:$4 sm:$0xff]   ;;  %v6347_v16 = vld [vmem:[#allocation8 + $0x1d4] ss:$8 sps:$4 sm:$0xff]  }
 0x275   :  { %v6621_v28 = vpop.eup %6620  ;;  %v2341_v34 = vpop.f32.mrb[60].mxu1  ;;  %4241 = vmatpush1.bf16.msra.mxu0 %v6327_v29  ;;  %v6345_v11 = vld [vmem:[#allocation8 + $0x1d0] ss:$8 sps:$4 sm:$0xff]   ;;  %v6353_v29 = vld [vmem:[#allocation8 + $0x1f4] ss:$8 sps:$4 sm:$0xff]  }
 0x276   :  { %6632 = vtanh.f32 %v2451_v26  ;;  %v2342_v38 = vadd.f32 %v2341_v34, %v7633_v62  ;;  %v2343_v42 = vpop.f32.mrb[61].mxu1  ;;  %v2454_v56 = vpop.f32.mrb[60].mxu0  ;;  %4242 = vmatprep.subr.bf16.mxu0 %v6332_v41  ;;  %v6351_v44 = vld [vmem:[#allocation8 + $0x1f0] ss:$8 sps:$4 sm:$0xff]   ;;  %v6356_v41 = vld [vmem:[#allocation8 + $0x204] ss:$8 sps:$4 sm:$0xff]  }
 0x277   :  { %v6623_v13 = vpop.eup %6622  ;;  %v2344_v59 = vadd.f32 %v2343_v42, %v7638_v40  ;;  %v2345_v43 = vpop.f32.mrb[62].mxu1  ;;  %v7694_v26 = vld [vmem:[#allocation8 + $0x304] ss:$8 sps:$4 sm:$0xff]   ;;  %v7717_v34 = vld [vmem:[#allocation8 + $0x330] ss:$8 sps:$4 sm:$0xff]  }
 0x278   :  { %v6625_v25 = vpop.eup %6624  ;;  %v2456_v3 = vpop.f32.mrb[61].mxu0  ;;  %v3309_v1 = vpack.c.bf16 %v6623_v13, %v6619_v12  ;;  %v2346_v45 = vadd.f32 %v2345_v43, %v7633_v62  ;;  %v2455_v46 = vadd.f32 %v2454_v56, %v2342_v38  ;;  %5777 = vmatprep.subr.bf16.mxu1 %v7694_v26  ;;  %v7703_v12 = vld [vmem:[#allocation8 + $0x310] ss:$8 sps:$4 sm:$0xff]   ;;  %v7732_v38 = vld [vmem:[#allocation8 + $0x364] ss:$8 sps:$4 sm:$0xff]  }
 0x279   :  { %v2347_v47 = vpop.f32.mrb[63].mxu1  ;;  %v2458_v2 = vpop.f32.mrb[62].mxu0  ;;  %v3310_v7 = vpack.c.bf16 %v6625_v25, %v6621_v28  ;;  %v2457_v53 = vadd.f32 %v2456_v3, %v2344_v59  ;;  %4243 = vmatpush1.bf16.msra.mxu0 %v6330_v54  ;;  %v7713_v28 = vld [vmem:[#allocation8 + $0x334] ss:$8 sps:$4 sm:$0xff]   ;;  %v7730_v13 = vld [vmem:[#allocation8 + $0x350] ss:$8 sps:$4 sm:$0xff]  }
 0x27a   :  { %v2348_v22 = vadd.f32 %v2347_v47, %v7638_v40  ;;  %v2460_v61 = vpop.f32.mrb[63].mxu0  ;;  %6634 = vtanh.f32 %v2455_v46  ;;  %v2459_v63 = vadd.f32 %v2458_v2, %v2346_v45  ;;  %3081 = vmatmul.mubr.bf16.gmra.mrb[104].mxu1 %v7365_v50  ;;  %4244 = vmatprep.subr.bf16.mxu0 %v6335_v48  ;;  %v6336_v40 = vld [vmem:[#allocation8 + $0x1a0] ss:$8 sps:$4 sm:$0xff]   ;;  %v7726_v54 = vld [vmem:[#allocation8 + $0x354] ss:$8 sps:$4 sm:$0xff]   ;;  %v935_v3 = vsub.s32 4, %v7203_v4 }
 0x27b   :  { %4195 = vmatprep.mubr.bf16.mxu0 %v3310_v7  ;;  %6636 = vtanh.f32 %v2457_v53  ;;  %3090 = vmatprep.mubr.bf16.mxu1 %v7429_v15  ;;  %v6344_v15 = vld [vmem:[#allocation8 + $0x1c4] ss:$8 sps:$4 sm:$0xff]   ;;  %v7738_v42 = vld [vmem:[#allocation8 + $0x374] ss:$8 sps:$4 sm:$0xff]   ;;  %v7742_v56 = vld [vmem:[#allocation8 + $0x370] ss:$8 sps:$4 sm:$0xff]   ;;  %v7761_v45 = vrot.slane %v7628_v35, %v167_v6  ;;  %v7766_v46 = vrot.slane %v7628_v35, %v171_v9 }
 0x27c   :  { %v2461_v32 = vadd.f32 %v2460_v61, %v2348_v22  ;;  %v6627_v62 = vpop.eup %6626  ;;  %6638 = vtanh.f32 %v2459_v63  ;;  %4196 = vmatmul.mubr.bf16.gmra.mrb[116].mxu0 %v3309_v1  ;;  %v7744_v25 = vld [vmem:[#allocation8 + $0x384] ss:$8 sps:$4 sm:$0xff]   ;;  %v7747_v59 = vld [vmem:[#allocation8 + $0x380] ss:$8 sps:$4 sm:$0xff]   ;;  %v7750_v43 = vld [vmem:[#allocation8 + $0x394] ss:$8 sps:$4 sm:$0xff]   ;;  %v7772_v2 = vrot.slane %v7628_v35, %v935_v3 }
 0x27d   :  { %v6629_v20 = vpop.eup %6628  ;;  %4245 = vmatpush1.bf16.msra.mxu0 %v6333_v51  ;;  %8502 = vst [vmem:[#allocation19_spill] sm:$0xff] %v7747_v59  ;;  %8503 = vst [vmem:[#allocation20_spill] sm:$0xff] %v7750_v43  ;;  %v939_v1 = vsub.s32 5, %v7203_v4  ;;  %v7756_v48 = vld [vmem:[#allocation8 + $0x390] ss:$8 sps:$4 sm:$0xff]  }
 0x27e   :  { %6640 = vtanh.f32 %v2461_v32  ;;  %v6631_v36 = vpop.eup %6630  ;;  %4246 = vmatprep.subr.bf16.mxu0 %v6338_v14  ;;  %8504 = vst [vmem:[#allocation21_spill] sm:$0xff] %v7756_v48  ;;  %v7768_v47 = vld [vmem:[#allocation8 + $0x3a4] ss:$8 sps:$4 sm:$0xff]   ;;  %v7777_v53 = vld [vmem:[#allocation8 + $0x3a0] ss:$8 sps:$4 sm:$0xff]  }
 0x27f   :  { %v3317_v23 = vpack.c.bf16 %v6631_v36, %v6627_v62  ;;  %8505 = vst [vmem:[#allocation22_spill] sm:$0xff] %v7768_v47  ;;  %v7775_v22 = vrot.slane %v7628_v35, %v939_v1  ;;  %8506 = vst [vmem:[#allocation23_spill] sm:$0xff] %v7777_v53  ;;  %v7782_v14 = vld [vmem:[#allocation8 + $0x3b4] ss:$8 sps:$4 sm:$0xff]   ;;  %v7808_v3 = vld [vmem:[#allocation8 + $0x3d0] ss:$8 sps:$4 sm:$0xff]  }
 0x280   :  { %v6633_v24 = vpop.eup %6632  ;;  %8507 = vst [vmem:[#allocation24_spill] sm:$0xff] %v7782_v14  ;;  %8512 = vst [vmem:[#allocation29_spill] sm:$0xff] %v7808_v3 }
 0x281   :  { %v3318_v50 = vpack.c.bf16 %v6633_v24, %v6629_v20  ;;  %4247 = vmatpush1.bf16.msra.mxu0 %v6336_v40  ;;  %v7788_v24 = vld [vmem:[#allocation8 + $0x3b0] ss:$8 sps:$4 sm:$0xff]  }
 0x282   :  { %3091 = vmatmul.mubr.bf16.gmra.mrb[108].mxu1 %v7417_v60  ;;  %4248 = vmatprep.subr.bf16.mxu0 %v6341_v18  ;;  %v6350_v60 = vld [vmem:[#allocation8 + $0x1e4] ss:$8 sps:$4 sm:$0xff]   ;;  %8508 = vst [vmem:[#allocation25_spill] sm:$0xff] %v7788_v24 }
 0x283   :  { %4205 = vmatprep.mubr.bf16.mxu0 %v3318_v50  ;;  %3100 = vmatprep.mubr.bf16.mxu1 %v7481_v19  ;;  %v6348_v19 = vld [vmem:[#allocation8 + $0x1e0] ss:$8 sps:$4 sm:$0xff]  }
 0x284   :  { %v6635_v10 = vpop.eup %6634  ;;  %4206 = vmatmul.mubr.bf16.gmra.mrb[120].mxu0 %v3317_v23 }
 0x285   :  { %v6637_v55 = vpop.eup %6636  ;;  %4249 = vmatpush1.bf16.msra.mxu0 %v6339_v39 }
 0x286   :  { %v6639_v58 = vpop.eup %6638  ;;  %4250 = vmatprep.subr.bf16.mxu0 %v6344_v15  ;;  %v7794_v15 = vld [vmem:[#allocation8 + $0x3c4] ss:$8 sps:$4 sm:$0xff]  }
 0x287   :  { %v3325_v33 = vpack.c.bf16 %v6639_v58, %v6635_v10  ;;  %8509 = vst [vmem:[#allocation26_spill] sm:$0xff] %v7794_v15 }
 0x288   :  { %v6641_v27 = vpop.eup %6640 }
 0x289   :  { %v3326_v0 = vpack.c.bf16 %v6641_v27, %v6637_v55  ;;  %4251 = vmatpush1.bf16.msra.mxu0 %v6342_v30  ;;  %v7797_v55 = vld [vmem:[#allocation8 + $0x3c0] ss:$8 sps:$4 sm:$0xff]  }
 0x28a   :  { %3101 = vmatmul.mubr.bf16.gmra.mrb[112].mxu1 %v7469_v52  ;;  %4252 = vmatprep.subr.bf16.mxu0 %v6347_v16  ;;  %v7696_v52 = vld [vmem:[#allocation8 + $0x300] ss:$8 sps:$4 sm:$0xff]   ;;  %8510 = vst [vmem:[#allocation27_spill] sm:$0xff] %v7797_v55 }
 0x28b   :  { %4215 = vmatprep.mubr.bf16.mxu0 %v3326_v0  ;;  %3110 = vmatprep.mubr.bf16.mxu1 %v7525_v31  ;;  %v7698_v31 = vld [vmem:[#allocation8 + $0x314] ss:$8 sps:$4 sm:$0xff]  }
 0x28c   :  { %4216 = vmatmul.mubr.bf16.gmra.mrb[124].mxu0 %v3325_v33  ;;  %5793 = vmatpush1.bf16.msra.mxu1 %v7696_v52  ;;  %v7802_v0 = vld [vmem:[#allocation8 + $0x3d4] ss:$8 sps:$4 sm:$0xff]  }
 0x28d   :  { %4253 = vmatpush1.bf16.msra.mxu0 %v6345_v11  ;;  %5778 = vmatprep.subr.bf16.mxu1 %v7698_v31  ;;  %8511 = vst [vmem:[#allocation28_spill] sm:$0xff] %v7802_v0 }
 0x28e   :  { %4254 = vmatprep.subr.bf16.mxu0 %v6350_v60 }
 0x290   :  { %5794 = vmatpush1.bf16.msra.mxu1 %v7703_v12 }
 0x291   :  { %4255 = vmatpush1.bf16.msra.mxu0 %v6348_v19 }
 0x292   :  { %3111 = vmatmul.mubr.bf16.gmra.mrb[116].mxu1 %v7517_v21  ;;  %4256 = vmatprep.subr.bf16.mxu0 %v6353_v29  ;;  %v7707_v21 = vld [vmem:[#allocation8 + $0x324] ss:$8 sps:$4 sm:$0xff]  }
 0x293   :  { %3120 = vmatprep.mubr.bf16.mxu1 %v7538_v17  ;;  %v7710_v17 = vld [vmem:[#allocation8 + $0x320] ss:$8 sps:$4 sm:$0xff]   ;;  %5779 = vmatprep.subr.bf16.mxu1 %v7707_v21 }
 0x294   :  { %5795 = vmatpush1.bf16.msra.mxu1 %v7710_v17 }
 0x295   :  { %4257 = vmatpush1.bf16.msra.mxu0 %v6351_v44  ;;  %5780 = vmatprep.subr.bf16.mxu1 %v7713_v28 }
 0x296   :  { %4339 = vmatprep.subr.bf16.mxu0 %v6356_v41 }
 0x298   :  { %5796 = vmatpush1.bf16.msra.mxu1 %v7717_v34 }
 0x29a   :  { %3121 = vmatmul.mubr.bf16.gmra.mrb[120].mxu1 %v7534_v49  ;;  %v7720_v49 = vld [vmem:[#allocation8 + $0x344] ss:$8 sps:$4 sm:$0xff]  }
 0x29b   :  { %3130 = vmatprep.mubr.bf16.mxu1 %v7550_v57  ;;  %v7723_v57 = vld [vmem:[#allocation8 + $0x340] ss:$8 sps:$4 sm:$0xff]   ;;  %5781 = vmatprep.subr.bf16.mxu1 %v7720_v49 }
 0x29c   :  { %5797 = vmatpush1.bf16.msra.mxu1 %v7723_v57 }
 0x29d   :  { %5782 = vmatprep.subr.bf16.mxu1 %v7726_v54 }
 0x2a0   :  { %5798 = vmatpush1.bf16.msra.mxu1 %v7730_v13 }
 0x2a1   :  { %5783 = vmatprep.subr.bf16.mxu1 %v7732_v38 }
 0x2a2   :  { %3131 = vmatmul.mubr.bf16.gmra.mrb[124].mxu1 %v7546_v37  ;;  %v7735_v37 = vld [vmem:[#allocation8 + $0x360] ss:$8 sps:$4 sm:$0xff]  }
 0x2a4   :  { %5799 = vmatpush1.bf16.msra.mxu1 %v7735_v37 }
 0x2a5   :  { %5784 = vmatprep.subr.bf16.mxu1 %v7738_v42 }
 0x2a8   :  { %5800 = vmatpush1.bf16.msra.mxu1 %v7742_v56 }
 0x2a9   :  { %5785 = vmatprep.subr.bf16.mxu1 %v7744_v25 }
 0x2ac   :  { %5801 = vmatpush1.bf16.msra.mxu1 %v7747_v59 }
 0x2ad   :  { %5786 = vmatprep.subr.bf16.mxu1 %v7750_v43 }
 0x2b0   :  { %5802 = vmatpush1.bf16.msra.mxu1 %v7756_v48  ;;  %v6383_v48 = vld [vmem:[#allocation8 + $0x294] ss:$8 sps:$4 sm:$0xff]  }
 0x2b1   :  { %5787 = vmatprep.subr.bf16.mxu1 %v7768_v47 }
 0x2b4   :  { %5803 = vmatpush1.bf16.msra.mxu1 %v7777_v53 }
 0x2b5   :  { %5788 = vmatprep.subr.bf16.mxu1 %v7782_v14 }
 0x2b8   :  { %5804 = vmatpush1.bf16.msra.mxu1 %v7788_v24  ;;  %v6377_v24 = vld [vmem:[#allocation8 + $0x274] ss:$8 sps:$4 sm:$0xff]  }
 0x2b9   :  { %5789 = vmatprep.subr.bf16.mxu1 %v7794_v15 }
 0x2bc   :  { %5805 = vmatpush1.bf16.msra.mxu1 %v7797_v55 }
 0x2bd   :  { %v2610_v7 = vpop.f32.mrb[64].mxu1  ;;  %5790 = vmatprep.subr.bf16.mxu1 %v7802_v0 }
 0x2be   :  { %v5873_v6 = vadd.f32 %v2610_v7, %v7761_v45  ;;  %v2612_v61 = vpop.f32.mrb[65].mxu1 }
 0x2bf   :  { %v2836_v9 = vpop.f32.mrb[64].mxu0  ;;  %v5874_v51 = vadd.f32 %v2612_v61, %v7766_v46  ;;  %v2614_v63 = vpop.f32.mrb[66].mxu1 }
 0x2c0   :  { %6642 = vtanh.f32 %v5873_v6  ;;  %v5905_v32 = vadd.f32 %v2836_v9, %v7772_v2  ;;  %v2838_v35 = vpop.f32.mrb[65].mxu0  ;;  %v5875_v62 = vadd.f32 %v2614_v63, %v7761_v45  ;;  %v2616_v20 = vpop.f32.mrb[67].mxu1  ;;  %v7814_v63 = vld [vmem:[#allocation8 + $0x3e4] ss:$8 sps:$4 sm:$0xff]   ;;  %5806 = vmatpush1.bf16.msra.mxu1 %v7808_v3  ;;  %v6371_v3 = vld [vmem:[#allocation8 + $0x254] ss:$8 sps:$4 sm:$0xff]  }
 0x2c1   :  { %6644 = vtanh.f32 %v5874_v51  ;;  %v5906_v40 = vadd.f32 %v2838_v35, %v7775_v22  ;;  %v2840_v36 = vpop.f32.mrb[66].mxu0  ;;  %v5876_v18 = vadd.f32 %v2616_v20, %v7766_v46  ;;  %8513 = vst [vmem:[#allocation30_spill] sm:$0xff] %v7814_v63  ;;  %v7821_v20 = vld [vmem:[#allocation8 + $0x3e0] ss:$8 sps:$4 sm:$0xff]   ;;  %5791 = vmatprep.subr.bf16.mxu1 %v7814_v63 }
 0x2c2   :  { %6646 = vtanh.f32 %v5905_v32  ;;  %v5907_v23 = vadd.f32 %v2840_v36, %v7772_v2  ;;  %v2842_v50 = vpop.f32.mrb[67].mxu0  ;;  %8514 = vst [vmem:[#allocation31_spill] sm:$0xff] %v7821_v20 }
 0x2c3   :  { %6648 = vtanh.f32 %v5906_v40  ;;  %v5908_v39 = vadd.f32 %v2842_v50, %v7775_v22 }
 0x2c4   :  { %6650 = vtanh.f32 %v5875_v62  ;;  %5807 = vmatpush1.bf16.msra.mxu1 %v7821_v20 }
 0x2c5   :  { %6652 = vtanh.f32 %v5907_v23  ;;  %v2620_v10 = vpop.f32.mrb[68].mxu1 }
 0x2c6   :  { %6654 = vtanh.f32 %v5876_v18  ;;  %v5877_v30 = vadd.f32 %v2620_v10, %v7761_v45  ;;  %v2622_v58 = vpop.f32.mrb[69].mxu1 }
 0x2c7   :  { %6656 = vtanh.f32 %v5908_v39  ;;  %v2846_v27 = vpop.f32.mrb[68].mxu0  ;;  %v5878_v33 = vadd.f32 %v2622_v58, %v7766_v46  ;;  %v2624_v16 = vpop.f32.mrb[70].mxu1  ;;  %v7828_v58 = vld [vmem:[#allocation8 + $0x3f4] ss:$8 sps:$4 sm:$0xff]  }
 0x2c8   :  { %6658 = vtanh.f32 %v5877_v30  ;;  %v5909_v11 = vadd.f32 %v2846_v27, %v7772_v2  ;;  %v2848_v60 = vpop.f32.mrb[69].mxu0  ;;  %v5879_v19 = vadd.f32 %v2624_v16, %v7761_v45  ;;  %v2626_v29 = vpop.f32.mrb[71].mxu1  ;;  %8515 = vst [vmem:[#allocation32_spill] sm:$0xff] %v7828_v58  ;;  %5792 = vmatprep.subr.bf16.mxu1 %v7828_v58 }
 0x2c9   :  { %6660 = vtanh.f32 %v5878_v33  ;;  %v5910_v44 = vadd.f32 %v2848_v60, %v7775_v22  ;;  %v2850_v41 = vpop.f32.mrb[70].mxu0  ;;  %v5880_v6 = vadd.f32 %v2626_v29, %v7766_v46 }
 0x2ca   :  { %v6643_v1 = vpop.eup %6642  ;;  %6662 = vtanh.f32 %v5909_v11  ;;  %v5911_v7 = vadd.f32 %v2850_v41, %v7772_v2  ;;  %v2852_v61 = vpop.f32.mrb[71].mxu0 }
 0x2cb   :  { %v6645_v9 = vpop.eup %6644  ;;  %6664 = vtanh.f32 %v5910_v44  ;;  %v5912_v51 = vadd.f32 %v2852_v61, %v7775_v22 }
 0x2cc   :  { %v7817_v32 = vpop.eup %6646  ;;  %6666 = vtanh.f32 %v5879_v19 }
 0x2cd   :  { %v7819_v35 = vpop.eup %6648  ;;  %6668 = vtanh.f32 %v5911_v7  ;;  %v2630_v62 = vpop.f32.mrb[72].mxu1  ;;  %v6354_v7 = vld [vmem:[#allocation8 + $0x200] ss:$8 sps:$4 sm:$0xff]  }
 0x2ce   :  { %v6651_v40 = vpop.eup %6650  ;;  %6670 = vtanh.f32 %v5880_v6  ;;  %v5881_v36 = vadd.f32 %v2630_v62, %v7761_v45  ;;  %v2632_v23 = vpop.f32.mrb[73].mxu1  ;;  %v7838_v6 = vld [vmem:[#allocation8 + $0x3f0] ss:$8 sps:$4 sm:$0xff]  }
 0x2cf   :  { %v7825_v18 = vpop.eup %6652  ;;  %6672 = vtanh.f32 %v5912_v51  ;;  %v2856_v50 = vpop.f32.mrb[72].mxu0  ;;  %v5882_v39 = vadd.f32 %v2632_v23, %v7766_v46  ;;  %v3271_v30 = vpack.c.bf16 %v6651_v40, %v6643_v1  ;;  %8516 = vst [vmem:[#allocation33_spill] sm:$0xff] %v7838_v6  ;;  %5808 = vmatpush1.bf16.msra.mxu1 %v7838_v6  ;;  %v6365_v6 = vld [vmem:[#allocation8 + $0x234] ss:$8 sps:$4 sm:$0xff]  }
 0x2d0   :  { %v2634_v10 = vpop.f32.mrb[74].mxu1  ;;  %v6655_v27 = vpop.eup %6654  ;;  %6674 = vtanh.f32 %v5881_v36  ;;  %v5913_v33 = vadd.f32 %v2856_v50, %v7772_v2  ;;  %v6359_v36 = vld [vmem:[#allocation8 + $0x214] ss:$8 sps:$4 sm:$0xff]  }
 0x2d1   :  { %v2858_v16 = vpop.f32.mrb[73].mxu0  ;;  %v5883_v11 = vadd.f32 %v2634_v10, %v7761_v45  ;;  %v2636_v60 = vpop.f32.mrb[75].mxu1  ;;  %6676 = vtanh.f32 %v5882_v39  ;;  %v3272_v1 = vpack.c.bf16 %v6655_v27, %v6645_v9 }
 0x2d2   :  { %v7835_v29 = vpop.eup %6656  ;;  %v5914_v44 = vadd.f32 %v2858_v16, %v7775_v22  ;;  %v2860_v41 = vpop.f32.mrb[74].mxu0  ;;  %6678 = vtanh.f32 %v5913_v33  ;;  %v5884_v62 = vadd.f32 %v2636_v60, %v7766_v46  ;;  %v6357_v33 = vld [vmem:[#allocation8 + $0x210] ss:$8 sps:$4 sm:$0xff]  }
 0x2d3   :  { %v6659_v61 = vpop.eup %6658  ;;  %v5915_v51 = vadd.f32 %v2860_v41, %v7772_v2  ;;  %v2862_v40 = vpop.f32.mrb[75].mxu0  ;;  %4258 = vmatprep.mubr.bf16.mxu0 %v3272_v1  ;;  %v6362_v41 = vld [vmem:[#allocation8 + $0x224] ss:$8 sps:$4 sm:$0xff]  }
 0x2d4   :  { %v6661_v50 = vpop.eup %6660  ;;  %6680 = vtanh.f32 %v5914_v44  ;;  %v5916_v9 = vadd.f32 %v2862_v40, %v7775_v22  ;;  %4259 = vmatmul.mubr.bf16.vlgmr.msra.gmra.mrb[96].mxu0 %v3271_v30 }
 0x2d5   :  { %v7847_v39 = vpop.eup %6662  ;;  %6682 = vtanh.f32 %v5883_v11  ;;  %4340 = vmatpush1.bf16.msra.mxu0 %v6354_v7  ;;  %v2640_v27 = vpop.f32.mrb[76].mxu1 }
 0x2d6   :  { %v7849_v10 = vpop.eup %6664  ;;  %6684 = vtanh.f32 %v5915_v51  ;;  %v5885_v60 = vadd.f32 %v2640_v27, %v7761_v45  ;;  %4341 = vmatprep.subr.bf16.mxu0 %v6359_v36  ;;  %v2642_v44 = vpop.f32.mrb[77].mxu1 }
 0x2d7   :  { %v6667_v16 = vpop.eup %6666  ;;  %6686 = vtanh.f32 %v5884_v62  ;;  %v2866_v40 = vpop.f32.mrb[76].mxu0  ;;  %v5886_v11 = vadd.f32 %v2642_v44, %v7766_v46 }
 0x2d8   :  { %v7852_v1 = vpop.eup %6668  ;;  %6688 = vtanh.f32 %v5916_v9  ;;  %v2644_v30 = vpop.f32.mrb[78].mxu1  ;;  %v3279_v19 = vpack.c.bf16 %v6667_v16, %v6659_v61  ;;  %v5917_v7 = vadd.f32 %v2866_v40, %v7772_v2  ;;  %v6360_v61 = vld [vmem:[#allocation8 + $0x220] ss:$8 sps:$4 sm:$0xff]  }
 0x2d9   :  { %v6671_v23 = vpop.eup %6670  ;;  %6690 = vtanh.f32 %v5885_v60  ;;  %v2868_v51 = vpop.f32.mrb[77].mxu0  ;;  %v5887_v62 = vadd.f32 %v2644_v30, %v7761_v45  ;;  %4342 = vmatpush1.bf16.msra.mxu0 %v6357_v33 }
 0x2da   :  { %v2646_v8 = vpop.f32.mrb[79].mxu1  ;;  %v7859_v27 = vpop.eup %6672  ;;  %6692 = vtanh.f32 %v5886_v11  ;;  %v5918_v9 = vadd.f32 %v2868_v51, %v7775_v22  ;;  %v3280_v5 = vpack.c.bf16 %v6671_v23, %v6661_v50  ;;  %4343 = vmatprep.subr.bf16.mxu0 %v6362_v41  ;;  %v6363_v50 = vld [vmem:[#allocation8 + $0x230] ss:$8 sps:$4 sm:$0xff]  }
 0x2db   :  { %v2870_v44 = vpop.f32.mrb[78].mxu0  ;;  %v6675_v16 = vpop.eup %6674  ;;  %6694 = vtanh.f32 %v5917_v7  ;;  %v5888_v40 = vadd.f32 %v2646_v8, %v7766_v46 }
 0x2dc   :  { %v5919_v60 = vadd.f32 %v2870_v44, %v7772_v2  ;;  %v2872_v30 = vpop.f32.mrb[79].mxu0  ;;  %v6677_v58 = vpop.eup %6676  ;;  %6696 = vtanh.f32 %v5918_v9  ;;  %4268 = vmatprep.mubr.bf16.mxu0 %v3280_v5  ;;  %v6368_v9 = vld [vmem:[#allocation8 + $0x244] ss:$8 sps:$4 sm:$0xff]  }
 0x2dd   :  { %v5920_v11 = vadd.f32 %v2872_v30, %v7775_v22  ;;  %v7867_v33 = vpop.eup %6678  ;;  %6698 = vtanh.f32 %v5887_v62  ;;  %4269 = vmatmul.mubr.bf16.gmra.mrb[100].mxu0 %v3279_v19  ;;  %v2650_v8 = vpop.f32.mrb[80].mxu1 }
 0x2de   :  { %v7869_v23 = vpop.eup %6680  ;;  %6700 = vtanh.f32 %v5919_v60  ;;  %4344 = vmatpush1.bf16.msra.mxu0 %v6360_v61  ;;  %v5889_v7 = vadd.f32 %v2650_v8, %v7761_v45  ;;  %v2652_v51 = vpop.f32.mrb[81].mxu1 }
 0x2df   :  { %v6683_v41 = vpop.eup %6682  ;;  %6702 = vtanh.f32 %v5888_v40  ;;  %4345 = vmatprep.subr.bf16.mxu0 %v6365_v6  ;;  %v2876_v5 = vpop.f32.mrb[80].mxu0  ;;  %v5890_v62 = vadd.f32 %v2652_v51, %v7766_v46 }
 0x2e0   :  { %v7872_v44 = vpop.eup %6684  ;;  %6704 = vtanh.f32 %v5920_v11  ;;  %v2654_v19 = vpop.f32.mrb[82].mxu1  ;;  %v3287_v30 = vpack.c.bf16 %v6683_v41, %v6675_v16  ;;  %v5921_v61 = vadd.f32 %v2876_v5, %v7772_v2  ;;  %v6366_v16 = vld [vmem:[#allocation8 + $0x240] ss:$8 sps:$4 sm:$0xff]  }
 0x2e1   :  { %v6687_v36 = vpop.eup %6686  ;;  %6706 = vtanh.f32 %v5889_v7  ;;  %v2878_v60 = vpop.f32.mrb[81].mxu0  ;;  %v5891_v40 = vadd.f32 %v2654_v19, %v7761_v45 }
 0x2e2   :  { %v2656_v20 = vpop.f32.mrb[83].mxu1  ;;  %v7879_v8 = vpop.eup %6688  ;;  %6708 = vtanh.f32 %v5890_v62  ;;  %v5922_v11 = vadd.f32 %v2878_v60, %v7775_v22  ;;  %4346 = vmatpush1.bf16.msra.mxu0 %v6363_v50  ;;  %v3288_v63 = vpack.c.bf16 %v6687_v36, %v6677_v58  ;;  %v6369_v36 = vld [vmem:[#allocation8 + $0x250] ss:$8 sps:$4 sm:$0xff]  }
 0x2e3   :  { %v2880_v51 = vpop.f32.mrb[82].mxu0  ;;  %v6691_v41 = vpop.eup %6690  ;;  %6710 = vtanh.f32 %v5921_v61  ;;  %v5892_v5 = vadd.f32 %v2656_v20, %v7766_v46  ;;  %4347 = vmatprep.subr.bf16.mxu0 %v6368_v9 }
 0x2e4   :  { %v5923_v7 = vadd.f32 %v2880_v51, %v7772_v2  ;;  %v2882_v19 = vpop.f32.mrb[83].mxu0  ;;  %v6693_v0 = vpop.eup %6692  ;;  %6712 = vtanh.f32 %v5922_v11  ;;  %4278 = vmatprep.mubr.bf16.mxu0 %v3288_v63  ;;  %v6374_v11 = vld [vmem:[#allocation8 + $0x264] ss:$8 sps:$4 sm:$0xff]  }
 0x2e5   :  { %v5924_v62 = vadd.f32 %v2882_v19, %v7775_v22  ;;  %v7887_v50 = vpop.eup %6694  ;;  %6714 = vtanh.f32 %v5891_v40  ;;  %4279 = vmatmul.mubr.bf16.gmra.mrb[104].mxu0 %v3287_v30  ;;  %v2660_v20 = vpop.f32.mrb[84].mxu1 }
 0x2e6   :  { %v7889_v58 = vpop.eup %6696  ;;  %6716 = vtanh.f32 %v5923_v7  ;;  %4348 = vmatpush1.bf16.msra.mxu0 %v6366_v16  ;;  %v5893_v61 = vadd.f32 %v2660_v20, %v7761_v45  ;;  %v2662_v60 = vpop.f32.mrb[85].mxu1 }
 0x2e7   :  { %v6699_v9 = vpop.eup %6698  ;;  %6718 = vtanh.f32 %v5892_v5  ;;  %4349 = vmatprep.subr.bf16.mxu0 %v6371_v3  ;;  %v2886_v63 = vpop.f32.mrb[84].mxu0  ;;  %v5894_v40 = vadd.f32 %v2662_v60, %v7766_v46 }
 0x2e8   :  { %v7892_v51 = vpop.eup %6700  ;;  %6720 = vtanh.f32 %v5924_v62  ;;  %v2664_v30 = vpop.f32.mrb[86].mxu1  ;;  %v3295_v19 = vpack.c.bf16 %v6699_v9, %v6691_v41  ;;  %v5925_v16 = vadd.f32 %v2886_v63, %v7772_v2  ;;  %v6372_v41 = vld [vmem:[#allocation8 + $0x260] ss:$8 sps:$4 sm:$0xff]  }
 0x2e9   :  { %v6703_v6 = vpop.eup %6702  ;;  %6722 = vtanh.f32 %v5893_v61  ;;  %v2888_v7 = vpop.f32.mrb[85].mxu0  ;;  %v5895_v5 = vadd.f32 %v2664_v30, %v7761_v45 }
 0x2ea   :  { %v2666_v55 = vpop.f32.mrb[87].mxu1  ;;  %v7899_v20 = vpop.eup %6704  ;;  %6724 = vtanh.f32 %v5894_v40  ;;  %v5926_v62 = vadd.f32 %v2888_v7, %v7775_v22  ;;  %4350 = vmatpush1.bf16.msra.mxu0 %v6369_v36  ;;  %v3296_v15 = vpack.c.bf16 %v6703_v6, %v6693_v0  ;;  %v6375_v6 = vld [vmem:[#allocation8 + $0x270] ss:$8 sps:$4 sm:$0xff]  }
 0x2eb   :  { %v2890_v60 = vpop.f32.mrb[86].mxu0  ;;  %v6707_v9 = vpop.eup %6706  ;;  %6726 = vtanh.f32 %v5925_v16  ;;  %v5896_v63 = vadd.f32 %v2666_v55, %v7766_v46  ;;  %4351 = vmatprep.subr.bf16.mxu0 %v6374_v11 }
 0x2ec   :  { %v5927_v61 = vadd.f32 %v2890_v60, %v7772_v2  ;;  %v2892_v30 = vpop.f32.mrb[87].mxu0  ;;  %v6709_v14 = vpop.eup %6708  ;;  %6728 = vtanh.f32 %v5926_v62  ;;  %4288 = vmatprep.mubr.bf16.mxu0 %v3296_v15  ;;  %v6380_v62 = vld [vmem:[#allocation8 + $0x284] ss:$8 sps:$4 sm:$0xff]  }
 0x2ed   :  { %v5928_v40 = vadd.f32 %v2892_v30, %v7775_v22  ;;  %v7907_v36 = vpop.eup %6710  ;;  %6730 = vtanh.f32 %v5895_v5  ;;  %4289 = vmatmul.mubr.bf16.gmra.mrb[108].mxu0 %v3295_v19  ;;  %v2670_v55 = vpop.f32.mrb[88].mxu1 }
 0x2ee   :  { %v7909_v0 = vpop.eup %6712  ;;  %6732 = vtanh.f32 %v5927_v61  ;;  %4352 = vmatpush1.bf16.msra.mxu0 %v6372_v41  ;;  %v5897_v16 = vadd.f32 %v2670_v55, %v7761_v45  ;;  %v2672_v7 = vpop.f32.mrb[89].mxu1 }
 0x2ef   :  { %v6715_v11 = vpop.eup %6714  ;;  %6734 = vtanh.f32 %v5896_v63  ;;  %4353 = vmatprep.subr.bf16.mxu0 %v6377_v24  ;;  %v2896_v15 = vpop.f32.mrb[88].mxu0  ;;  %v5898_v5 = vadd.f32 %v2672_v7, %v7766_v46 }
 0x2f0   :  { %v7912_v60 = vpop.eup %6716  ;;  %6736 = vtanh.f32 %v5928_v40  ;;  %v2674_v19 = vpop.f32.mrb[90].mxu1  ;;  %v3303_v30 = vpack.c.bf16 %v6715_v11, %v6707_v9  ;;  %v5929_v41 = vadd.f32 %v2896_v15, %v7772_v2  ;;  %v6378_v9 = vld [vmem:[#allocation8 + $0x280] ss:$8 sps:$4 sm:$0xff]  }
 0x2f1   :  { %v6719_v3 = vpop.eup %6718  ;;  %6738 = vtanh.f32 %v5897_v16  ;;  %v2898_v61 = vpop.f32.mrb[89].mxu0  ;;  %v5899_v63 = vadd.f32 %v2674_v19, %v7761_v45 }
 0x2f2   :  { %v2676_v53 = vpop.f32.mrb[91].mxu1  ;;  %v7919_v55 = vpop.eup %6720  ;;  %6740 = vtanh.f32 %v5898_v5  ;;  %v5930_v40 = vadd.f32 %v2898_v61, %v7775_v22  ;;  %4354 = vmatpush1.bf16.msra.mxu0 %v6375_v6  ;;  %v3304_v47 = vpack.c.bf16 %v6719_v3, %v6709_v14  ;;  %v6381_v3 = vld [vmem:[#allocation8 + $0x290] ss:$8 sps:$4 sm:$0xff]  }
 0x2f3   :  { %v2900_v7 = vpop.f32.mrb[90].mxu0  ;;  %v6723_v11 = vpop.eup %6722  ;;  %6742 = vtanh.f32 %v5929_v41  ;;  %v5900_v15 = vadd.f32 %v2676_v53, %v7766_v46  ;;  %4355 = vmatprep.subr.bf16.mxu0 %v6380_v62 }
 0x2f4   :  { %v5931_v16 = vadd.f32 %v2900_v7, %v7772_v2  ;;  %v2902_v19 = vpop.f32.mrb[91].mxu0  ;;  %v6725_v4 = vpop.eup %6724  ;;  %6744 = vtanh.f32 %v5930_v40  ;;  %4298 = vmatprep.mubr.bf16.mxu0 %v3304_v47  ;;  %v6386_v40 = vld [vmem:[#allocation8 + $0x2a4] ss:$8 sps:$4 sm:$0xff]  }
 0x2f5   :  { %v5932_v5 = vadd.f32 %v2902_v19, %v7775_v22  ;;  %v7927_v6 = vpop.eup %6726  ;;  %6746 = vtanh.f32 %v5899_v63  ;;  %4299 = vmatmul.mubr.bf16.gmra.mrb[112].mxu0 %v3303_v30  ;;  %v2680_v53 = vpop.f32.mrb[92].mxu1 }
 0x2f6   :  { %8517 = vst [vmem:[#allocation34_spill] sm:$0xff] %v7927_v6  ;;  %v7929_v14 = vpop.eup %6728  ;;  %6748 = vtanh.f32 %v5931_v16  ;;  %4356 = vmatpush1.bf16.msra.mxu0 %v6378_v9  ;;  %v5901_v41 = vadd.f32 %v2680_v53, %v7761_v45  ;;  %v2682_v61 = vpop.f32.mrb[93].mxu1 }
 0x2f7   :  { %v6731_v62 = vpop.eup %6730  ;;  %6750 = vtanh.f32 %v5900_v15  ;;  %4357 = vmatprep.subr.bf16.mxu0 %v6383_v48  ;;  %v2906_v47 = vpop.f32.mrb[92].mxu0  ;;  %v5902_v63 = vadd.f32 %v2682_v61, %v7766_v46 }
 0x2f8   :  { %v7932_v7 = vpop.eup %6732  ;;  %6752 = vtanh.f32 %v5932_v5  ;;  %v2684_v30 = vpop.f32.mrb[94].mxu1  ;;  %v3311_v19 = vpack.c.bf16 %v6731_v62, %v6723_v11  ;;  %v5933_v9 = vadd.f32 %v2906_v47, %v7772_v2  ;;  %v6384_v11 = vld [vmem:[#allocation8 + $0x2a0] ss:$8 sps:$4 sm:$0xff]  }
 0x2f9   :  { %v6735_v24 = vpop.eup %6734  ;;  %6754 = vtanh.f32 %v5901_v41  ;;  %v2908_v16 = vpop.f32.mrb[93].mxu0  ;;  %v5903_v15 = vadd.f32 %v2684_v30, %v7761_v45  ;;  %v6389_v30 = vld [vmem:[#allocation8 + $0x2b4] ss:$8 sps:$4 sm:$0xff]  }
 0x2fa   :  { %v2686_v43 = vpop.f32.mrb[95].mxu1  ;;  %v7939_v53 = vpop.eup %6736  ;;  %6756 = vtanh.f32 %v5902_v63  ;;  %v5934_v5 = vadd.f32 %v2908_v16, %v7775_v22  ;;  %4358 = vmatpush1.bf16.msra.mxu0 %v6381_v3  ;;  %v3312_v59 = vpack.c.bf16 %v6735_v24, %v6725_v4  ;;  %v6390_v16 = vld [vmem:[#allocation8 + $0x2c0] ss:$8 sps:$4 sm:$0xff]  }
 0x2fb   :  { %v2910_v61 = vpop.f32.mrb[94].mxu0  ;;  %v6739_v62 = vpop.eup %6738  ;;  %6758 = vtanh.f32 %v5933_v9  ;;  %v5904_v47 = vadd.f32 %v2686_v43, %v7766_v46  ;;  %4359 = vmatprep.subr.bf16.mxu0 %v6386_v40  ;;  %v3314_v48 = vpack.c.bf16 %v7939_v53, %v7929_v14  ;;  %v6387_v43 = vld [vmem:[#allocation8 + $0x2b0] ss:$8 sps:$4 sm:$0xff]   ;;  %v8541_v53 = vld [vmem:[#allocation29_spill] sm:$0xff] }
 0x2fc   :  { %v5935_v41 = vadd.f32 %v2910_v61, %v7772_v2  ;;  %v2912_v45 = vpop.f32.mrb[95].mxu0  ;;  %v6741_v6 = vpop.eup %6740  ;;  %6760 = vtanh.f32 %v5934_v5  ;;  %4308 = vmatprep.mubr.bf16.mxu0 %v3312_v59  ;;  %v6392_v2 = vld [vmem:[#allocation8 + $0x2c4] ss:$8 sps:$4 sm:$0xff]   ;;  %v6395_v5 = vld [vmem:[#allocation8 + $0x2d4] ss:$8 sps:$4 sm:$0xff]  }
 0x2fd   :  { %v5936_v63 = vadd.f32 %v2912_v45, %v7775_v22  ;;  %v7947_v3 = vpop.eup %6742  ;;  %6762 = vtanh.f32 %v5903_v15  ;;  %4309 = vmatmul.mubr.bf16.gmra.mrb[116].mxu0 %v3311_v19 }
 0x2fe   :  { %v7949_v4 = vpop.eup %6744  ;;  %6764 = vtanh.f32 %v5935_v41  ;;  %4360 = vmatpush1.bf16.msra.mxu0 %v6384_v11 }
 0x2ff   :  { %v6747_v46 = vpop.eup %6746  ;;  %6766 = vtanh.f32 %v5904_v47  ;;  %4361 = vmatprep.subr.bf16.mxu0 %v6389_v30  ;;  %v6393_v47 = vld [vmem:[#allocation8 + $0x2d0] ss:$8 sps:$4 sm:$0xff]   ;;  %v6398_v30 = vld [vmem:[#allocation8 + $0x2e4] ss:$8 sps:$4 sm:$0xff]  }
 0x300   :  { %v7951_v24 = vpop.eup %6748  ;;  %6768 = vtanh.f32 %v5936_v63  ;;  %v3319_v40 = vpack.c.bf16 %v6747_v46, %v6739_v62 }
 0x301   :  { %v6751_v9 = vpop.eup %6750  ;;  %v3321_v59 = vpack.c.bf16 %v7951_v24, %v7947_v3  ;;  %v8542_v24 = vld [vmem:[#allocation30_spill] sm:$0xff] }
 0x302   :  { %v7955_v22 = vpop.eup %6752  ;;  %4362 = vmatpush1.bf16.msra.mxu0 %v6387_v43  ;;  %v3320_v19 = vpack.c.bf16 %v6751_v9, %v6741_v6 }
 0x303   :  { %v6755_v15 = vpop.eup %6754  ;;  %4363 = vmatprep.subr.bf16.mxu0 %v6392_v2  ;;  %v3322_v61 = vpack.c.bf16 %v7955_v22, %v7949_v4 }
 0x304   :  { %v6757_v11 = vpop.eup %6756  ;;  %4318 = vmatprep.mubr.bf16.mxu0 %v3320_v19  ;;  %v6396_v19 = vld [vmem:[#allocation8 + $0x2e0] ss:$8 sps:$4 sm:$0xff]  }
 0x305   :  { %v7959_v41 = vpop.eup %6758  ;;  %4319 = vmatmul.mubr.bf16.gmra.mrb[120].mxu0 %v3319_v40  ;;  %v6401_v40 = vld [vmem:[#allocation8 + $0x2f4] ss:$8 sps:$4 sm:$0xff]  }
 0x306   :  { %v7961_v62 = vpop.eup %6760  ;;  %4364 = vmatpush1.bf16.msra.mxu0 %v6390_v16 }
 0x307   :  { %v6763_v45 = vpop.eup %6762  ;;  %4365 = vmatprep.subr.bf16.mxu0 %v6395_v5  ;;  %v6399_v5 = vld [vmem:[#allocation8 + $0x2f0] ss:$8 sps:$4 sm:$0xff]  }
 0x308   :  { %v7963_v6 = vpop.eup %6764  ;;  %v3327_v63 = vpack.c.bf16 %v6763_v45, %v6755_v15  ;;  %v8518_v15 = vpack.c.bf16 %v7835_v29, %v7819_v35  ;;  %v8521_v35 = vpack.c.bf16 %v7852_v1, %v7847_v39 }
 0x309   :  { %v6767_v43 = vpop.eup %6766  ;;  %v3329_v46 = vpack.c.bf16 %v7963_v6, %v7959_v41  ;;  %v8545_v41 = vld [vmem:[#allocation33_spill] sm:$0xff] }
 0x30a   :  { %v7967_v2 = vpop.eup %6768  ;;  %4366 = vmatpush1.bf16.msra.mxu0 %v6393_v47  ;;  %v3328_v9 = vpack.c.bf16 %v6767_v43, %v6757_v11  ;;  %v8519_v11 = vpack.c.bf16 %v7825_v18, %v7817_v32  ;;  %v8520_v47 = vpack.c.bf16 %v7859_v27, %v7849_v10  ;;  %v8535_v18 = vld [vmem:[#allocation23_spill] sm:$0xff]  ;;  %v8536_v10 = vld [vmem:[#allocation24_spill] sm:$0xff] }
 0x30b   :  { %4367 = vmatprep.subr.bf16.mxu0 %v6398_v30  ;;  %v3330_v16 = vpack.c.bf16 %v7967_v2, %v7961_v62  ;;  %v8543_v62 = vld [vmem:[#allocation31_spill] sm:$0xff]  ;;  %v8544_v43 = vld [vmem:[#allocation32_spill] sm:$0xff] }
 0x30c   :  { %4328 = vmatprep.mubr.bf16.mxu0 %v3328_v9 }
 0x30d   :  { %4329 = vmatmul.mubr.bf16.gmra.mrb[124].mxu0 %v3327_v63 }
 0x30e   :  { %4368 = vmatpush1.bf16.msra.mxu0 %v6396_v19  ;;  %4371 = vmatprep.mubr.bf16.mxu0 %v8518_v15 }
 0x30f   :  { %4369 = vmatprep.subr.bf16.mxu0 %v6401_v40 }
 0x312   :  { %4370 = vmatpush1.bf16.msra.mxu0 %v6399_v5 }
 0x313   :  { %4452 = vmatprep.subr.bf16.mxu0 %v7694_v26  ;;  %v8522_v26 = vpack.c.bf16 %v7879_v8, %v7869_v23  ;;  %v8537_v8 = vld [vmem:[#allocation25_spill] sm:$0xff] }
 0x315   :  { %4372 = vmatmul.mubr.bf16.vlgmr.msra.gmra.mrb[96].mxu0 %v8519_v11 }
 0x316   :  { %4381 = vmatprep.mubr.bf16.mxu0 %v8520_v47  ;;  %4453 = vmatpush1.bf16.msra.mxu0 %v7696_v52  ;;  %v8523_v52 = vpack.c.bf16 %v7872_v44, %v7867_v33 }
 0x317   :  { %4454 = vmatprep.subr.bf16.mxu0 %v7698_v31  ;;  %v8524_v31 = vpack.c.bf16 %v7899_v20, %v7889_v58  ;;  %v8538_v58 = vld [vmem:[#allocation26_spill] sm:$0xff] }
 0x31a   :  { %4455 = vmatpush1.bf16.msra.mxu0 %v7703_v12  ;;  %v8525_v12 = vpack.c.bf16 %v7892_v51, %v7887_v50  ;;  %v8539_v51 = vld [vmem:[#allocation27_spill] sm:$0xff] }
 0x31b   :  { %4456 = vmatprep.subr.bf16.mxu0 %v7707_v21  ;;  %v8526_v21 = vpack.c.bf16 %v7919_v55, %v7909_v0  ;;  %v8540_v0 = vld [vmem:[#allocation28_spill] sm:$0xff] }
 0x31d   :  { %4382 = vmatmul.mubr.bf16.gmra.mrb[100].mxu0 %v8521_v35 }
 0x31e   :  { %4391 = vmatprep.mubr.bf16.mxu0 %v8522_v26  ;;  %4457 = vmatpush1.bf16.msra.mxu0 %v7710_v17  ;;  %v8527_v17 = vpack.c.bf16 %v7912_v60, %v7907_v36 }
 0x31f   :  { %4458 = vmatprep.subr.bf16.mxu0 %v7713_v28  ;;  %v8528_v28 = vld [vmem:[#allocation19_spill] sm:$0xff] }
 0x322   :  { %4459 = vmatpush1.bf16.msra.mxu0 %v7717_v34  ;;  %v8529_v34 = vld [vmem:[#allocation20_spill] sm:$0xff] }
 0x323   :  { %4460 = vmatprep.subr.bf16.mxu0 %v7720_v49  ;;  %v8530_v49 = vld [vmem:[#allocation16_spill] sm:$0xff] }
 0x325   :  { %4392 = vmatmul.mubr.bf16.gmra.mrb[104].mxu0 %v8523_v52 }
 0x326   :  { %4401 = vmatprep.mubr.bf16.mxu0 %v8524_v31  ;;  %4461 = vmatpush1.bf16.msra.mxu0 %v7723_v57  ;;  %v943_v57 = vsub.s32 6, %v8530_v49 }
 0x327   :  { %4462 = vmatprep.subr.bf16.mxu0 %v7726_v54  ;;  %v947_v54 = vsub.s32 7, %v8530_v49 }
 0x32a   :  { %4463 = vmatpush1.bf16.msra.mxu0 %v7730_v13  ;;  %v8531_v13 = vld [vmem:[#allocation21_spill] sm:$0xff] }
 0x32b   :  { %4464 = vmatprep.subr.bf16.mxu0 %v7732_v38  ;;  %v8532_v38 = vld [vmem:[#allocation22_spill] sm:$0xff] }
 0x32d   :  { %4402 = vmatmul.mubr.bf16.gmra.mrb[108].mxu0 %v8525_v12 }
 0x32e   :  { %4411 = vmatprep.mubr.bf16.mxu0 %v8526_v21  ;;  %4465 = vmatpush1.bf16.msra.mxu0 %v7735_v37  ;;  %v6900_v37 = vld [vmem:[%s8474_s4] sm:$0xff] }
 0x32f   :  { %4466 = vmatprep.subr.bf16.mxu0 %v7738_v42  ;;  %v8030_v42 = vrot.slane %v6900_v37, %v943_v57 }
 0x332   :  { %4467 = vmatpush1.bf16.msra.mxu0 %v7742_v56  ;;  %v8032_v56 = vrot.slane %v6900_v37, %v947_v54 }
 0x333   :  { %4468 = vmatprep.subr.bf16.mxu0 %v7744_v25  ;;  %v8533_v25 = vld [vmem:[#allocation34_spill] sm:$0xff] }
 0x334   :  { %v8534_v32 = vpack.c.bf16 %v7932_v7, %v8533_v25 }
 0x335   :  { %4412 = vmatmul.mubr.bf16.gmra.mrb[112].mxu0 %v8527_v17 }
 0x336   :  { %4421 = vmatprep.mubr.bf16.mxu0 %v3314_v48  ;;  %4469 = vmatpush1.bf16.msra.mxu0 %v8528_v28 }
 0x337   :  { %4470 = vmatprep.subr.bf16.mxu0 %v8529_v34 }
 0x33a   :  { %4471 = vmatpush1.bf16.msra.mxu0 %v8531_v13 }
 0x33b   :  { %4472 = vmatprep.subr.bf16.mxu0 %v8532_v38 }
 0x33d   :  { %4422 = vmatmul.mubr.bf16.gmra.mrb[116].mxu0 %v8534_v32  ;;  %v3062_v29 = vpop.f32.mrb[96].mxu1 }
 0x33e   :  { %4431 = vmatprep.mubr.bf16.mxu0 %v3322_v61  ;;  %4473 = vmatpush1.bf16.msra.mxu0 %v8535_v18  ;;  %v5937_v39 = vadd.f32 %v3062_v29, %v8030_v42  ;;  %v3064_v1 = vpop.f32.mrb[97].mxu1 }
 0x33f   :  { %4474 = vmatprep.subr.bf16.mxu0 %v8536_v10  ;;  %v5938_v27 = vadd.f32 %v3064_v1, %v8032_v56  ;;  %v3066_v33 = vpop.f32.mrb[98].mxu1 }
 0x340   :  { %6770 = vtanh.f32 %v5937_v39  ;;  %v5939_v23 = vadd.f32 %v3066_v33, %v8030_v42  ;;  %v3068_v44 = vpop.f32.mrb[99].mxu1 }
 0x341   :  { %6772 = vtanh.f32 %v5938_v27  ;;  %v5940_v50 = vadd.f32 %v3068_v44, %v8032_v56 }
 0x342   :  { %4475 = vmatpush1.bf16.msra.mxu0 %v8537_v8  ;;  %6774 = vtanh.f32 %v5939_v23 }
 0x343   :  { %4476 = vmatprep.subr.bf16.mxu0 %v8538_v58  ;;  %6776 = vtanh.f32 %v5940_v50 }
 0x345   :  { %4432 = vmatmul.mubr.bf16.gmra.mrb[120].mxu0 %v3321_v59  ;;  %v3072_v20 = vpop.f32.mrb[100].mxu1 }
 0x346   :  { %4441 = vmatprep.mubr.bf16.mxu0 %v3330_v16  ;;  %4477 = vmatpush1.bf16.msra.mxu0 %v8539_v51  ;;  %v5941_v36 = vadd.f32 %v3072_v20, %v8030_v42  ;;  %v3074_v60 = vpop.f32.mrb[101].mxu1 }
 0x347   :  { %4478 = vmatprep.subr.bf16.mxu0 %v8540_v0  ;;  %v5942_v55 = vadd.f32 %v3074_v60, %v8032_v56  ;;  %v3076_v14 = vpop.f32.mrb[102].mxu1 }
 0x348   :  { %6778 = vtanh.f32 %v5941_v36  ;;  %v5943_v7 = vadd.f32 %v3076_v14, %v8030_v42  ;;  %v3078_v48 = vpop.f32.mrb[103].mxu1 }
 0x349   :  { %6780 = vtanh.f32 %v5942_v55  ;;  %v5944_v3 = vadd.f32 %v3078_v48, %v8032_v56 }
 0x34a   :  { %4479 = vmatpush1.bf16.msra.mxu0 %v8541_v53  ;;  %v6771_v4 = vpop.eup %6770  ;;  %6782 = vtanh.f32 %v5943_v7 }
 0x34b   :  { %4480 = vmatprep.subr.bf16.mxu0 %v8542_v24  ;;  %v6773_v59 = vpop.eup %6772  ;;  %6784 = vtanh.f32 %v5944_v3 }
 0x34c   :  { %v6775_v22 = vpop.eup %6774 }
 0x34d   :  { %4442 = vmatmul.mubr.bf16.gmra.mrb[124].mxu0 %v3329_v46  ;;  %v6777_v61 = vpop.eup %6776  ;;  %v3082_v45 = vpop.f32.mrb[104].mxu1  ;;  %v3275_v30 = vpack.c.bf16 %v6775_v22, %v6771_v4 }
 0x34e   :  { %4481 = vmatpush1.bf16.msra.mxu0 %v8543_v62  ;;  %v5945_v63 = vadd.f32 %v3082_v45, %v8030_v42  ;;  %v3084_v2 = vpop.f32.mrb[105].mxu1  ;;  %v3276_v9 = vpack.c.bf16 %v6777_v61, %v6773_v59 }
 0x34f   :  { %4482 = vmatprep.subr.bf16.mxu0 %v8544_v43  ;;  %v5946_v19 = vadd.f32 %v3084_v2, %v8032_v56  ;;  %v3086_v40 = vpop.f32.mrb[106].mxu1 }
 0x350   :  { %6786 = vtanh.f32 %v5945_v63  ;;  %v5947_v16 = vadd.f32 %v3086_v40, %v8030_v42  ;;  %v3088_v15 = vpop.f32.mrb[107].mxu1  ;;  %4484 = vmatprep.mubr.bf16.mxu0 %v3276_v9 }
 0x351   :  { %6788 = vtanh.f32 %v5946_v19  ;;  %v5948_v6 = vadd.f32 %v3088_v15, %v8032_v56 }
 0x352   :  { %4483 = vmatpush1.bf16.msra.mxu0 %v8545_v41  ;;  %v6779_v46 = vpop.eup %6778  ;;  %6790 = vtanh.f32 %v5947_v16 }
 0x353   :  { %v6781_v5 = vpop.eup %6780  ;;  %6792 = vtanh.f32 %v5948_v6 }
 0x354   :  { %v6783_v11 = vpop.eup %6782 }
 0x355   :  { %4485 = vmatmul.mubr.bf16.vlgmr.msra.gmra.mrb[96].mxu0 %v3275_v30  ;;  %v6785_v47 = vpop.eup %6784  ;;  %v3092_v35 = vpop.f32.mrb[108].mxu1  ;;  %v3283_v26 = vpack.c.bf16 %v6783_v11, %v6779_v46 }
 0x356   :  { %v5949_v52 = vadd.f32 %v3092_v35, %v8030_v42  ;;  %v3094_v31 = vpop.f32.mrb[109].mxu1  ;;  %v3284_v12 = vpack.c.bf16 %v6785_v47, %v6781_v5 }
 0x357   :  { %v5950_v21 = vadd.f32 %v3094_v31, %v8032_v56  ;;  %v3096_v17 = vpop.f32.mrb[110].mxu1 }
 0x358   :  { %6794 = vtanh.f32 %v5949_v52  ;;  %v5951_v28 = vadd.f32 %v3096_v17, %v8030_v42  ;;  %v3098_v34 = vpop.f32.mrb[111].mxu1  ;;  %4494 = vmatprep.mubr.bf16.mxu0 %v3284_v12 }
 0x359   :  { %6796 = vtanh.f32 %v5950_v21  ;;  %v5952_v49 = vadd.f32 %v3098_v34, %v8032_v56 }
 0x35a   :  { %v6787_v57 = vpop.eup %6786  ;;  %6798 = vtanh.f32 %v5951_v28 }
 0x35b   :  { %v6789_v54 = vpop.eup %6788  ;;  %6800 = vtanh.f32 %v5952_v49 }
 0x35c   :  { %v6791_v13 = vpop.eup %6790 }
 0x35d   :  { %4495 = vmatmul.mubr.bf16.gmra.mrb[100].mxu0 %v3283_v26  ;;  %v6793_v38 = vpop.eup %6792  ;;  %v3102_v37 = vpop.f32.mrb[112].mxu1  ;;  %v3291_v25 = vpack.c.bf16 %v6791_v13, %v6787_v57 }
 0x35e   :  { %v5953_v32 = vadd.f32 %v3102_v37, %v8030_v42  ;;  %v3104_v18 = vpop.f32.mrb[113].mxu1  ;;  %v3292_v29 = vpack.c.bf16 %v6793_v38, %v6789_v54 }
 0x35f   :  { %v5954_v39 = vadd.f32 %v3104_v18, %v8032_v56  ;;  %v3106_v10 = vpop.f32.mrb[114].mxu1 }
 0x360   :  { %6802 = vtanh.f32 %v5953_v32  ;;  %v5955_v1 = vadd.f32 %v3106_v10, %v8030_v42  ;;  %v3108_v27 = vpop.f32.mrb[115].mxu1  ;;  %4504 = vmatprep.mubr.bf16.mxu0 %v3292_v29 }
 0x361   :  { %6804 = vtanh.f32 %v5954_v39  ;;  %v5956_v33 = vadd.f32 %v3108_v27, %v8032_v56 }
 0x362   :  { %v6795_v23 = vpop.eup %6794  ;;  %6806 = vtanh.f32 %v5955_v1 }
 0x363   :  { %v6797_v44 = vpop.eup %6796  ;;  %6808 = vtanh.f32 %v5956_v33 }
 0x364   :  { %v6799_v8 = vpop.eup %6798 }
 0x365   :  { %4505 = vmatmul.mubr.bf16.gmra.mrb[104].mxu0 %v3291_v25  ;;  %v6801_v50 = vpop.eup %6800  ;;  %v3112_v58 = vpop.f32.mrb[116].mxu1  ;;  %v3299_v51 = vpack.c.bf16 %v6799_v8, %v6795_v23 }
 0x366   :  { %v5957_v20 = vadd.f32 %v3112_v58, %v8030_v42  ;;  %v3114_v36 = vpop.f32.mrb[117].mxu1  ;;  %v3300_v0 = vpack.c.bf16 %v6801_v50, %v6797_v44 }
 0x367   :  { %v5958_v60 = vadd.f32 %v3114_v36, %v8032_v56  ;;  %v3116_v55 = vpop.f32.mrb[118].mxu1 }
 0x368   :  { %6810 = vtanh.f32 %v5957_v20  ;;  %v5959_v14 = vadd.f32 %v3116_v55, %v8030_v42  ;;  %v3118_v7 = vpop.f32.mrb[119].mxu1  ;;  %4514 = vmatprep.mubr.bf16.mxu0 %v3300_v0 }
 0x369   :  { %6812 = vtanh.f32 %v5958_v60  ;;  %v5960_v48 = vadd.f32 %v3118_v7, %v8032_v56 }
 0x36a   :  { %v6803_v53 = vpop.eup %6802  ;;  %6814 = vtanh.f32 %v5959_v14 }
 0x36b   :  { %v6805_v3 = vpop.eup %6804  ;;  %6816 = vtanh.f32 %v5960_v48 }
 0x36c   :  { %v6807_v4 = vpop.eup %6806 }
 0x36d   :  { %4515 = vmatmul.mubr.bf16.gmra.mrb[108].mxu0 %v3299_v51  ;;  %v6809_v24 = vpop.eup %6808  ;;  %v3122_v59 = vpop.f32.mrb[120].mxu1  ;;  %v3307_v22 = vpack.c.bf16 %v6807_v4, %v6803_v53  ;;  %v3461_v53 = vld [vmem:[%s8476_s6] sm:$0x3] }
 0x36e   :  { %v5961_v61 = vadd.f32 %v3122_v59, %v8030_v42  ;;  %v3124_v62 = vpop.f32.mrb[121].mxu1  ;;  %v3308_v45 = vpack.c.bf16 %v6809_v24, %v6805_v3  ;;  %v8546_v3 = vld [vmem:[#allocation17_spill] sm:$0xff]  ;;  %v8547_v24 = vld [vmem:[#allocation18_spill] sm:$0xff] }
 0x36f   :  { %v5962_v30 = vadd.f32 %v3124_v62, %v8032_v56  ;;  %v3126_v63 = vpop.f32.mrb[122].mxu1  ;;  %v8125_v4 = vrot.slane %v3461_v53, %v8546_v3  ;;  %v8128_v59 = vrot.slane %v3461_v53, %v8547_v24 }
 0x370   :  { %6818 = vtanh.f32 %v5961_v61  ;;  %v5963_v43 = vadd.f32 %v3126_v63, %v8030_v42  ;;  %v3128_v2 = vpop.f32.mrb[123].mxu1  ;;  %4524 = vmatprep.mubr.bf16.mxu1 %v3308_v45 }
 0x371   :  { %6820 = vtanh.f32 %v5962_v30  ;;  %v5964_v9 = vadd.f32 %v3128_v2, %v8032_v56  ;;  %4525 = vmatmul.mubr.bf16.vlgmr.msra.gmra.mrb[128].mxu1 %v3307_v22 }
 0x372   :  { %v6811_v19 = vpop.eup %6810  ;;  %6822 = vtanh.f32 %v5963_v43 }
 0x373   :  { %v6813_v40 = vpop.eup %6812  ;;  %6824 = vtanh.f32 %v5964_v9 }
 0x374   :  { %v6815_v16 = vpop.eup %6814 }
 0x375   :  { %v6817_v15 = vpop.eup %6816  ;;  %v3132_v41 = vpop.f32.mrb[124].mxu1  ;;  %v3315_v6 = vpack.c.bf16 %v6815_v16, %v6811_v19 }
 0x376   :  { %v5965_v46 = vadd.f32 %v3132_v41, %v8030_v42  ;;  %v3134_v5 = vpop.f32.mrb[125].mxu1  ;;  %v3316_v11 = vpack.c.bf16 %v6817_v15, %v6813_v40 }
 0x377   :  { %v5966_v47 = vadd.f32 %v3134_v5, %v8032_v56  ;;  %v3136_v35 = vpop.f32.mrb[126].mxu1 }
 0x378   :  { %6826 = vtanh.f32 %v5965_v46  ;;  %v5967_v26 = vadd.f32 %v3136_v35, %v8030_v42  ;;  %v3138_v52 = vpop.f32.mrb[127].mxu1  ;;  %4534 = vmatprep.mubr.bf16.mxu1 %v3316_v11 }
 0x379   :  { %6828 = vtanh.f32 %v5966_v47  ;;  %v5968_v31 = vadd.f32 %v3138_v52, %v8032_v56  ;;  %4535 = vmatmul.mubr.bf16.gmra.mrb[132].mxu1 %v3315_v6 }
 0x37a   :  { %v6819_v12 = vpop.eup %6818  ;;  %6830 = vtanh.f32 %v5967_v26 }
 0x37b   :  { %v6821_v21 = vpop.eup %6820  ;;  %6832 = vtanh.f32 %v5968_v31 }
 0x37c   :  { %v6823_v17 = vpop.eup %6822 }
 0x37d   :  { %v6825_v28 = vpop.eup %6824  ;;  %v3323_v34 = vpack.c.bf16 %v6823_v17, %v6819_v12 }
 0x37e   :  { %v3324_v49 = vpack.c.bf16 %v6825_v28, %v6821_v21 }
 0x380   :  { %4544 = vmatprep.mubr.bf16.mxu1 %v3324_v49 }
 0x381   :  { %4545 = vmatmul.mubr.bf16.gmra.mrb[136].mxu1 %v3323_v34 }
 0x382   :  { %v6827_v57 = vpop.eup %6826 }
 0x383   :  { %v6829_v54 = vpop.eup %6828 }
 0x384   :  { %v6831_v13 = vpop.eup %6830 }
 0x385   :  { %v6833_v42 = vpop.eup %6832  ;;  %v3331_v38 = vpack.c.bf16 %v6831_v13, %v6827_v57 }
 0x386   :  { %v3332_v37 = vpack.c.bf16 %v6833_v42, %v6829_v54 }
 0x388   :  { %4554 = vmatprep.mubr.bf16.mxu1 %v3332_v37 }
 0x389   :  { %4555 = vmatmul.mubr.bf16.gmra.mrb[140].mxu1 %v3331_v38 }
 0x408   :  { %v4413_v56 = vpop.f32.mrb[112].mxu0 }
 0x409   :  { %v4415_v25 = vpop.f32.mrb[113].mxu0  ;;  %v5985_v46 = vadd.f32 %v4413_v56, %v8125_v4 }
 0x40a   :  { %v4417_v32 = vpop.f32.mrb[114].mxu0  ;;  %v5987_v47 = vadd.f32 %v4415_v25, %v8128_v59 }
 0x40b   :  { %v4419_v18 = vpop.f32.mrb[115].mxu0  ;;  %v5989_v52 = vadd.f32 %v4417_v32, %v8125_v4 }
 0x40c   :  { %v5991_v28 = vadd.f32 %v4419_v18, %v8128_v59 }
 0x410   :  { %v8089_v29 = vpop.f32.mrb[116].mxu0 }
 0x411   :  { %v8091_v39 = vpop.f32.mrb[117].mxu0 }
 0x412   :  { %v8093_v10 = vpop.f32.mrb[118].mxu0 }
 0x413   :  { %v8095_v1 = vpop.f32.mrb[119].mxu0  ;;  %v5997_v53 = vadd.f32 %v8093_v10, %v8125_v4 }
 0x418   :  { %v8097_v27 = vpop.f32.mrb[120].mxu0 }
 0x419   :  { %v8099_v33 = vpop.f32.mrb[121].mxu0 }
 0x41a   :  { %v8101_v23 = vpop.f32.mrb[122].mxu0 }
 0x41b   :  { %v8103_v44 = vpop.f32.mrb[123].mxu0 }
 0x420   :  { %v8105_v8 = vpop.f32.mrb[124].mxu0 }
 0x421   :  { %v8107_v50 = vpop.f32.mrb[125].mxu0 }
 0x422   :  { %v8109_v58 = vpop.f32.mrb[126].mxu0 }
 0x423   :  { %v8111_v51 = vpop.f32.mrb[127].mxu0 }
 0x428   :  { %v4486_v20 = vpop.f32.mrb[96].mxu0 }
 0x429   :  { %v4488_v36 = vpop.f32.mrb[97].mxu0  ;;  %v5969_v31 = vadd.f32 %v4486_v20, %v8125_v4  ;;  %v5993_v20 = vadd.f32 %v8089_v29, %v8125_v4 }
 0x42a   :  { %v8113_v0 = vpop.f32.mrb[98].mxu0  ;;  %v5970_v54 = vadd.f32 %v4488_v36, %v8128_v59 }
 0x42b   :  { %v8115_v60 = vpop.f32.mrb[99].mxu0 }
 0x430   :  { %v4496_v55 = vpop.f32.mrb[100].mxu0 }
 0x431   :  { %v4498_v14 = vpop.f32.mrb[101].mxu0  ;;  %v5973_v38 = vadd.f32 %v4496_v55, %v8125_v4  ;;  %v5995_v55 = vadd.f32 %v8091_v39, %v8128_v59 }
 0x432   :  { %v8117_v7 = vpop.f32.mrb[102].mxu0  ;;  %v5974_v32 = vadd.f32 %v4498_v14, %v8128_v59 }
 0x433   :  { %v8119_v48 = vpop.f32.mrb[103].mxu0  ;;  %v5975_v14 = vadd.f32 %v8117_v7, %v8125_v4  ;;  %v5971_v7 = vadd.f32 %v8113_v0, %v8125_v4 }
 0x434   :  { %v5976_v10 = vadd.f32 %v8119_v48, %v8128_v59 }
 0x438   :  { %v4506_v22 = vpop.f32.mrb[104].mxu0 }
 0x439   :  { %v5977_v61 = vadd.f32 %v4506_v22, %v8125_v4  ;;  %v4508_v62 = vpop.f32.mrb[105].mxu0 }
 0x43a   :  { %v5978_v45 = vadd.f32 %v4508_v62, %v8128_v59  ;;  %v4510_v30 = vpop.f32.mrb[106].mxu0  ;;  %v5999_v62 = vadd.f32 %v8095_v1, %v8128_v59  ;;  %v5972_v1 = vadd.f32 %v8115_v60, %v8128_v59 }
 0x43b   :  { %6834 = vtanh.f32 %v5977_v61  ;;  %v5979_v63 = vadd.f32 %v4510_v30, %v8125_v4  ;;  %v4512_v43 = vpop.f32.mrb[107].mxu0 }
 0x43c   :  { %6836 = vtanh.f32 %v5978_v45  ;;  %v5980_v2 = vadd.f32 %v4512_v43, %v8128_v59 }
 0x43d   :  { %6838 = vtanh.f32 %v5979_v63 }
 0x43e   :  { %6840 = vtanh.f32 %v5980_v2 }
 0x440   :  { %v4516_v9 = vpop.f32.mrb[108].mxu0 }
 0x441   :  { %v5981_v19 = vadd.f32 %v4516_v9, %v8125_v4  ;;  %v4518_v40 = vpop.f32.mrb[109].mxu0 }
 0x442   :  { %v5982_v16 = vadd.f32 %v4518_v40, %v8128_v59  ;;  %v4520_v15 = vpop.f32.mrb[110].mxu0 }
 0x443   :  { %6842 = vtanh.f32 %v5981_v19  ;;  %v5983_v41 = vadd.f32 %v4520_v15, %v8125_v4  ;;  %v4522_v6 = vpop.f32.mrb[111].mxu0  ;;  %v6001_v15 = vadd.f32 %v8097_v27, %v8125_v4 }
 0x444   :  { %6844 = vtanh.f32 %v5982_v16  ;;  %v5984_v5 = vadd.f32 %v4522_v6, %v8128_v59  ;;  %v4526_v35 = vpop.f32.mrb[128].mxu1  ;;  %v6003_v6 = vadd.f32 %v8099_v33, %v8128_v59 }
 0x445   :  { %v8139_v11 = vpop.eup %6834  ;;  %v5986_v12 = vadd.f32 %v5985_v46, %v4526_v35  ;;  %v4528_v21 = vpop.f32.mrb[129].mxu1  ;;  %6846 = vtanh.f32 %v5983_v41 }
 0x446   :  { %v8142_v26 = vpop.eup %6836  ;;  %v5988_v49 = vadd.f32 %v5987_v47, %v4528_v21  ;;  %v4530_v57 = vpop.f32.mrb[130].mxu1  ;;  %6848 = vtanh.f32 %v5984_v5  ;;  %v6005_v5 = vadd.f32 %v8101_v23, %v8125_v4 }
 0x447   :  { %v8146_v17 = vpop.eup %6838  ;;  %v4642_v34 = vmax.f32 %v8142_v26, %v8139_v11  ;;  %v5990_v13 = vadd.f32 %v5989_v52, %v4530_v57  ;;  %v4532_v42 = vpop.f32.mrb[131].mxu1  ;;  %6850 = vtanh.f32 %v5986_v12 }
 0x448   :  { %v5992_v56 = vadd.f32 %v5991_v28, %v4532_v42  ;;  %v8154_v25 = vpop.eup %6840  ;;  %6852 = vtanh.f32 %v5969_v31  ;;  %v6007_v31 = vadd.f32 %v8103_v44, %v8128_v59 }
 0x449   :  { %v4643_v37 = vmax.f32 %v8146_v17, %v4642_v34  ;;  %6854 = vtanh.f32 %v5988_v49 }
 0x44a   :  { %6856 = vtanh.f32 %v5970_v54 }
 0x44b   :  { %v4644_v18 = vmax.f32 %v8154_v25, %v4643_v37  ;;  %6858 = vtanh.f32 %v5973_v38  ;;  %v6009_v38 = vadd.f32 %v8105_v8, %v8125_v4  ;;  %v6015_v8 = vadd.f32 %v8111_v51, %v8128_v59 }
 0x44c   :  { %v4536_v3 = vpop.f32.mrb[132].mxu1  ;;  %6860 = vtanh.f32 %v5974_v32  ;;  %v6011_v32 = vadd.f32 %v8107_v50, %v8128_v59 }
 0x44d   :  { %v8160_v36 = vpop.eup %6842  ;;  %v5994_v29 = vadd.f32 %v5993_v20, %v4536_v3  ;;  %v4538_v61 = vpop.f32.mrb[133].mxu1  ;;  %6862 = vtanh.f32 %v5990_v13 }
 0x44e   :  { %v8166_v24 = vpop.eup %6844  ;;  %v4645_v22 = vmax.f32 %v8160_v36, %v4644_v18  ;;  %v5996_v39 = vadd.f32 %v5995_v55, %v4538_v61  ;;  %v4540_v45 = vpop.f32.mrb[134].mxu1  ;;  %6864 = vtanh.f32 %v5992_v56  ;;  %v6013_v55 = vadd.f32 %v8109_v58, %v8125_v4 }
 0x44f   :  { %v5998_v63 = vadd.f32 %v5997_v53, %v4540_v45  ;;  %v4542_v43 = vpop.f32.mrb[135].mxu1  ;;  %v8176_v2 = vpop.eup %6846  ;;  %6866 = vtanh.f32 %v5994_v29 }
 0x450   :  { %v4646_v30 = vmax.f32 %v8166_v24, %v4645_v22  ;;  %v6000_v9 = vadd.f32 %v5999_v62, %v4542_v43  ;;  %v8180_v19 = vpop.eup %6848  ;;  %6868 = vtanh.f32 %v5975_v14 }
 0x451   :  { %v8185_v40 = vpop.eup %6850  ;;  %6870 = vtanh.f32 %v5996_v39 }
 0x452   :  { %v4647_v48 = vmax.f32 %v8176_v2, %v4646_v30  ;;  %v8187_v16 = vpop.eup %6852  ;;  %6872 = vtanh.f32 %v5976_v10 }
 0x453   :  { %v8192_v41 = vpop.eup %6854  ;;  %6874 = vtanh.f32 %v5971_v7 }
 0x454   :  { %v4648_v0 = vmax.f32 %v8180_v19, %v4647_v48  ;;  %v4546_v60 = vpop.f32.mrb[136].mxu1  ;;  %v8196_v46 = vpop.eup %6856  ;;  %6876 = vtanh.f32 %v5972_v1 }
 0x455   :  { %v6002_v35 = vadd.f32 %v6001_v15, %v4546_v60  ;;  %v4548_v27 = vpop.f32.mrb[137].mxu1  ;;  %v8201_v52 = vpop.eup %6858  ;;  %6878 = vtanh.f32 %v5998_v63 }
 0x456   :  { %v4649_v47 = vmax.f32 %v8185_v40, %v4648_v0  ;;  %v6004_v12 = vadd.f32 %v6003_v6, %v4548_v27  ;;  %v4550_v33 = vpop.f32.mrb[138].mxu1  ;;  %v8205_v21 = vpop.eup %6860  ;;  %6880 = vtanh.f32 %v6000_v9  ;;  %v4597_v50 = vmin.f32 %v8187_v16, %v8201_v52 }
 0x457   :  { %v6006_v34 = vadd.f32 %v6005_v5, %v4550_v33  ;;  %v4552_v23 = vpop.f32.mrb[139].mxu1  ;;  %v8208_v49 = vpop.eup %6862  ;;  %6882 = vtanh.f32 %v6002_v35  ;;  %v4598_v45 = vmin.f32 %v8196_v46, %v8205_v21 }
 0x458   :  { %v4650_v28 = vmax.f32 %v8192_v41, %v4649_v47  ;;  %v6008_v57 = vadd.f32 %v6007_v31, %v4552_v23  ;;  %v8210_v54 = vpop.eup %6864  ;;  %6884 = vtanh.f32 %v6004_v12  ;;  %v4601_v7 = vmin.f32 %v4597_v50, %v8139_v11 }
 0x459   :  { %v8213_v42 = vpop.eup %6866  ;;  %6886 = vtanh.f32 %v6006_v34  ;;  %v4602_v9 = vmin.f32 %v4598_v45, %v8142_v26 }
 0x45a   :  { %v4651_v13 = vmax.f32 %v8208_v49, %v4650_v28  ;;  %v8215_v44 = vpop.eup %6868  ;;  %6888 = vtanh.f32 %v6008_v57  ;;  %v4605_v6 = vmin.f32 %v4601_v7, %v8160_v36 }
 0x45b   :  { %v8220_v56 = vpop.eup %6870  ;;  %v4606_v60 = vmin.f32 %v4602_v9, %v8166_v24 }
 0x45c   :  { %v4652_v37 = vmax.f32 %v8210_v54, %v4651_v13  ;;  %v4556_v18 = vpop.f32.mrb[140].mxu1  ;;  %v8224_v20 = vpop.eup %6872  ;;  %v4609_v31 = vmin.f32 %v4605_v6, %v8185_v40 }
 0x45d   :  { %v6010_v3 = vadd.f32 %v6009_v38, %v4556_v18  ;;  %v4558_v14 = vpop.f32.mrb[141].mxu1  ;;  %v8229_v22 = vpop.eup %6874  ;;  %v4610_v12 = vmin.f32 %v4606_v60, %v8192_v41  ;;  %v4639_v60 = vmax.f32 %v8196_v46, %v8205_v21 }
 0x45e   :  { %v4653_v53 = vmax.f32 %v8213_v42, %v4652_v37  ;;  %v6012_v29 = vadd.f32 %v6011_v32, %v4558_v14  ;;  %v4560_v61 = vpop.f32.mrb[142].mxu1  ;;  %v8235_v62 = vpop.eup %6876  ;;  %v4599_v59 = vmin.f32 %v8229_v22, %v8215_v44  ;;  %v4613_v57 = vmin.f32 %v4609_v31, %v8213_v42 }
 0x45f   :  { %6890 = vtanh.f32 %v6010_v3  ;;  %v6014_v4 = vadd.f32 %v6013_v55, %v4560_v61  ;;  %v4562_v39 = vpop.f32.mrb[143].mxu1  ;;  %v8240_v10 = vpop.eup %6878  ;;  %v4600_v30 = vmin.f32 %v8235_v62, %v8224_v20  ;;  %v4614_v13 = vmin.f32 %v4610_v12, %v8220_v56 }
 0x460   :  { %v4654_v58 = vmax.f32 %v8220_v56, %v4653_v53  ;;  %6892 = vtanh.f32 %v6012_v29  ;;  %v6016_v51 = vadd.f32 %v6015_v8, %v4562_v39  ;;  %v8246_v63 = vpop.eup %6880  ;;  %v4603_v48 = vmin.f32 %v4599_v59, %v8146_v17 }
 0x461   :  { %6894 = vtanh.f32 %v6014_v4  ;;  %v8251_v1 = vpop.eup %6882  ;;  %v4604_v0 = vmin.f32 %v4600_v30, %v8154_v25  ;;  %v4641_v31 = vmax.f32 %v8235_v62, %v8224_v20 }
 0x462   :  { %v4655_v43 = vmax.f32 %v8240_v10, %v4654_v58  ;;  %6896 = vtanh.f32 %v6016_v51  ;;  %v8258_v5 = vpop.eup %6884  ;;  %v4607_v47 = vmin.f32 %v4603_v48, %v8176_v2  ;;  %v4617_v53 = vmin.f32 %v4613_v57, %v8251_v1 }
 0x463   :  { %v4608_v27 = vmin.f32 %v4604_v0, %v8180_v19  ;;  %v8266_v28 = vpop.eup %6886  ;;  %v4618_v3 = vmin.f32 %v4614_v13, %v8258_v5  ;;  %v4638_v0 = vmax.f32 %v8187_v16, %v8201_v52  ;;  %v4751_v13 = vld [vmem:[#allocation10 + $0x18] sm:$0xff] }
 0x464   :  { %v4656_v15 = vmax.f32 %v8246_v63, %v4655_v43  ;;  %v4611_v33 = vmin.f32 %v4607_v47, %v8208_v49  ;;  %v8272_v38 = vpop.eup %6888 }
 0x465   :  { %v4612_v23 = vmin.f32 %v4608_v27, %v8210_v54 }
 0x466   :  { %v4657_v35 = vmax.f32 %v8251_v1, %v4656_v15  ;;  %v4615_v37 = vmin.f32 %v4611_v33, %v8240_v10  ;;  %v4748_v33 = vld [vmem:[#allocation10] sm:$0xff] }
 0x467   :  { %v4616_v55 = vmin.f32 %v4612_v23, %v8246_v63  ;;  %v4750_v23 = vld [vmem:[#allocation10 + $0x10] sm:$0xff] }
 0x468   :  { %v4658_v34 = vmax.f32 %v8258_v5, %v4657_v35  ;;  %v4619_v8 = vmin.f32 %v4615_v37, %v8266_v28  ;;  %v4640_v35 = vmax.f32 %v8229_v22, %v8215_v44  ;;  %v8308_v37 = vpack.c.bf16 %v4751_v13, %v4750_v23 }
 0x469   :  { %v8275_v32 = vpop.eup %6890  ;;  %v4620_v50 = vmin.f32 %v4616_v55, %v8272_v38  ;;  %v4753_v55 = vld [vmem:[#allocation10 + $0x28] sm:$0xff] }
 0x46a   :  { %v4659_v18 = vmax.f32 %v8266_v28, %v4658_v34  ;;  %v8281_v14 = vpop.eup %6892  ;;  %v4621_v58 = vmin.f32 %v4617_v53, %v8275_v32  ;;  %v4749_v34 = vld [vmem:[#allocation10 + $0x8] sm:$0xff] }
 0x46b   :  { %v8284_v29 = vpop.eup %6894  ;;  %v4622_v4 = vmin.f32 %v4618_v3, %v8281_v14  ;;  %v8306_v57 = vpack.c.bf16 %v4749_v34, %v4748_v33  ;;  %v4754_v3 = vld [vmem:[#allocation10 + $0x30] sm:$0xff] }
 0x46c   :  { %v4660_v61 = vmax.f32 %v8272_v38, %v4659_v18  ;;  %v8290_v39 = vpop.eup %6896  ;;  %v4623_v45 = vmin.f32 %v4619_v8, %v8284_v29  ;;  %v4752_v18 = vld [vmem:[#allocation10 + $0x20] sm:$0xff]  ;;  %v4755_v8 = vld [vmem:[#allocation10 + $0x38] sm:$0xff] }
 0x46d   :  { %v4624_v59 = vmin.f32 %v4620_v50, %v8290_v39  ;;  %v4625_v43 = vmin.f32 %v4621_v58, %v4622_v4  ;;  %5714 = vmatprep.subr.bf16.mxu1 %v8306_v57  ;;  %v8314_v53 = vpack.c.bf16 %v4753_v55, %v4752_v18  ;;  %v4756_v50 = vld [vmem:[#allocation10 + $0x40] sm:$0xff]  ;;  %v4757_v58 = vld [vmem:[#allocation10 + $0x48] sm:$0xff] }
 0x46e   :  { %v4661_v51 = vmax.f32 %v8275_v32, %v4660_v61  ;;  %5716 = vmatpush3.bf16.msra.mxu1 %v8306_v57  ;;  %v8318_v61 = vpack.c.bf16 %v4755_v8, %v4754_v3  ;;  %v8322_v4 = vpack.c.bf16 %v4757_v58, %v4756_v50 }
 0x46f   :  { %v4626_v7 = vmin.f32 %v4623_v45, %v4624_v59  ;;  %5718 = vmatprep.subr.bf16.mxu1 %v8308_v37  ;;  %v4758_v45 = vld [vmem:[#allocation10 + $0x50] sm:$0xff] }
 0x470   :  { %v4662_v30 = vmax.f32 %v8281_v14, %v4661_v51  ;;  %v4759_v51 = vld [vmem:[#allocation10 + $0x58] sm:$0xff] }
 0x471   :  { %v4627_v48 = vmin.f32 %v4625_v43, %v4626_v7  ;;  %v8326_v59 = vpack.c.bf16 %v4759_v51, %v4758_v45  ;;  %v4761_v43 = vld [vmem:[#allocation10 + $0x68] sm:$0xff] }
 0x472   :  { %v4663_v9 = vmax.f32 %v8284_v29, %v4662_v30  ;;  %5720 = vmatpush3.bf16.msra.mxu1 %v8308_v37  ;;  %v4760_v30 = vld [vmem:[#allocation10 + $0x60] sm:$0xff] }
 0x473   :  { %4628 = vmin.xlane.f32.xlu0 %v4627_v48  ;;  %5722 = vmatprep.subr.bf16.mxu1 %v8314_v53  ;;  %v8330_v7 = vpack.c.bf16 %v4761_v43, %v4760_v30  ;;  %v4763_v48 = vld [vmem:[#allocation10 + $0x78] sm:$0xff] }
 0x474   :  { %v4664_v15 = vmax.f32 %v8290_v39, %v4663_v9  ;;  %v4762_v9 = vld [vmem:[#allocation10 + $0x70] sm:$0xff] }
 0x476   :  { %v4665_v6 = vmax.f32 %v4638_v0, %v4664_v15  ;;  %5724 = vmatpush3.bf16.msra.mxu1 %v8314_v53  ;;  %v8334_v15 = vpack.c.bf16 %v4763_v48, %v4762_v9 }
 0x477   :  { %5726 = vmatprep.subr.bf16.mxu1 %v8318_v61 }
 0x478   :  { %v4666_v47 = vmax.f32 %v4639_v60, %v4665_v6 }
 0x47a   :  { %v4667_v27 = vmax.f32 %v4640_v35, %v4666_v47  ;;  %5728 = vmatpush3.bf16.msra.mxu1 %v8318_v61 }
 0x47b   :  { %5730 = vmatprep.subr.bf16.mxu1 %v8322_v4 }
 0x47c   :  { %v4668_v12 = vmax.f32 %v4641_v31, %v4667_v27 }
 0x47e   :  { %4669 = vmax.xlane.f32.xlu0 %v4668_v12  ;;  %5732 = vmatpush3.bf16.msra.mxu1 %v8322_v4 }
 0x47f   :  { %5734 = vmatprep.subr.bf16.mxu1 %v8326_v59 }
 0x482   :  { %5736 = vmatpush3.bf16.msra.mxu1 %v8326_v59 }
 0x483   :  { %5738 = vmatprep.subr.bf16.mxu1 %v8330_v7 }
 0x486   :  { %5740 = vmatpush3.bf16.msra.mxu1 %v8330_v7 }
 0x487   :  { %5742 = vmatprep.subr.bf16.mxu1 %v8334_v15 }
 0x48a   :  { %5744 = vmatpush3.bf16.msra.mxu1 %v8334_v15 }
 0x48b   :  { %5746 = vmatprep.subr.bf16.mxu1 %v8306_v57 }
 0x500   :  { %v4629_v0 = vpop.xlane.xlu0 %4628 }
 0x501   :  { %v4630_v6 = vrot.slane %v4629_v0, 4 }
 0x503   :  { %v4631_v60 = vmin.f32 %v4629_v0, %v4630_v6 }
 0x505   :  { %v4632_v47 = vrot.slane %v4631_v60, 2 }
 0x507   :  { %v4633_v35 = vmin.f32 %v4631_v60, %v4632_v47 }
 0x509   :  { %v4634_v27 = vrot.slane %v4633_v35, 1 }
 0x50b   :  { %v4670_v31 = vpop.xlane.xlu0 %4669  ;;  %v4635_v33 = vmin.f32 %v4633_v35, %v4634_v27 }
 0x50c   :  { %v4671_v12 = vrot.slane %v4670_v31, 4 }
 0x50d   :  { %6193 = vpush %v4635_v33 }
 0x50e   :  { %v4672_v34 = vmax.f32 %v4670_v31, %v4671_v12 }
 0x510   :  { %v4673_v23 = vrot.slane %v4672_v34, 2 }
 0x512   :  { %v4674_v13 = vmax.f32 %v4672_v34, %v4673_v23 }
 0x514   :  { %v4675_v18 = vrot.slane %v4674_v13, 1 }
 0x516   :  { %v4676_v55 = vmax.f32 %v4674_v13, %v4675_v18 }
 0x518   :  { %6195 = vpush %v4676_v55 }
 0x53e   :  { %s6194_s6 = spop %6193 }
 0x53f   :  { %v8339_v3 = vstv %s6194_s6 }
 0x540   :  { %v4682_v30 = vsub.f32 %v8187_v16, %v8339_v3  ;;  %v4684_v43 = vsub.f32 %v8229_v22, %v8339_v3  ;;  %v4686_v0 = vsub.f32 %v8201_v52, %v8339_v3  ;;  %v4688_v60 = vsub.f32 %v8215_v44, %v8339_v3 }
 0x541   :  { %v4690_v16 = vsub.f32 %v8139_v11, %v8339_v3  ;;  %v4692_v52 = vsub.f32 %v8146_v17, %v8339_v3  ;;  %v4694_v44 = vsub.f32 %v8160_v36, %v8339_v3  ;;  %v4696_v35 = vsub.f32 %v8176_v2, %v8339_v3 }
 0x542   :  { %v4698_v17 = vsub.f32 %v8185_v40, %v8339_v3  ;;  %v4700_v27 = vsub.f32 %v8208_v49, %v8339_v3  ;;  %v4702_v2 = vsub.f32 %v8213_v42, %v8339_v3  ;;  %v4704_v31 = vsub.f32 %v8240_v10, %v8339_v3 }
 0x543   :  { %v4706_v49 = vsub.f32 %v8251_v1, %v8339_v3  ;;  %v4708_v12 = vsub.f32 %v8266_v28, %v8339_v3  ;;  %v4710_v10 = vsub.f32 %v8275_v32, %v8339_v3  ;;  %v4712_v33 = vsub.f32 %v8284_v29, %v8339_v3 }
 0x544   :  { %v4683_v28 = vsub.f32 %v8196_v46, %v8339_v3  ;;  %v4685_v34 = vsub.f32 %v8235_v62, %v8339_v3  ;;  %v4687_v29 = vsub.f32 %v8205_v21, %v8339_v3  ;;  %v4689_v23 = vsub.f32 %v8224_v20, %v8339_v3 }
 0x545   :  { %v4691_v13 = vsub.f32 %v8142_v26, %v8339_v3  ;;  %v4693_v21 = vsub.f32 %v8154_v25, %v8339_v3  ;;  %v4695_v18 = vsub.f32 %v8166_v24, %v8339_v3  ;;  %v4697_v26 = vsub.f32 %v8180_v19, %v8339_v3 }
 0x546   :  { %v4701_v24 = vsub.f32 %v8210_v54, %v8339_v3 }
 0x549   :  { %s6196_s10 = spop %6195 }
 0x54a   :  { %v4678_v8 = vstv %s6196_s10 }
 0x54b   :  { %v4679_v50 = vsub.f32 %v4678_v8, %v8339_v3  ;;  %v4699_v8 = vsub.f32 %v8192_v41, %v8339_v3  ;;  %v4705_v41 = vsub.f32 %v8246_v63, %v8339_v3 }
 0x54d   :  { %vm4680_vm0 = vcmp.eq.f32.partialorder %v4679_v50, 0.0 }
 0x54e   :  { %v4681_v58 = vsel %vm4680_vm0, 1.0, %v4679_v50 }
 0x54f   :  { %6898 = vrcp.f32 %v4681_v58  ;;  %v4703_v58 = vsub.f32 %v8220_v56, %v8339_v3  ;;  %v4709_v56 = vsub.f32 %v8272_v38, %v8339_v3 }
 0x559   :  { %v6899_v45 = vpop.eup %6898 }
 0x55a   :  { %v8342_v51 = vmul.f32 255.0, %v6899_v45 }
 0x55c   :  { %v4716_v9 = vmul.f32 %v8342_v51, %v4682_v30  ;;  %v4718_v48 = vmul.f32 %v8342_v51, %v4684_v43  ;;  %v4720_v6 = vmul.f32 %v8342_v51, %v4686_v0  ;;  %v4722_v22 = vmul.f32 %v8342_v51, %v4688_v60 }
 0x55d   :  { %v4724_v47 = vmul.f32 %v8342_v51, %v4690_v16  ;;  %v4726_v11 = vmul.f32 %v8342_v51, %v4692_v52  ;;  %v4730_v36 = vmul.f32 %v8342_v51, %v4696_v35  ;;  %v4734_v40 = vmul.f32 %v8342_v51, %v4700_v27 }
 0x55e   :  { %5633 = vmatprep.mubr.f32.mxu1 %v4716_v9  ;;  %v4738_v42 = vmul.f32 %v8342_v51, %v4704_v31  ;;  %v4742_v1 = vmul.f32 %v8342_v51, %v4708_v12  ;;  %v4746_v32 = vmul.f32 %v8342_v51, %v4712_v33  ;;  %v4721_v46 = vmul.f32 %v8342_v51, %v4687_v29 }
 0x55f   :  { %5634 = vmatmul.mubr.f32.vlgmr.msra.gmra.mrb[144].mxu1 %v4718_v48  ;;  %v4723_v62 = vmul.f32 %v8342_v51, %v4689_v23  ;;  %v4727_v55 = vmul.f32 %v8342_v51, %v4693_v21  ;;  %v4729_v20 = vmul.f32 %v8342_v51, %v4695_v18  ;;  %v4731_v50 = vmul.f32 %v8342_v51, %v4697_v26 }
 0x560   :  { %5748 = vmatpush3.bf16.msra.mxu1 %v8306_v57  ;;  %5636 = vmatprep.mubr.f32.mxu1 %v4720_v6  ;;  %v4728_v57 = vmul.f32 %v8342_v51, %v4694_v44  ;;  %v4733_v25 = vmul.f32 %v8342_v51, %v4699_v8  ;;  %v4735_v45 = vmul.f32 %v8342_v51, %v4701_v24 }
 0x561   :  { %5750 = vmatprep.subr.bf16.mxu1 %v8308_v37  ;;  %v4737_v19 = vmul.f32 %v8342_v51, %v4703_v58  ;;  %v4707_v30 = vsub.f32 %v8258_v5, %v8339_v3  ;;  %v4739_v43 = vmul.f32 %v8342_v51, %v4705_v41  ;;  %v4711_v9 = vsub.f32 %v8281_v14, %v8339_v3 }
 0x562   :  { %v4743_v48 = vmul.f32 %v8342_v51, %v4709_v56  ;;  %v4713_v5 = vsub.f32 %v8290_v39, %v8339_v3 }
 0x563   :  { %5637 = vmatmul.mubr.f32.gmra.mrb[146].mxu1 %v4722_v22  ;;  %v4741_v54 = vmul.f32 %v8342_v51, %v4707_v30  ;;  %v4745_v63 = vmul.f32 %v8342_v51, %v4711_v9 }
 0x564   :  { %5752 = vmatpush3.bf16.msra.mxu1 %v8308_v37  ;;  %5639 = vmatprep.mubr.f32.mxu1 %v4724_v47  ;;  %v4732_v37 = vmul.f32 %v8342_v51, %v4698_v17  ;;  %v4747_v0 = vmul.f32 %v8342_v51, %v4713_v5 }
 0x565   :  { %5754 = vmatprep.subr.bf16.mxu1 %v8314_v53 }
 0x567   :  { %5640 = vmatmul.mubr.f32.gmra.mrb[148].mxu1 %v4726_v11 }
 0x568   :  { %5756 = vmatpush3.bf16.msra.mxu1 %v8314_v53  ;;  %5642 = vmatprep.mubr.f32.mxu1 %v4728_v57  ;;  %v4736_v53 = vmul.f32 %v8342_v51, %v4702_v2 }
 0x569   :  { %5758 = vmatprep.subr.bf16.mxu1 %v8318_v61 }
 0x56b   :  { %5643 = vmatmul.mubr.f32.gmra.mrb[150].mxu1 %v4730_v36 }
 0x56c   :  { %5760 = vmatpush3.bf16.msra.mxu1 %v8318_v61  ;;  %5645 = vmatprep.mubr.f32.mxu1 %v4732_v37  ;;  %v4740_v61 = vmul.f32 %v8342_v51, %v4706_v49 }
 0x56d   :  { %5762 = vmatprep.subr.bf16.mxu1 %v8322_v4 }
 0x56f   :  { %5646 = vmatmul.mubr.f32.gmra.mrb[152].mxu1 %v4734_v40 }
 0x570   :  { %5764 = vmatpush3.bf16.msra.mxu1 %v8322_v4  ;;  %5648 = vmatprep.mubr.f32.mxu1 %v4736_v53  ;;  %v4744_v4 = vmul.f32 %v8342_v51, %v4710_v10 }
 0x571   :  { %5766 = vmatprep.subr.bf16.mxu1 %v8326_v59 }
 0x573   :  { %5649 = vmatmul.mubr.f32.gmra.mrb[154].mxu1 %v4738_v42 }
 0x574   :  { %5768 = vmatpush3.bf16.msra.mxu1 %v8326_v59  ;;  %5651 = vmatprep.mubr.f32.mxu1 %v4740_v61  ;;  %v4717_v59 = vmul.f32 %v8342_v51, %v4683_v28 }
 0x575   :  { %5770 = vmatprep.subr.bf16.mxu1 %v8330_v7 }
 0x577   :  { %5652 = vmatmul.mubr.f32.gmra.mrb[156].mxu1 %v4742_v1 }
 0x578   :  { %5772 = vmatpush3.bf16.msra.mxu1 %v8330_v7  ;;  %5654 = vmatprep.mubr.f32.mxu1 %v4744_v4  ;;  %v4719_v7 = vmul.f32 %v8342_v51, %v4685_v34 }
 0x579   :  { %5774 = vmatprep.subr.bf16.mxu1 %v8334_v15 }
 0x57b   :  { %5655 = vmatmul.mubr.f32.gmra.mrb[158].mxu1 %v4746_v32 }
 0x57c   :  { %5776 = vmatpush3.bf16.msra.mxu1 %v8334_v15  ;;  %5689 = vmatprep.mubr.f32.mxu1 %v4717_v59  ;;  %v4725_v15 = vmul.f32 %v8342_v51, %v4691_v13 }
 0x57f   :  { %5690 = vmatmul.mubr.f32.vlgmr.msra.gmra.mrb[160].mxu1 %v4719_v7 }
 0x580   :  { %5692 = vmatprep.mubr.f32.mxu1 %v4721_v46 }
 0x583   :  { %5693 = vmatmul.mubr.f32.gmra.mrb[162].mxu1 %v4723_v62 }
 0x584   :  { %5695 = vmatprep.mubr.f32.mxu1 %v4725_v15 }
 0x587   :  { %5696 = vmatmul.mubr.f32.gmra.mrb[164].mxu1 %v4727_v55 }
 0x588   :  { %5698 = vmatprep.mubr.f32.mxu1 %v4729_v20 }
 0x58b   :  { %5699 = vmatmul.mubr.f32.gmra.mrb[166].mxu1 %v4731_v50 }
 0x58c   :  { %5701 = vmatprep.mubr.f32.mxu1 %v4733_v25 }
 0x58f   :  { %5702 = vmatmul.mubr.f32.gmra.mrb[168].mxu1 %v4735_v45 }
 0x590   :  { %5704 = vmatprep.mubr.f32.mxu1 %v4737_v19 }
 0x593   :  { %5705 = vmatmul.mubr.f32.gmra.mrb[170].mxu1 %v4739_v43 }
 0x594   :  { %5707 = vmatprep.mubr.f32.mxu1 %v4741_v54 }
 0x597   :  { %5708 = vmatmul.mubr.f32.gmra.mrb[172].mxu1 %v4743_v48 }
 0x598   :  { %5710 = vmatprep.mubr.f32.mxu1 %v4745_v63 }
 0x59b   :  { %5711 = vmatmul.mubr.f32.gmra.mrb[174].mxu1 %v4747_v0 }
 0x632   :  { %v5635_v6 = vpop.f32.mrb[144].mxu1 }
 0x633   :  { %4910 = vst [vmem:[#allocation11 + $0x10] sm:$0xff] %v5635_v6  ;;  %v4830_v60 = vpop.f32.mrb[145].mxu1 }
 0x634   :  { %4909 = vst [vmem:[#allocation11] sm:$0xff] %v4830_v60 }
 0x636   :  { %v5638_v38 = vpop.f32.mrb[146].mxu1 }
 0x637   :  { %4912 = vst [vmem:[#allocation11 + $0x30] sm:$0xff] %v5638_v38  ;;  %v4840_v16 = vpop.f32.mrb[147].mxu1 }
 0x638   :  { %4911 = vst [vmem:[#allocation11 + $0x20] sm:$0xff] %v4840_v16 }
 0x63a   :  { %v5641_v14 = vpop.f32.mrb[148].mxu1 }
 0x63b   :  { %4914 = vst [vmem:[#allocation11 + $0x50] sm:$0xff] %v5641_v14  ;;  %v4850_v22 = vpop.f32.mrb[149].mxu1 }
 0x63c   :  { %4913 = vst [vmem:[#allocation11 + $0x40] sm:$0xff] %v4850_v22 }
 0x63e   :  { %v5644_v47 = vpop.f32.mrb[150].mxu1 }
 0x63f   :  { %4916 = vst [vmem:[#allocation11 + $0x70] sm:$0xff] %v5644_v47  ;;  %v4860_v52 = vpop.f32.mrb[151].mxu1 }
 0x640   :  { %4915 = vst [vmem:[#allocation11 + $0x60] sm:$0xff] %v4860_v52 }
 0x642   :  { %v5647_v39 = vpop.f32.mrb[152].mxu1 }
 0x643   :  { %4918 = vst [vmem:[#allocation11 + $0x90] sm:$0xff] %v5647_v39  ;;  %v4870_v3 = vpop.f32.mrb[153].mxu1 }
 0x644   :  { %4917 = vst [vmem:[#allocation11 + $0x80] sm:$0xff] %v4870_v3 }
 0x646   :  { %v5650_v51 = vpop.f32.mrb[154].mxu1 }
 0x647   :  { %4920 = vst [vmem:[#allocation11 + $0xb0] sm:$0xff] %v5650_v51  ;;  %v4880_v44 = vpop.f32.mrb[155].mxu1 }
 0x648   :  { %4919 = vst [vmem:[#allocation11 + $0xa0] sm:$0xff] %v4880_v44 }
 0x64a   :  { %v5653_v11 = vpop.f32.mrb[156].mxu1 }
 0x64b   :  { %4922 = vst [vmem:[#allocation11 + $0xd0] sm:$0xff] %v5653_v11  ;;  %v4890_v57 = vpop.f32.mrb[157].mxu1 }
 0x64c   :  { %4921 = vst [vmem:[#allocation11 + $0xc0] sm:$0xff] %v4890_v57 }
 0x64e   :  { %v5656_v35 = vpop.f32.mrb[158].mxu1 }
 0x64f   :  { %4924 = vst [vmem:[#allocation11 + $0xf0] sm:$0xff] %v5656_v35  ;;  %v4900_v17 = vpop.f32.mrb[159].mxu1 }
 0x650   :  { %4923 = vst [vmem:[#allocation11 + $0xe0] sm:$0xff] %v4900_v17 }
 0x652   :  { %v5691_v36 = vpop.f32.mrb[160].mxu1 }
 0x653   :  { %5087 = vst [vmem:[#allocation11 + $0x18] sm:$0xff] %v5691_v36  ;;  %v5007_v37 = vpop.f32.mrb[161].mxu1 }
 0x654   :  { %5086 = vst [vmem:[#allocation11 + $0x8] sm:$0xff] %v5007_v37 }
 0x656   :  { %v5694_v27 = vpop.f32.mrb[162].mxu1 }
 0x657   :  { %5089 = vst [vmem:[#allocation11 + $0x38] sm:$0xff] %v5694_v27  ;;  %v5017_v2 = vpop.f32.mrb[163].mxu1 }
 0x658   :  { %5088 = vst [vmem:[#allocation11 + $0x28] sm:$0xff] %v5017_v2 }
 0x65a   :  { %v5697_v40 = vpop.f32.mrb[164].mxu1 }
 0x65b   :  { %5091 = vst [vmem:[#allocation11 + $0x58] sm:$0xff] %v5697_v40  ;;  %v5027_v53 = vpop.f32.mrb[165].mxu1 }
 0x65c   :  { %5090 = vst [vmem:[#allocation11 + $0x48] sm:$0xff] %v5027_v53 }
 0x65e   :  { %v5700_v31 = vpop.f32.mrb[166].mxu1 }
 0x65f   :  { %5093 = vst [vmem:[#allocation11 + $0x78] sm:$0xff] %v5700_v31  ;;  %v5037_v49 = vpop.f32.mrb[167].mxu1 }
 0x660   :  { %5092 = vst [vmem:[#allocation11 + $0x68] sm:$0xff] %v5037_v49 }
 0x662   :  { %v5703_v42 = vpop.f32.mrb[168].mxu1 }
 0x663   :  { %5095 = vst [vmem:[#allocation11 + $0x98] sm:$0xff] %v5703_v42  ;;  %v5047_v61 = vpop.f32.mrb[169].mxu1 }
 0x664   :  { %5094 = vst [vmem:[#allocation11 + $0x88] sm:$0xff] %v5047_v61 }
 0x666   :  { %v5706_v12 = vpop.f32.mrb[170].mxu1 }
 0x667   :  { %5097 = vst [vmem:[#allocation11 + $0xb8] sm:$0xff] %v5706_v12  ;;  %v5057_v10 = vpop.f32.mrb[171].mxu1 }
 0x668   :  { %5096 = vst [vmem:[#allocation11 + $0xa8] sm:$0xff] %v5057_v10 }
 0x66a   :  { %v5709_v1 = vpop.f32.mrb[172].mxu1 }
 0x66b   :  { %5099 = vst [vmem:[#allocation11 + $0xd8] sm:$0xff] %v5709_v1  ;;  %v5067_v4 = vpop.f32.mrb[173].mxu1 }
 0x66c   :  { %5098 = vst [vmem:[#allocation11 + $0xc8] sm:$0xff] %v5067_v4 }
 0x66e   :  { %v5712_v33 = vpop.f32.mrb[174].mxu1 }
 0x66f   :  { %5101 = vst [vmem:[#allocation11 + $0xf8] sm:$0xff] %v5712_v33  ;;  %v5077_v28 = vpop.f32.mrb[175].mxu1 }
 0x670   :  { %5100 = vst [vmem:[#allocation11 + $0xe8] sm:$0xff] %v5077_v28 }
 0x671   :  { %7022 = shalt.err (!%p7019_p2)
}
 0x672   :  { %s7023_s14 = scalar_lea.hbm %s8478_s8, 4096 }
 0x673   :  { %p7024_p3 = scmp.ne.s32.totalorder %s8478_s8, %s7023_s14  ;;  %p7027_p4 = scmp.lt.u32.totalorder %s7023_s14, %s8478_s8 }
 0x675   :  { %p7029_p5 = pnand %p7027_p4, %p7024_p3 }
 0x677   :  { %7032 = shalt.err (!%p7029_p5)
}
 0x678   :  { %5113 = dma.vmem_to_hbm [thread:$0]  %s5108_s12, 4096, %s8478_s8, [#allocation4], %s7042_s15, %s7042_s15, %s7043_s16  }
 0x679   :  { %7039 = dma.done.wait [#allocation4], 4096  }
 0x67a   :  { %7040 = vsyncadd [#allocation4], 4294963200 }
 0x67b   :  { %5117 = vsyncpa [#allocation3], 1 }
 0x67c   :  { %5118 = vsyncpa [#allocation6], 1 }
 0x67d   :  { %5119 = vsyncpa [#allocation9], 1 }
 0x67e   :  { %5120 = vsyncpa [#allocation4], 1 }

</bundles_post_ra>
